<compile_context>
chip_gen: v5e
topology: v5e:2x2
jax: 0.10.0
libtpu: 0.0.40
codegen_flags: <defaults>
</compile_context>

<pallas_src>
import functools

import jax
import jax.numpy as jnp
from jax.experimental import pallas as pl
from jax.experimental.pallas import tpu as pltpu


LEAK = 0.2            # LeakyReLU negative slope
CIN_ALIGN = 32        # pad Cin so 4*Cin (space-to-depth channels) is a multiple of 128 lanes
MAX_ROW_TILE = 32     # hard cap on output rows per grid step
VMEM_ROW_BUDGET = 20 * 1024 * 1024   # per-step byte budget used to derive the row tile
VMEM_LIMIT = 32 * 1024 * 1024        # explicit scoped-VMEM limit (safe on v5e/v6e/v7x)


def _round_up(x, m):
    return (x + m - 1) // m * m


# --------------------------------------------------------------------------------------
# Pallas kernels
# --------------------------------------------------------------------------------------

def _conv_core(x_ref, halo_ref, w_ref, b_ref, *, th, wo_pad, c4):
    """Shared body: fused [ReflectionPad(1)+zero-pad(1)] 4x4 stride-2 conv + bias + LeakyReLU.

    x_ref:    (1, th, wq_pad, c4)   space-to-depth input rows for this row tile (bf16)
    halo_ref: (1, 1,  wq_pad, c4)   one extra (stencil overlap) row (bf16)
    w_ref:    (4*c4, Cout)          weights as 4 slabs of c4 rows, slab order (a, b) (bf16)
    b_ref:    (1, Cout)             f32 bias
    Returns y: (th*wo_pad, Cout) f32 post-activation.
    """
    mt = th * wo_pad
    x0 = x_ref[0]                                                    # (th, wq, c4)   a = 0
    if th > 1:                                                       # a = 1: stitch halo only
        x1 = jnp.concatenate([x0[1:], halo_ref[0]], axis=0)         # (th, wq, c4)
    else:
        x1 = halo_ref[0]

    # Four accumulated partial matmuls (K = c4 each) instead of one (M, 4*c4) concat+matmul.
    acc = None
    for idx, (xa, b) in enumerate(((x0, 0), (x0, 1), (x1, 0), (x1, 1))):
        view = xa[:, b:b + wo_pad, :].reshape(mt, c4)
        w_slab = w_ref[idx * c4:(idx + 1) * c4, :]
        part = jnp.dot(view, w_slab, preferred_element_type=jnp.float32)
        acc = part if acc is None else acc + part

    y = acc + b_ref[...]                                             # fused bias
    return jnp.where(y > 0, y, LEAK * y)                             # fused LeakyReLU(0.2)


def _conv4x4s2_lrelu_kernel(x_ref, halo_ref, w_ref, b_ref, o_ref, *, th, wo_pad, c4):
    """Intermediate layer: store bf16 activations."""
    y = _conv_core(x_ref, halo_ref, w_ref, b_ref, th=th, wo_pad=wo_pad, c4=c4)
    o_ref[0, 0] = y.astype(o_ref.dtype)


def _conv4x4s2_lrelu_final_kernel(x_ref, halo_ref, w_ref, b_ref, fw_ref, fb_ref, o_ref,
                                  *, th, wo_pad, c4):
    """Last layer: fuse the final Conv2d(ch, 1, kernel=1) into the epilogue.

    fw_ref: (1, Cout) f32 (bf16-rounded) final 1x1 weight; fb_ref: (1, 1) f32 final bias.
    The 256-channel layer-3 activation never leaves registers/VMEM.
    """
    y = _conv_core(x_ref, halo_ref, w_ref, b_ref, th=th, wo_pad=wo_pad, c4=c4)
    y = y.astype(jnp.bfloat16).astype(jnp.float32)       # match inter-layer bf16 rounding
    fin = jnp.sum(y * fw_ref[...], axis=-1, keepdims=True) + fb_ref[...]   # (mt, 1) f32
    o_ref[0, 0] = fin.astype(o_ref.dtype)


# --------------------------------------------------------------------------------------
# pallas_call wrapper
# --------------------------------------------------------------------------------------

def _pick_row_tile(ho, wq_pad, c4, cout):
    """Row-tile size from an explicit per-step VMEM byte budget (double-buffered blocks,
    one live shifted-view temp and the f32 accumulator)."""
    in_row = wq_pad * c4 * 2          # bf16 s2d input row
    out_row = wq_pad * cout * 2       # bf16 output row (upper bound on wo_pad)
    acc_row = wq_pad * cout * 4       # f32 accumulator row
    per_row = 3 * in_row + 2 * out_row + acc_row
    th = max(1, min(MAX_ROW_TILE, VMEM_ROW_BUDGET // max(per_row, 1), ho))
    n = -(-ho // th)
    th = -(-ho // n)                  # rebalance so tiles are even
    return th, n


def leaky_conv4x4_s2(x, w_flat, bias, final_w=None, final_b=None):
    """ReflectionPad2d(1) -> Conv2d(k=4, s=2, p=1, bias=True) -> LeakyReLU(0.2)
    [optionally fused with the final Conv2d(ch, 1, kernel=1)].

    x:       (N, H, W, Cp) bf16, Cp == w_flat.shape[0] // 16 (channel-padded)
    w_flat:  (16*Cp, Cout) bf16, rows ordered (a, b, ph, pw, c)
    bias:    (1, Cout) f32
    final_w: optional (1, Cout) f32;  final_b: optional (1, 1) f32
    returns (N, Ho, Wo, Cout) bf16   [or (N, Ho, Wo, 1) f32 when final_w is given]
    """
    N, H, W, Cp = x.shape
    Cout = w_flat.shape[1]
    assert w_flat.shape[0] == 16 * Cp
    Ho, Wo = H // 2 + 1, W // 2 + 1
    Hq, Wq = Ho + 1, Wo + 1

    # ---- XLA glue (1x data volume): padding + 2x2 space-to-depth -----------------------
    xr = jnp.pad(x, ((0, 0), (1, 1), (1, 1), (0, 0)), mode='reflect')   # ReflectionPad2d(1)
    xz = jnp.pad(xr, ((0, 0), (1, 1), (1, 1), (0, 0)))                  # Conv2d padding=1
    xz = xz[:, :2 * Hq, :2 * Wq, :]                                     # drop unused pad
    xs = xz.reshape(N, Hq, 2, Wq, 2, Cp).transpose(0, 1, 3, 2, 4, 5)
    xs = xs.reshape(N, Hq, Wq, 4 * Cp)                                  # channel = (2ph+pw)*Cp + c

    c4 = 4 * Cp
    wo_pad = _round_up(Wo, 16)
    wq_pad = wo_pad + 1
    th, n_row_tiles = _pick_row_tile(Ho, wq_pad, c4, Cout)
    ho_pad = n_row_tiles * th
    hq_pad = ho_pad + 1
    xs = jnp.pad(xs, ((0, 0), (0, hq_pad - Hq), (0, wq_pad - Wq), (0, 0)))
    mt = th * wo_pad

    in_specs = [
        pl.BlockSpec((1, th, wq_pad, c4), lambda n, t: (n, t, 0, 0)),            # row slab
        pl.BlockSpec((1, 1, wq_pad, c4), lambda n, t: (n, (t + 1) * th, 0, 0)),  # halo row
        pl.BlockSpec((16 * Cp, Cout), lambda n, t: (0, 0)),                      # weights
        pl.BlockSpec((1, Cout), lambda n, t: (0, 0)),                            # bias
    ]
    cparams = pltpu.CompilerParams(
        dimension_semantics=("parallel", "parallel"),
        vmem_limit_bytes=VMEM_LIMIT)

    if final_w is None:
        out = pl.pallas_call(
            functools.partial(_conv4x4s2_lrelu_kernel, th=th, wo_pad=wo_pad, c4=c4),
            out_shape=jax.ShapeDtypeStruct((N, n_row_tiles, mt, Cout), jnp.bfloat16),
            grid=(N, n_row_tiles),
            in_specs=in_specs,
            out_specs=pl.BlockSpec((1, 1, mt, Cout), lambda n, t: (n, t, 0, 0)),
            compiler_params=cparams,
        )(xs, xs, w_flat, bias)
        out = out.reshape(N, ho_pad, wo_pad, Cout)
        return out[:, :Ho, :Wo, :]

    # Last layer: fused 1x1 conv epilogue, tiny (mt, 1) f32 output per step.
    out = pl.pallas_call(
        functools.partial(_conv4x4s2_lrelu_final_kernel, th=th, wo_pad=wo_pad, c4=c4),
        out_shape=jax.ShapeDtypeStruct((N, n_row_tiles, mt, 1), jnp.float32),
        grid=(N, n_row_tiles),
        in_specs=in_specs + [
            pl.BlockSpec((1, Cout), lambda n, t: (0, 0)),                        # final 1x1 w
            pl.BlockSpec((1, 1), lambda n, t: (0, 0)),                           # final bias
        ],
        out_specs=pl.BlockSpec((1, 1, mt, 1), lambda n, t: (n, t, 0, 0)),
        compiler_params=cparams,
    )(xs, xs, w_flat, bias, final_w, final_b)
    out = out.reshape(N, ho_pad, wo_pad, 1)
    return out[:, :Ho, :Wo, :]


# --------------------------------------------------------------------------------------
# Parameters (synthetic, deterministic) + forward
# --------------------------------------------------------------------------------------

def _flatten_conv_w(w_torch, cin_pad):
    """(Cout, Cin, 4, 4) torch layout -> (16*cin_pad, Cout), rows ordered (a, b, ph, pw, c)
    to match the in-kernel slab/patch order; tap (kh, kw) = (2a+ph, 2b+pw)."""
    cout, cin = w_torch.shape[:2]
    blocks = []
    for a in range(2):
        for b in range(2):
            for ph in range(2):
                for pw in range(2):
                    blk = w_torch[:, :, 2 * a + ph, 2 * b + pw].T          # (Cin, Cout)
                    blk = jnp.pad(blk, ((0, cin_pad - cin), (0, 0)))
                    blocks.append(blk)
    return jnp.concatenate(blocks, axis=0)


def init_params(key, input_dim, n_layer=3):
    ks = iter(jax.random.split(key, 2 * (n_layer + 1)))
    convs, raw_convs = [], []
    ch_in, ch_out = input_dim, 64
    for _ in range(n_layer):
        cin_pad = _round_up(ch_in, CIN_ALIGN)
        # gaussian_weights_init: N(0, 0.02); stored bf16-rounded so the reference matches.
        w = (jax.random.normal(next(ks), (ch_out, ch_in, 4, 4), jnp.float32) * 0.02
             ).astype(jnp.bfloat16).astype(jnp.float32)
        b = jax.random.normal(next(ks), (ch_out,), jnp.float32) * 0.02
        convs.append({'w': _flatten_conv_w(w, cin_pad).astype(jnp.bfloat16),
                      'b': b.reshape(1, ch_out)})
        raw_convs.append((w.astype(jnp.bfloat16), b))
        ch_in, ch_out = ch_out, ch_out * 2
    # Final Conv2d(ch_in, 1, kernel=1) — fused into the last conv layer's epilogue.
    wf = (jax.random.normal(next(ks), (1, ch_in), jnp.float32) * 0.02).astype(jnp.bfloat16)
    bf = jax.random.normal(next(ks), (1,), jnp.float32) * 0.02
    params = {'convs': convs,
              'final_w': wf.astype(jnp.float32),    # (1, ch_in) f32 (bf16-rounded values)
              'final_b': bf.reshape(1, 1)}          # (1, 1) f32
    raw = {'convs': raw_convs, 'final': (wf, bf)}
    return params, raw


def dis_forward(params, x_nchw):
    # NCHW -> NHWC, bf16 activations (f32 accumulation inside the kernels)
    x = jnp.transpose(x_nchw, (0, 2, 3, 1)).astype(jnp.bfloat16)
    n_layer = len(params['convs'])
    for i, layer in enumerate(params['convs']):
        cin_pad = layer['w'].shape[0] // 16
        if x.shape[-1] < cin_pad:                   # zero-pad channels (zero weight rows)
            x = jnp.pad(x, ((0, 0), (0, 0), (0, 0), (0, cin_pad - x.shape[-1])))
        if i == n_layer - 1:
            x = leaky_conv4x4_s2(x, layer['w'], layer['b'],
                                 final_w=params['final_w'], final_b=params['final_b'])
        else:
            x = leaky_conv4x4_s2(x, layer['w'], layer['b'])
    return jnp.transpose(x, (0, 3, 1, 2))            # NHWC -> NCHW, (N, 1, H', W') f32


def ref_forward(raw, x_nchw):
    """Pure-JAX (XLA conv) reference with the same bf16 rounding points as the kernels."""
    x = jnp.transpose(x_nchw, (0, 2, 3, 1)).astype(jnp.bfloat16)
    for w, b in raw['convs']:
        xr = jnp.pad(x, ((0, 0), (1, 1), (1, 1), (0, 0)), mode='reflect')
        y = jax.lax.conv_general_dilated(
            xr, w, window_strides=(2, 2), padding=((1, 1), (1, 1)),
            dimension_numbers=('NHWC', 'OIHW', 'NHWC'),
            preferred_element_type=jnp.float32)
        y = y + b.reshape(1, 1, 1, -1)
        y = jnp.where(y > 0, y, LEAK * y)
        x = y.astype(jnp.bfloat16)
    wf, bf = raw['final']
    y = jnp.einsum('nhwc,oc->nhwo', x, wf, preferred_element_type=jnp.float32) + bf
    return jnp.transpose(y, (0, 3, 1, 2))


# --------------------------------------------------------------------------------------

if __name__ == "__main__":
    key = jax.random.PRNGKey(0)
    pkey, xkey = jax.random.split(key)

    N, C, H, W = 2, 4, 16, 16
    n_layer = 3

    params, raw = init_params(pkey, input_dim=C, n_layer=n_layer)
    x = jax.random.normal(xkey, (N, C, H, W), jnp.float32)

    fwd = jax.jit(dis_forward)
    out = jax.block_until_ready(fwd(params, x))

    h, w = H, W
    for _ in range(n_layer):
        h, w = h // 2 + 1, w // 2 + 1
    assert out.shape == (N, 1, h, w), out.shape
    assert bool(jnp.all(jnp.isfinite(out)))

    ref = jax.block_until_ready(jax.jit(ref_forward)(raw, x))
    max_err = float(jnp.max(jnp.abs(out - ref)))
    assert jnp.allclose(out, ref, atol=3e-3, rtol=3e-2), max_err

    print("KERNEL_OK")
</pallas_src>

<mosaic_0001>
module attributes {stable_mosaic.version = 11 : i64} {
  func.func @_conv4x4s2_lrelu_kernel(%arg0: i32, %arg1: i32, %arg2: memref<1x9x17x128xbf16, #tpu.memory_space<vmem>>, %arg3: memref<1x1x17x128xbf16, #tpu.memory_space<vmem>>, %arg4: memref<512x64xbf16, #tpu.memory_space<vmem>>, %arg5: memref<1x64xf32, #tpu.memory_space<vmem>>, %arg6: memref<1x1x144x64xbf16, #tpu.memory_space<vmem>>) attributes {dimension_semantics = [#tpu.dimension_semantics<parallel>, #tpu.dimension_semantics<parallel>], iteration_bounds = array<i64: 2, 1>, scalar_prefetch = 0 : i64, scratch_operands = 0 : i64, tpu.core_type = #tpu.core_type<tc>, window_params = [{transform_indices = @transform_0, window_bounds = array<i64: 1, 9, 17, 128>}, {transform_indices = @transform_1, window_bounds = array<i64: 1, 1, 17, 128>}, {pipeline_mode = #tpu.pipeline_mode<synchronous>, transform_indices = @transform_2, window_bounds = array<i64: 512, 64>}, {pipeline_mode = #tpu.pipeline_mode<synchronous>, transform_indices = @transform_3, window_bounds = array<i64: 1, 64>}, {transform_indices = @transform_4, window_bounds = array<i64: 1, 1, 144, 64>}]} {
    %c0 = arith.constant 0 : index
    %c0_0 = arith.constant 0 : index
    %c0_1 = arith.constant 0 : index
    %c0_2 = arith.constant 0 : index
    %0 = vector.load %arg2[%c0, %c0_0, %c0_1, %c0_2] : memref<1x9x17x128xbf16, #tpu.memory_space<vmem>>, vector<1x9x17x128xbf16>
    %1 = vector.shape_cast %0 : vector<1x9x17x128xbf16> to vector<9x17x128xbf16>
    %2 = vector.extract_strided_slice %1 {offsets = [1, 0, 0], sizes = [8, 17, 128], strides = [1, 1, 1]} : vector<9x17x128xbf16> to vector<8x17x128xbf16>
    %c0_3 = arith.constant 0 : index
    %c0_4 = arith.constant 0 : index
    %c0_5 = arith.constant 0 : index
    %c0_6 = arith.constant 0 : index
    %3 = vector.load %arg3[%c0_3, %c0_4, %c0_5, %c0_6] : memref<1x1x17x128xbf16, #tpu.memory_space<vmem>>, vector<1x1x17x128xbf16>
    %4 = vector.shape_cast %3 : vector<1x1x17x128xbf16> to vector<1x17x128xbf16>
    %5 = tpu.concatenate %2, %4 in 0 : vector<8x17x128xbf16>, vector<1x17x128xbf16> -> vector<9x17x128xbf16>
    %6 = vector.extract_strided_slice %1 {offsets = [0, 0, 0], sizes = [9, 16, 128], strides = [1, 1, 1]} : vector<9x17x128xbf16> to vector<9x16x128xbf16>
    %7 = vector.shape_cast %6 : vector<9x16x128xbf16> to vector<144x128xbf16>
    %c0_7 = arith.constant 0 : index
    %c0_8 = arith.constant 0 : index
    %8 = vector.load %arg4[%c0_7, %c0_8] : memref<512x64xbf16, #tpu.memory_space<vmem>>, vector<128x64xbf16>
    %cst = arith.constant dense<0.000000e+00> : vector<144x64xf32>
    %9 = tpu.matmul %7, %8, %cst {dimension_numbers = #tpu.dot_dimension_numbers<[1], [0], [0], [1], [0, 0, 1, 1], [], []>} : vector<144x128xbf16>, vector<128x64xbf16>, vector<144x64xf32> -> vector<144x64xf32>
    %10 = vector.extract_strided_slice %1 {offsets = [0, 1, 0], sizes = [9, 16, 128], strides = [1, 1, 1]} : vector<9x17x128xbf16> to vector<9x16x128xbf16>
    %11 = vector.shape_cast %10 : vector<9x16x128xbf16> to vector<144x128xbf16>
    %c128 = arith.constant 128 : index
    %c0_9 = arith.constant 0 : index
    %12 = vector.load %arg4[%c128, %c0_9] : memref<512x64xbf16, #tpu.memory_space<vmem>>, vector<128x64xbf16>
    %cst_10 = arith.constant dense<0.000000e+00> : vector<144x64xf32>
    %13 = tpu.matmul %11, %12, %cst_10 {dimension_numbers = #tpu.dot_dimension_numbers<[1], [0], [0], [1], [0, 0, 1, 1], [], []>} : vector<144x128xbf16>, vector<128x64xbf16>, vector<144x64xf32> -> vector<144x64xf32>
    %14 = arith.addf %9, %13 : vector<144x64xf32>
    %15 = vector.extract_strided_slice %5 {offsets = [0, 0, 0], sizes = [9, 16, 128], strides = [1, 1, 1]} : vector<9x17x128xbf16> to vector<9x16x128xbf16>
    %16 = vector.shape_cast %15 : vector<9x16x128xbf16> to vector<144x128xbf16>
    %c256 = arith.constant 256 : index
    %c0_11 = arith.constant 0 : index
    %17 = vector.load %arg4[%c256, %c0_11] : memref<512x64xbf16, #tpu.memory_space<vmem>>, vector<128x64xbf16>
    %cst_12 = arith.constant dense<0.000000e+00> : vector<144x64xf32>
    %18 = tpu.matmul %16, %17, %cst_12 {dimension_numbers = #tpu.dot_dimension_numbers<[1], [0], [0], [1], [0, 0, 1, 1], [], []>} : vector<144x128xbf16>, vector<128x64xbf16>, vector<144x64xf32> -> vector<144x64xf32>
    %19 = arith.addf %14, %18 : vector<144x64xf32>
    %20 = vector.extract_strided_slice %5 {offsets = [0, 1, 0], sizes = [9, 16, 128], strides = [1, 1, 1]} : vector<9x17x128xbf16> to vector<9x16x128xbf16>
    %21 = vector.shape_cast %20 : vector<9x16x128xbf16> to vector<144x128xbf16>
    %c384 = arith.constant 384 : index
    %c0_13 = arith.constant 0 : index
    %22 = vector.load %arg4[%c384, %c0_13] : memref<512x64xbf16, #tpu.memory_space<vmem>>, vector<128x64xbf16>
    %cst_14 = arith.constant dense<0.000000e+00> : vector<144x64xf32>
    %23 = tpu.matmul %21, %22, %cst_14 {dimension_numbers = #tpu.dot_dimension_numbers<[1], [0], [0], [1], [0, 0, 1, 1], [], []>} : vector<144x128xbf16>, vector<128x64xbf16>, vector<144x64xf32> -> vector<144x64xf32>
    %24 = arith.addf %19, %23 : vector<144x64xf32>
    %c0_15 = arith.constant 0 : index
    %c0_16 = arith.constant 0 : index
    %25 = vector.load %arg5[%c0_15, %c0_16] : memref<1x64xf32, #tpu.memory_space<vmem>>, vector<1x64xf32>
    %26 = vector.broadcast %25 : vector<1x64xf32> to vector<144x64xf32>
    %27 = arith.addf %24, %26 : vector<144x64xf32>
    %cst_17 = arith.constant 0.000000e+00 : f32
    %28 = vector.broadcast %cst_17 : f32 to vector<144x64xf32>
    %29 = arith.cmpf ogt, %27, %28 : vector<144x64xf32>
    %cst_18 = arith.constant 2.000000e-01 : f32
    %30 = vector.broadcast %cst_18 : f32 to vector<144x64xf32>
    %31 = arith.mulf %30, %27 : vector<144x64xf32>
    %32 = arith.select %29, %27, %31 : vector<144x64xi1>, vector<144x64xf32>
    %33 = arith.truncf %32 : vector<144x64xf32> to vector<144x64xbf16>
    %c0_19 = arith.constant 0 : index
    %c0_20 = arith.constant 0 : index
    %c0_21 = arith.constant 0 : index
    %c0_22 = arith.constant 0 : index
    %34 = vector.load %arg6[%c0_19, %c0_20, %c0_21, %c0_22] : memref<1x1x144x64xbf16, #tpu.memory_space<vmem>>, vector<1x1x144x64xbf16>
    %35 = vector.shape_cast %34 : vector<1x1x144x64xbf16> to vector<144x64xbf16>
    %36 = vector.shape_cast %33 : vector<144x64xbf16> to vector<1x1x144x64xbf16>
    tpu.vector_store %arg6[%c0_19, %c0_20, %c0_21, %c0_22], %36 {strides = array<i32>} : memref<1x1x144x64xbf16, #tpu.memory_space<vmem>>, vector<1x1x144x64xbf16>,
    return
  }
  func.func @transform_0(%arg0: i32, %arg1: i32) -> (i32, i32, i32, i32) {
    %c0_i32 = arith.constant 0 : i32
    %c0_i32_0 = arith.constant 0 : i32
    %c0_i32_1 = arith.constant 0 : i32
    return %arg0, %arg1, %c0_i32, %c0_i32_0 : i32, i32, i32, i32
  }
  func.func @transform_1(%arg0: i32, %arg1: i32) -> (i32, i32, i32, i32) {
    %c1_i32 = arith.constant 1 : i32
    %0 = arith.addi %arg1, %c1_i32 : i32
    %c9_i32 = arith.constant 9 : i32
    %1 = arith.muli %0, %c9_i32 : i32
    %c0_i32 = arith.constant 0 : i32
    %c0_i32_0 = arith.constant 0 : i32
    %c0_i32_1 = arith.constant 0 : i32
    return %arg0, %1, %c0_i32, %c0_i32_0 : i32, i32, i32, i32
  }
  func.func @transform_2(%arg0: i32, %arg1: i32) -> (i32, i32) {
    %c0_i32 = arith.constant 0 : i32
    %c0_i32_0 = arith.constant 0 : i32
    %c0_i32_1 = arith.constant 0 : i32
    return %c0_i32, %c0_i32_0 : i32, i32
  }
  func.func @transform_3(%arg0: i32, %arg1: i32) -> (i32, i32) {
    %c0_i32 = arith.constant 0 : i32
    %c0_i32_0 = arith.constant 0 : i32
    %c0_i32_1 = arith.constant 0 : i32
    return %c0_i32, %c0_i32_0 : i32, i32
  }
  func.func @transform_4(%arg0: i32, %arg1: i32) -> (i32, i32, i32, i32) {
    %c0_i32 = arith.constant 0 : i32
    %c0_i32_0 = arith.constant 0 : i32
    %c0_i32_1 = arith.constant 0 : i32
    return %arg0, %arg1, %c0_i32, %c0_i32_0 : i32, i32, i32, i32
  }
}

module attributes {stable_mosaic.version = 11 : i64} {
  func.func @_conv4x4s2_lrelu_kernel(%arg0: i32, %arg1: i32, %arg2: memref<1x5x17x256xbf16, #tpu.memory_space<vmem>>, %arg3: memref<1x1x17x256xbf16, #tpu.memory_space<vmem>>, %arg4: memref<1024x128xbf16, #tpu.memory_space<vmem>>, %arg5: memref<1x128xf32, #tpu.memory_space<vmem>>, %arg6: memref<1x1x80x128xbf16, #tpu.memory_space<vmem>>) attributes {dimension_semantics = [#tpu.dimension_semantics<parallel>, #tpu.dimension_semantics<parallel>], iteration_bounds = array<i64: 2, 1>, scalar_prefetch = 0 : i64, scratch_operands = 0 : i64, tpu.core_type = #tpu.core_type<tc>, window_params = [{transform_indices = @transform_0, window_bounds = array<i64: 1, 5, 17, 256>}, {transform_indices = @transform_1, window_bounds = array<i64: 1, 1, 17, 256>}, {pipeline_mode = #tpu.pipeline_mode<synchronous>, transform_indices = @transform_2, window_bounds = array<i64: 1024, 128>}, {pipeline_mode = #tpu.pipeline_mode<synchronous>, transform_indices = @transform_3, window_bounds = array<i64: 1, 128>}, {transform_indices = @transform_4, window_bounds = array<i64: 1, 1, 80, 128>}]} {
    %c0 = arith.constant 0 : index
    %c0_0 = arith.constant 0 : index
    %c0_1 = arith.constant 0 : index
    %c0_2 = arith.constant 0 : index
    %0 = vector.load %arg2[%c0, %c0_0, %c0_1, %c0_2] : memref<1x5x17x256xbf16, #tpu.memory_space<vmem>>, vector<1x5x17x256xbf16>
    %1 = vector.shape_cast %0 : vector<1x5x17x256xbf16> to vector<5x17x256xbf16>
    %2 = vector.extract_strided_slice %1 {offsets = [1, 0, 0], sizes = [4, 17, 256], strides = [1, 1, 1]} : vector<5x17x256xbf16> to vector<4x17x256xbf16>
    %c0_3 = arith.constant 0 : index
    %c0_4 = arith.constant 0 : index
    %c0_5 = arith.constant 0 : index
    %c0_6 = arith.constant 0 : index
    %3 = vector.load %arg3[%c0_3, %c0_4, %c0_5, %c0_6] : memref<1x1x17x256xbf16, #tpu.memory_space<vmem>>, vector<1x1x17x256xbf16>
    %4 = vector.shape_cast %3 : vector<1x1x17x256xbf16> to vector<1x17x256xbf16>
    %5 = tpu.concatenate %2, %4 in 0 : vector<4x17x256xbf16>, vector<1x17x256xbf16> -> vector<5x17x256xbf16>
    %6 = vector.extract_strided_slice %1 {offsets = [0, 0, 0], sizes = [5, 16, 256], strides = [1, 1, 1]} : vector<5x17x256xbf16> to vector<5x16x256xbf16>
    %7 = vector.shape_cast %6 : vector<5x16x256xbf16> to vector<80x256xbf16>
    %c0_7 = arith.constant 0 : index
    %c0_8 = arith.constant 0 : index
    %8 = vector.load %arg4[%c0_7, %c0_8] : memref<1024x128xbf16, #tpu.memory_space<vmem>>, vector<256x128xbf16>
    %cst = arith.constant dense<0.000000e+00> : vector<80x128xf32>
    %9 = tpu.matmul %7, %8, %cst {dimension_numbers = #tpu.dot_dimension_numbers<[1], [0], [0], [1], [0, 0, 1, 1], [], []>} : vector<80x256xbf16>, vector<256x128xbf16>, vector<80x128xf32> -> vector<80x128xf32>
    %10 = vector.extract_strided_slice %1 {offsets = [0, 1, 0], sizes = [5, 16, 256], strides = [1, 1, 1]} : vector<5x17x256xbf16> to vector<5x16x256xbf16>
    %11 = vector.shape_cast %10 : vector<5x16x256xbf16> to vector<80x256xbf16>
    %c256 = arith.constant 256 : index
    %c0_9 = arith.constant 0 : index
    %12 = vector.load %arg4[%c256, %c0_9] : memref<1024x128xbf16, #tpu.memory_space<vmem>>, vector<256x128xbf16>
    %cst_10 = arith.constant dense<0.000000e+00> : vector<80x128xf32>
    %13 = tpu.matmul %11, %12, %cst_10 {dimension_numbers = #tpu.dot_dimension_numbers<[1], [0], [0], [1], [0, 0, 1, 1], [], []>} : vector<80x256xbf16>, vector<256x128xbf16>, vector<80x128xf32> -> vector<80x128xf32>
    %14 = arith.addf %9, %13 : vector<80x128xf32>
    %15 = vector.extract_strided_slice %5 {offsets = [0, 0, 0], sizes = [5, 16, 256], strides = [1, 1, 1]} : vector<5x17x256xbf16> to vector<5x16x256xbf16>
    %16 = vector.shape_cast %15 : vector<5x16x256xbf16> to vector<80x256xbf16>
    %c512 = arith.constant 512 : index
    %c0_11 = arith.constant 0 : index
    %17 = vector.load %arg4[%c512, %c0_11] : memref<1024x128xbf16, #tpu.memory_space<vmem>>, vector<256x128xbf16>
    %cst_12 = arith.constant dense<0.000000e+00> : vector<80x128xf32>
    %18 = tpu.matmul %16, %17, %cst_12 {dimension_numbers = #tpu.dot_dimension_numbers<[1], [0], [0], [1], [0, 0, 1, 1], [], []>} : vector<80x256xbf16>, vector<256x128xbf16>, vector<80x128xf32> -> vector<80x128xf32>
    %19 = arith.addf %14, %18 : vector<80x128xf32>
    %20 = vector.extract_strided_slice %5 {offsets = [0, 1, 0], sizes = [5, 16, 256], strides = [1, 1, 1]} : vector<5x17x256xbf16> to vector<5x16x256xbf16>
    %21 = vector.shape_cast %20 : vector<5x16x256xbf16> to vector<80x256xbf16>
    %c768 = arith.constant 768 : index
    %c0_13 = arith.constant 0 : index
    %22 = vector.load %arg4[%c768, %c0_13] : memref<1024x128xbf16, #tpu.memory_space<vmem>>, vector<256x128xbf16>
    %cst_14 = arith.constant dense<0.000000e+00> : vector<80x128xf32>
    %23 = tpu.matmul %21, %22, %cst_14 {dimension_numbers = #tpu.dot_dimension_numbers<[1], [0], [0], [1], [0, 0, 1, 1], [], []>} : vector<80x256xbf16>, vector<256x128xbf16>, vector<80x128xf32> -> vector<80x128xf32>
    %24 = arith.addf %19, %23 : vector<80x128xf32>
    %c0_15 = arith.constant 0 : index
    %c0_16 = arith.constant 0 : index
    %25 = vector.load %arg5[%c0_15, %c0_16] : memref<1x128xf32, #tpu.memory_space<vmem>>, vector<1x128xf32>
    %26 = vector.broadcast %25 : vector<1x128xf32> to vector<80x128xf32>
    %27 = arith.addf %24, %26 : vector<80x128xf32>
    %cst_17 = arith.constant 0.000000e+00 : f32
    %28 = vector.broadcast %cst_17 : f32 to vector<80x128xf32>
    %29 = arith.cmpf ogt, %27, %28 : vector<80x128xf32>
    %cst_18 = arith.constant 2.000000e-01 : f32
    %30 = vector.broadcast %cst_18 : f32 to vector<80x128xf32>
    %31 = arith.mulf %30, %27 : vector<80x128xf32>
    %32 = arith.select %29, %27, %31 : vector<80x128xi1>, vector<80x128xf32>
    %33 = arith.truncf %32 : vector<80x128xf32> to vector<80x128xbf16>
    %c0_19 = arith.constant 0 : index
    %c0_20 = arith.constant 0 : index
    %c0_21 = arith.constant 0 : index
    %c0_22 = arith.constant 0 : index
    %34 = vector.load %arg6[%c0_19, %c0_20, %c0_21, %c0_22] : memref<1x1x80x128xbf16, #tpu.memory_space<vmem>>, vector<1x1x80x128xbf16>
    %35 = vector.shape_cast %34 : vector<1x1x80x128xbf16> to vector<80x128xbf16>
    %36 = vector.shape_cast %33 : vector<80x128xbf16> to vector<1x1x80x128xbf16>
    tpu.vector_store %arg6[%c0_19, %c0_20, %c0_21, %c0_22], %36 {strides = array<i32>} : memref<1x1x80x128xbf16, #tpu.memory_space<vmem>>, vector<1x1x80x128xbf16>,
    return
  }
  func.func @transform_0(%arg0: i32, %arg1: i32) -> (i32, i32, i32, i32) {
    %c0_i32 = arith.constant 0 : i32
    %c0_i32_0 = arith.constant 0 : i32
    %c0_i32_1 = arith.constant 0 : i32
    return %arg0, %arg1, %c0_i32, %c0_i32_0 : i32, i32, i32, i32
  }
  func.func @transform_1(%arg0: i32, %arg1: i32) -> (i32, i32, i32, i32) {
    %c1_i32 = arith.constant 1 : i32
    %0 = arith.addi %arg1, %c1_i32 : i32
    %c5_i32 = arith.constant 5 : i32
    %1 = arith.muli %0, %c5_i32 : i32
    %c0_i32 = arith.constant 0 : i32
    %c0_i32_0 = arith.constant 0 : i32
    %c0_i32_1 = arith.constant 0 : i32
    return %arg0, %1, %c0_i32, %c0_i32_0 : i32, i32, i32, i32
  }
  func.func @transform_2(%arg0: i32, %arg1: i32) -> (i32, i32) {
    %c0_i32 = arith.constant 0 : i32
    %c0_i32_0 = arith.constant 0 : i32
    %c0_i32_1 = arith.constant 0 : i32
    return %c0_i32, %c0_i32_0 : i32, i32
  }
  func.func @transform_3(%arg0: i32, %arg1: i32) -> (i32, i32) {
    %c0_i32 = arith.constant 0 : i32
    %c0_i32_0 = arith.constant 0 : i32
    %c0_i32_1 = arith.constant 0 : i32
    return %c0_i32, %c0_i32_0 : i32, i32
  }
  func.func @transform_4(%arg0: i32, %arg1: i32) -> (i32, i32, i32, i32) {
    %c0_i32 = arith.constant 0 : i32
    %c0_i32_0 = arith.constant 0 : i32
    %c0_i32_1 = arith.constant 0 : i32
    return %arg0, %arg1, %c0_i32, %c0_i32_0 : i32, i32, i32, i32
  }
}

module attributes {stable_mosaic.version = 11 : i64} {
  func.func @_conv4x4s2_lrelu_final_kernel(%arg0: i32, %arg1: i32, %arg2: memref<1x3x17x512xbf16, #tpu.memory_space<vmem>>, %arg3: memref<1x1x17x512xbf16, #tpu.memory_space<vmem>>, %arg4: memref<2048x256xbf16, #tpu.memory_space<vmem>>, %arg5: memref<1x256xf32, #tpu.memory_space<vmem>>, %arg6: memref<1x256xf32, #tpu.memory_space<vmem>>, %arg7: memref<1x1xf32, #tpu.memory_space<vmem>>, %arg8: memref<1x1x48x1xf32, #tpu.memory_space<vmem>>) attributes {dimension_semantics = [#tpu.dimension_semantics<parallel>, #tpu.dimension_semantics<parallel>], iteration_bounds = array<i64: 2, 1>, scalar_prefetch = 0 : i64, scratch_operands = 0 : i64, tpu.core_type = #tpu.core_type<tc>, window_params = [{transform_indices = @transform_0, window_bounds = array<i64: 1, 3, 17, 512>}, {transform_indices = @transform_1, window_bounds = array<i64: 1, 1, 17, 512>}, {pipeline_mode = #tpu.pipeline_mode<synchronous>, transform_indices = @transform_2, window_bounds = array<i64: 2048, 256>}, {pipeline_mode = #tpu.pipeline_mode<synchronous>, transform_indices = @transform_3, window_bounds = array<i64: 1, 256>}, {pipeline_mode = #tpu.pipeline_mode<synchronous>, transform_indices = @transform_4, window_bounds = array<i64: 1, 256>}, {pipeline_mode = #tpu.pipeline_mode<synchronous>, transform_indices = @transform_5, window_bounds = array<i64: 1, 1>}, {transform_indices = @transform_6, window_bounds = array<i64: 1, 1, 48, 1>}]} {
    %c0 = arith.constant 0 : index
    %c0_0 = arith.constant 0 : index
    %c0_1 = arith.constant 0 : index
    %c0_2 = arith.constant 0 : index
    %0 = vector.load %arg2[%c0, %c0_0, %c0_1, %c0_2] : memref<1x3x17x512xbf16, #tpu.memory_space<vmem>>, vector<1x3x17x512xbf16>
    %1 = vector.shape_cast %0 : vector<1x3x17x512xbf16> to vector<3x17x512xbf16>
    %2 = vector.extract_strided_slice %1 {offsets = [1, 0, 0], sizes = [2, 17, 512], strides = [1, 1, 1]} : vector<3x17x512xbf16> to vector<2x17x512xbf16>
    %c0_3 = arith.constant 0 : index
    %c0_4 = arith.constant 0 : index
    %c0_5 = arith.constant 0 : index
    %c0_6 = arith.constant 0 : index
    %3 = vector.load %arg3[%c0_3, %c0_4, %c0_5, %c0_6] : memref<1x1x17x512xbf16, #tpu.memory_space<vmem>>, vector<1x1x17x512xbf16>
    %4 = vector.shape_cast %3 : vector<1x1x17x512xbf16> to vector<1x17x512xbf16>
    %5 = tpu.concatenate %2, %4 in 0 : vector<2x17x512xbf16>, vector<1x17x512xbf16> -> vector<3x17x512xbf16>
    %6 = vector.extract_strided_slice %1 {offsets = [0, 0, 0], sizes = [3, 16, 512], strides = [1, 1, 1]} : vector<3x17x512xbf16> to vector<3x16x512xbf16>
    %7 = vector.shape_cast %6 : vector<3x16x512xbf16> to vector<48x512xbf16>
    %c0_7 = arith.constant 0 : index
    %c0_8 = arith.constant 0 : index
    %8 = vector.load %arg4[%c0_7, %c0_8] : memref<2048x256xbf16, #tpu.memory_space<vmem>>, vector<512x256xbf16>
    %cst = arith.constant dense<0.000000e+00> : vector<48x256xf32>
    %9 = tpu.matmul %7, %8, %cst {dimension_numbers = #tpu.dot_dimension_numbers<[1], [0], [0], [1], [0, 0, 1, 1], [], []>} : vector<48x512xbf16>, vector<512x256xbf16>, vector<48x256xf32> -> vector<48x256xf32>
    %10 = vector.extract_strided_slice %1 {offsets = [0, 1, 0], sizes = [3, 16, 512], strides = [1, 1, 1]} : vector<3x17x512xbf16> to vector<3x16x512xbf16>
    %11 = vector.shape_cast %10 : vector<3x16x512xbf16> to vector<48x512xbf16>
    %c512 = arith.constant 512 : index
    %c0_9 = arith.constant 0 : index
    %12 = vector.load %arg4[%c512, %c0_9] : memref<2048x256xbf16, #tpu.memory_space<vmem>>, vector<512x256xbf16>
    %cst_10 = arith.constant dense<0.000000e+00> : vector<48x256xf32>
    %13 = tpu.matmul %11, %12, %cst_10 {dimension_numbers = #tpu.dot_dimension_numbers<[1], [0], [0], [1], [0, 0, 1, 1], [], []>} : vector<48x512xbf16>, vector<512x256xbf16>, vector<48x256xf32> -> vector<48x256xf32>
    %14 = arith.addf %9, %13 : vector<48x256xf32>
    %15 = vector.extract_strided_slice %5 {offsets = [0, 0, 0], sizes = [3, 16, 512], strides = [1, 1, 1]} : vector<3x17x512xbf16> to vector<3x16x512xbf16>
    %16 = vector.shape_cast %15 : vector<3x16x512xbf16> to vector<48x512xbf16>
    %c1024 = arith.constant 1024 : index
    %c0_11 = arith.constant 0 : index
    %17 = vector.load %arg4[%c1024, %c0_11] : memref<2048x256xbf16, #tpu.memory_space<vmem>>, vector<512x256xbf16>
    %cst_12 = arith.constant dense<0.000000e+00> : vector<48x256xf32>
    %18 = tpu.matmul %16, %17, %cst_12 {dimension_numbers = #tpu.dot_dimension_numbers<[1], [0], [0], [1], [0, 0, 1, 1], [], []>} : vector<48x512xbf16>, vector<512x256xbf16>, vector<48x256xf32> -> vector<48x256xf32>
    %19 = arith.addf %14, %18 : vector<48x256xf32>
    %20 = vector.extract_strided_slice %5 {offsets = [0, 1, 0], sizes = [3, 16, 512], strides = [1, 1, 1]} : vector<3x17x512xbf16> to vector<3x16x512xbf16>
    %21 = vector.shape_cast %20 : vector<3x16x512xbf16> to vector<48x512xbf16>
    %c1536 = arith.constant 1536 : index
    %c0_13 = arith.constant 0 : index
    %22 = vector.load %arg4[%c1536, %c0_13] : memref<2048x256xbf16, #tpu.memory_space<vmem>>, vector<512x256xbf16>
    %cst_14 = arith.constant dense<0.000000e+00> : vector<48x256xf32>
    %23 = tpu.matmul %21, %22, %cst_14 {dimension_numbers = #tpu.dot_dimension_numbers<[1], [0], [0], [1], [0, 0, 1, 1], [], []>} : vector<48x512xbf16>, vector<512x256xbf16>, vector<48x256xf32> -> vector<48x256xf32>
    %24 = arith.addf %19, %23 : vector<48x256xf32>
    %c0_15 = arith.constant 0 : index
    %c0_16 = arith.constant 0 : index
    %25 = vector.load %arg5[%c0_15, %c0_16] : memref<1x256xf32, #tpu.memory_space<vmem>>, vector<1x256xf32>
    %26 = vector.broadcast %25 : vector<1x256xf32> to vector<48x256xf32>
    %27 = arith.addf %24, %26 : vector<48x256xf32>
    %cst_17 = arith.constant 0.000000e+00 : f32
    %28 = vector.broadcast %cst_17 : f32 to vector<48x256xf32>
    %29 = arith.cmpf ogt, %27, %28 : vector<48x256xf32>
    %cst_18 = arith.constant 2.000000e-01 : f32
    %30 = vector.broadcast %cst_18 : f32 to vector<48x256xf32>
    %31 = arith.mulf %30, %27 : vector<48x256xf32>
    %32 = arith.select %29, %27, %31 : vector<48x256xi1>, vector<48x256xf32>
    %33 = arith.truncf %32 : vector<48x256xf32> to vector<48x256xbf16>
    %34 = arith.extf %33 : vector<48x256xbf16> to vector<48x256xf32>
    %c0_19 = arith.constant 0 : index
    %c0_20 = arith.constant 0 : index
    %35 = vector.load %arg6[%c0_19, %c0_20] : memref<1x256xf32, #tpu.memory_space<vmem>>, vector<1x256xf32>
    %36 = vector.broadcast %35 : vector<1x256xf32> to vector<48x256xf32>
    %37 = arith.mulf %34, %36 : vector<48x256xf32>
    %cst_21 = arith.constant dense<0.000000e+00> : vector<48xf32>
    %38 = vector.multi_reduction <add>, %37, %cst_21 [1] : vector<48x256xf32> to vector<48xf32>
    %39 = vector.shape_cast %38 : vector<48xf32> to vector<48x1xf32>
    %c0_22 = arith.constant 0 : index
    %c0_23 = arith.constant 0 : index
    %40 = vector.load %arg7[%c0_22, %c0_23] : memref<1x1xf32, #tpu.memory_space<vmem>>, vector<1x1xf32>
    %41 = vector.broadcast %40 : vector<1x1xf32> to vector<48x1xf32>
    %42 = arith.addf %39, %41 : vector<48x1xf32>
    %c0_24 = arith.constant 0 : index
    %c0_25 = arith.constant 0 : index
    %c0_26 = arith.constant 0 : index
    %c0_27 = arith.constant 0 : index
    %43 = vector.load %arg8[%c0_24, %c0_25, %c0_26, %c0_27] : memref<1x1x48x1xf32, #tpu.memory_space<vmem>>, vector<1x1x48x1xf32>
    %44 = vector.shape_cast %43 : vector<1x1x48x1xf32> to vector<48x1xf32>
    %45 = vector.shape_cast %42 : vector<48x1xf32> to vector<1x1x48x1xf32>
    tpu.vector_store %arg8[%c0_24, %c0_25, %c0_26, %c0_27], %45 {strides = array<i32>} : memref<1x1x48x1xf32, #tpu.memory_space<vmem>>, vector<1x1x48x1xf32>,
    return
  }
  func.func @transform_0(%arg0: i32, %arg1: i32) -> (i32, i32, i32, i32) {
    %c0_i32 = arith.constant 0 : i32
    %c0_i32_0 = arith.constant 0 : i32
    %c0_i32_1 = arith.constant 0 : i32
    return %arg0, %arg1, %c0_i32, %c0_i32_0 : i32, i32, i32, i32
  }
  func.func @transform_1(%arg0: i32, %arg1: i32) -> (i32, i32, i32, i32) {
    %c1_i32 = arith.constant 1 : i32
    %0 = arith.addi %arg1, %c1_i32 : i32
    %c3_i32 = arith.constant 3 : i32
    %1 = arith.muli %0, %c3_i32 : i32
    %c0_i32 = arith.constant 0 : i32
    %c0_i32_0 = arith.constant 0 : i32
    %c0_i32_1 = arith.constant 0 : i32
    return %arg0, %1, %c0_i32, %c0_i32_0 : i32, i32, i32, i32
  }
  func.func @transform_2(%arg0: i32, %arg1: i32) -> (i32, i32) {
    %c0_i32 = arith.constant 0 : i32
    %c0_i32_0 = arith.constant 0 : i32
    %c0_i32_1 = arith.constant 0 : i32
    return %c0_i32, %c0_i32_0 : i32, i32
  }
  func.func @transform_3(%arg0: i32, %arg1: i32) -> (i32, i32) {
    %c0_i32 = arith.constant 0 : i32
    %c0_i32_0 = arith.constant 0 : i32
    %c0_i32_1 = arith.constant 0 : i32
    return %c0_i32, %c0_i32_0 : i32, i32
  }
  func.func @transform_4(%arg0: i32, %arg1: i32) -> (i32, i32) {
    %c0_i32 = arith.constant 0 : i32
    %c0_i32_0 = arith.constant 0 : i32
    %c0_i32_1 = arith.constant 0 : i32
    return %c0_i32, %c0_i32_0 : i32, i32
  }
  func.func @transform_5(%arg0: i32, %arg1: i32) -> (i32, i32) {
    %c0_i32 = arith.constant 0 : i32
    %c0_i32_0 = arith.constant 0 : i32
    %c0_i32_1 = arith.constant 0 : i32
    return %c0_i32, %c0_i32_0 : i32, i32
  }
  func.func @transform_6(%arg0: i32, %arg1: i32) -> (i32, i32, i32, i32) {
    %c0_i32 = arith.constant 0 : i32
    %c0_i32_0 = arith.constant 0 : i32
    %c0_i32_1 = arith.constant 0 : i32
    return %arg0, %arg1, %c0_i32, %c0_i32_0 : i32, i32, i32, i32
  }
}

</mosaic_0001>

<bundles_post_ra>
// kernel: dis_forward.3
= control target key start
LH: loop header
LB: loop body
LE: loop exit
PB: predicated region body
PF: predicated region fallthrough
CT: control target
= control target key end

     0   :  { %s1719_s15 = smov 0   ;;  %s1721_s16 = smov 0   ;;  %s2010_s0 = inlined_call_operand.vmem [shape: bf16[2,10,17,128], index: 0, kind: input, shape index: {}, may-alias: {0,1}]   ;;  %s2011_s1 = inlined_call_operand.vmem [shape: bf16[2,10,17,128], index: 1, kind: input, shape index: {}, may-alias: {0,1}]   ;;  %s2012_s2 = inlined_call_operand.vmem [shape: bf16[512,64], index: 2, kind: input, shape index: {}]   ;;  %s2013_s3 = inlined_call_operand.vmem [shape: f32[1,64], index: 3, kind: input, shape index: {}]   ;;  %s2014_s4 = inlined_call_operand.vmem [shape: bf16[2,1,144,64], index: 4, kind: output, shape index: {}]  }
   0x1   :  { %s1723_s17 = smov 0  }
   0x2 LB: > { %s26_s18 = sadd.s32 1, %s1688_s16  ;;  %p1423_p0 = scmp.ge.s32.totalorder %s1692_s17, 1  ;;  %s1692_s17 = sphi %s1723_s17, %s14_s17   ;;  %s1688_s16 = sphi %s1721_s16, %s2018_s16   ;;  %s1684_s15 = sphi %s1719_s15, %s2017_s15  }
   0x3   : > { %p28_p1 = scmp.ge.s32.totalorder %s26_s18, 2  ;;  %p218_p2 = scmp.lt.s32.totalorder %s1692_s17, 3 }
   0x5   : > { %s2020_s18 = smov (%p28_p1, %s26_s18), 0  ;;  %p219_p3 = pnand %p1423_p0, %p218_p2 }
   0x6   : > { %p275_p4 = scmp.lt.s32.totalorder (!%p219_p3), %s1684_s15, 1 }
   0x7   : > { %222 = sbr.rel (%p219_p3) target bundleno = 326 (0x146), region = 36 }
   0xc   : > { %v1624_v0 = vld [vmem:[%s2012_s2 + $0x78] sm:$0xff]  ;;  %v1623_v4 = vld [vmem:[%s2012_s2 + $0x70] sm:$0xff]  ;;  %s2022_s15 = smov (!%p275_p4, %s1684_s15), 1  ;;  %v1622_v8 = vld [vmem:[%s2012_s2 + $0x68] sm:$0xff]  ;;  %vm358_vm0 = vsmask.f32 3328 }
   0xd   : > { %v1616_v1 = vld [vmem:[%s2012_s2 + $0x38] sm:$0xff]  ;;  %677 = vmatpush.bf16.msra.mxu0 %v1624_v0  ;;  %v1615_v5 = vld [vmem:[%s2012_s2 + $0x30] sm:$0xff]  ;;  %s1641_s9 = smul.u32 120, %s2022_s15  ;;  %v1614_v9 = vld [vmem:[%s2012_s2 + $0x28] sm:$0xff]  ;;  %vm359_vm1 = vsmask.f32 7440 }
   0xe   : > { %v1632_v2 = vld [vmem:[%s2012_s2 + $0xb8] sm:$0xff]  ;;  %833 = vmatpush.bf16.msra.mxu1 %v1616_v1  ;;  %v1631_v6 = vld [vmem:[%s2012_s2 + $0xb0] sm:$0xff]  ;;  %v1630_v10 = vld [vmem:[%s2012_s2 + $0xa8] sm:$0xff]  ;;  %s1643_s29 = smul.u32 72, %s2022_s15  ;;  %vm1287_vm4 = vcmask 519168  }
   0xf   : > { %v1640_v3 = vld [vmem:[%s2012_s2 + $0xf8] sm:$0xff]  ;;  %957 = vmatpush.bf16.msra.mxu2 %v1632_v2  ;;  %v1639_v7 = vld [vmem:[%s2012_s2 + $0xf0] sm:$0xff]  ;;  %v1638_v11 = vld [vmem:[%s2012_s2 + $0xe8] sm:$0xff]  ;;  %s1781_s24 = scalar_lea.vmem %s2010_s0, %s1641_s9  ;;  %s1598_s25 = sadd.s32 108, %s1641_s9 }
  0x10   : > { %1121 = vmatpush.bf16.msra.mxu3 %v1640_v3  ;;  %v1621_v12 = vld [vmem:[%s2012_s2 + $0x60] sm:$0xff]  ;;  %v314_v18 = vld [vmem:[%s1781_s24 + $0x8] sm:$0x1]  ;;  %v1620_v21 = vld [vmem:[%s2012_s2 + $0x58] sm:$0xff]  ;;  %s1921_s28 = scalar_lea.vmem %s2011_s1, %s1598_s25  ;;  %s1946_s6 = scalar_lea.vmem %s2014_s4, %s1643_s29 }
  0x11   : > { %678 = vmatpush.bf16.msra.mxu0 %v1623_v4  ;;  %v1613_v13 = vld [vmem:[%s2012_s2 + $0x20] sm:$0xff]  ;;  %v1612_v22 = vld [vmem:[%s2012_s2 + $0x18] sm:$0xff]  ;;  %v315_v27 = vld [vmem:[%s1781_s24 + $0xc] sm:$0xf]  ;;  %v381_v31 = vshll.u32 %v314_v18, 16 }
  0x12   : > { %834 = vmatpush.bf16.msra.mxu1 %v1615_v5  ;;  %v1629_v14 = vld [vmem:[%s2012_s2 + $0xa0] sm:$0xff]  ;;  %v316_v28 = vld [vmem:[%s1781_s24 + $0x10] sm:$0xf]  ;;  %v317_v32 = vld [vmem:[%s1781_s24 + $0x14] sm:$0x1]  ;;  %v386_v33 = vshrl.u32 %v315_v27, 16 }
  0x13   : > { %958 = vmatpush.bf16.msra.mxu2 %v1631_v6  ;;  %v1637_v15 = vld [vmem:[%s2012_s2 + $0xe0] sm:$0xff]  ;;  %v1628_v34 = vld [vmem:[%s2012_s2 + $0x98] sm:$0xff]  ;;  %v389_v37 = vshll.u32 %v315_v27, 16  ;;  %v395_v38 = vshll.u32 %v316_v28, 16  ;;  %v399_v39 = vshrl.u32 %v316_v28, 16  ;;  %v405_v42 = vshll.u32 %v317_v32, 16  ;;  %vm1827_vm2 = vmor %vm358_vm0, %vm359_vm1 }
  0x14   : > { %1122 = vmatpush.bf16.msra.mxu3 %v1639_v7  ;;  %v312_v16 = vld [vmem:[%s1781_s24] sm:$0xf]  ;;  %v313_v17 = vld [vmem:[%s1781_s24 + $0x4] sm:$0xf]  ;;  %v1636_v35 = vld [vmem:[%s2012_s2 + $0xd8] sm:$0xff]  ;;  %v388_v41 = vrot.slane %v386_v33, 4 }
  0x15   : > { %679 = vmatpush.bf16.msra.mxu0 %v1622_v8  ;;  %v362_v19 = vshrl.u32 %v312_v16, 16  ;;  %v365_v20 = vshll.u32 %v312_v16, 16  ;;  %v371_v23 = vshll.u32 %v313_v17, 16  ;;  %v375_v24 = vshrl.u32 %v313_v17, 16  ;;  %v1619_v43 = vld [vmem:[%s2012_s2 + $0x50] sm:$0xff]  ;;  %v1618_v61 = vld [vmem:[%s2012_s2 + $0x48] sm:$0xff] }
  0x16   : > { %835 = vmatpush.bf16.msra.mxu1 %v1614_v9  ;;  %v391_v44 = vrot.slane %v389_v37, 5  ;;  %v397_v45 = vrot.slane %v395_v38, 5  ;;  %v401_v46 = vrot.slane %v399_v39, 4  ;;  %v1611_v47 = vld [vmem:[%s2012_s2 + $0x10] sm:$0xff]  ;;  %v383_v52 = vrot.slane %v381_v31, 5  ;;  %v1610_v62 = vld [vmem:[%s2012_s2 + $0x8] sm:$0xff] }
  0x17   : > { %959 = vmatpush.bf16.msra.mxu2 %v1630_v10  ;;  %v364_v25 = vrot.slane %v362_v19, 4  ;;  %v367_v26 = vrot.slane %v365_v20, 5  ;;  %v373_v29 = vrot.slane %v371_v23, 5  ;;  %v377_v30 = vrot.slane %v375_v24, 4  ;;  %v1627_v48 = vld [vmem:[%s2012_s2 + $0x90] sm:$0xff]  ;;  %v1626_v3 = vld [vmem:[%s2012_s2 + $0x88] sm:$0xff] }
  0x18   : > { %1123 = vmatpush.bf16.msra.mxu3 %v1638_v11  ;;  %v1635_v49 = vld [vmem:[%s2012_s2 + $0xd0] sm:$0xff]  ;;  %v392_v54 = vor.u32 %v391_v44, %v388_v41  ;;  %v402_v55 = vor.u32 %v401_v46, %v397_v45  ;;  %v407_v56 = vrot.slane %v405_v42, 5  ;;  %v318_v57 = vld [vmem:[%s1781_s24 + $0x18] sm:$0xf]  ;;  %v319_v58 = vld [vmem:[%s1781_s24 + $0x1c] sm:$0xf] }
  0x19   : > { %680 = vmatpush.bf16.msra.mxu0 %v1621_v12  ;;  %v368_v36 = vor.u32 %v367_v26, %v364_v25  ;;  %v378_v40 = vor.u32 %v377_v30, %v373_v29  ;;  %v410_v1 = vshrl.u32 %v318_v57, 16  ;;  %v413_v2 = vshll.u32 %v318_v57, 16  ;;  %v1634_v4 = vld [vmem:[%s2012_s2 + $0xc8] sm:$0xff]  ;;  %v1617_v11 = vld [vmem:[%s2012_s2 + $0x40] sm:$0xff] }
  0x1a   : > { %836 = vmatpush.bf16.msra.mxu1 %v1613_v13  ;;  %v393_v59 = vrot.slane %v392_v54, 4  ;;  %v403_v60 = vrot.slane %v402_v55, 4  ;;  %v419_v7 = vshll.u32 %v319_v58, 16  ;;  %v423_v8 = vshrl.u32 %v319_v58, 16  ;;  %v1609_v12 = vld [vmem:[%s2012_s2] sm:$0xff]  ;;  %v1600_v24 = vld [vmem:[%s1781_s24 + $0xc] sm:$0xff] }
  0x1b   : > { %960 = vmatpush.bf16.msra.mxu2 %v1629_v14  ;;  %v369_v50 = vrot.slane %v368_v36, 4  ;;  %v379_v51 = vrot.slane %v378_v40, 4  ;;  %v1633_v16 = vld [vmem:[%s2012_s2 + $0xc0] sm:$0xff]  ;;  %v412_v17 = vrot.slane %v410_v1, 4  ;;  %v415_v18 = vrot.slane %v413_v2, 5 }
  0x1c   : > { %1124 = vmatpush.bf16.msra.mxu3 %v1637_v15  ;;  %v398_v5 = vsel %vm1827_vm2, %v393_v59, %v397_v45  ;;  %v408_v6 = vsel %vm1827_vm2, %v403_v60, %v407_v56  ;;  %v1625_v15 = vld [vmem:[%s2012_s2 + $0x80] sm:$0xff]  ;;  %v421_v19 = vrot.slane %v419_v7, 5  ;;  %v425_v20 = vrot.slane %v423_v8, 4  ;;  %v322_v33 = vld [vmem:[%s1781_s24 + $0x28] sm:$0xf] }
  0x1d   : > { %681 = vmatpush.bf16.msra.mxu0 %v1620_v21  ;;  %v374_v63 = vsel %vm1827_vm2, %v369_v50, %v373_v29  ;;  %v384_v0 = vsel %vm1827_vm2, %v379_v51, %v383_v52  ;;  %v595_v13 = vunpack.c.l.b16 %v398_v5  ;;  %v596_v14 = vunpack.c.l.b16 %v408_v6  ;;  %v320_v21 = vld [vmem:[%s1781_s24 + $0x20] sm:$0x1]  ;;  %v321_v32 = vld [vmem:[%s1781_s24 + $0x24] sm:$0xf]  ;;  %v323_v46 = vld [vmem:[%s1781_s24 + $0x2c] sm:$0x1] }
  0x1e   : > { %837 = vmatpush.bf16.msra.mxu1 %v1612_v22  ;;  %v593_v9 = vunpack.c.l.b16 %v374_v63  ;;  %v594_v10 = vunpack.c.l.b16 %v384_v0  ;;  %v1599_v23 = vld [vmem:[%s1781_s24] sm:$0xff]  ;;  %v416_v26 = vor.u32 %v415_v18, %v412_v17  ;;  %v426_v27 = vor.u32 %v425_v20, %v421_v19  ;;  %v324_v52 = vld [vmem:[%s1781_s24 + $0x30] sm:$0xf]  ;;  %v325_v54 = vld [vmem:[%s1781_s24 + $0x34] sm:$0xf] }
  0x1f   : > { %961 = vmatpush.bf16.msra.mxu2 %v1628_v34  ;;  %v612_v25 = vpack.c.b16 %v596_v14, %v595_v13  ;;  %v429_v28 = vshll.u32 %v320_v21, 16  ;;  %v434_v34 = vshrl.u32 %v321_v32, 16  ;;  %v443_v38 = vshll.u32 %v322_v33, 16  ;;  %v326_v6 = vld [vmem:[%s1781_s24 + $0x38] sm:$0x1] }
  0x20   : > { %1125 = vmatpush.bf16.msra.mxu3 %v1636_v35  ;;  %v611_v22 = vpack.c.b16 %v594_v10, %v593_v9  ;;  %v417_v29 = vrot.slane %v416_v26, 4  ;;  %v427_v30 = vrot.slane %v426_v27, 4  ;;  %v437_v35 = vshll.u32 %v321_v32, 16  ;;  %v1602_v10 = vld [vmem:[%s1781_s24 + $0x24] sm:$0xff]  ;;  %v1939_v53 = vld [vmem:[%s2013_s3] ss:$0 sm:$0xff] }
  0x21   : > { %682 = vmatpush.bf16.msra.mxu0 %v1619_v43  ;;  %v431_v31 = vrot.slane %v429_v28, 5  ;;  %v447_v39 = vshrl.u32 %v322_v33, 16  ;;  %v436_v42 = vrot.slane %v434_v34, 4  ;;  %v445_v44 = vrot.slane %v443_v38, 5  ;;  %v330_v38 = vld [vmem:[%s1781_s24 + $0x48] sm:$0xf] }
  0x22   : > { %838 = vmatpush.bf16.msra.mxu1 %v1611_v47  ;;  %v422_v36 = vsel %vm1827_vm2, %v417_v29, %v421_v19  ;;  %v439_v43 = vrot.slane %v437_v35, 5  ;;  %v1601_v47 = vld [vmem:[%s1781_s24 + $0x18] sm:$0xff]  ;;  %v453_v51 = vshll.u32 %v323_v46, 16  ;;  %v458_v58 = vshrl.u32 %v324_v52, 16  ;;  %v329_v29 = vld [vmem:[%s1781_s24 + $0x44] sm:$0x1] }
  0x23   : > { %962 = vmatpush.bf16.msra.mxu2 %v1627_v48  ;;  %v432_v37 = vsel %vm1827_vm2, %v427_v30, %v431_v31  ;;  %v597_v40 = vunpack.c.l.b16 %v422_v36  ;;  %v449_v45 = vrot.slane %v447_v39, 4  ;;  %v461_v59 = vshll.u32 %v324_v52, 16  ;;  %v1603_v30 = vld [vmem:[%s1781_s24 + $0x30] sm:$0xff]  ;;  %v331_v39 = vld [vmem:[%s1781_s24 + $0x4c] sm:$0xf] }
  0x24   : > { %1126 = vmatpush.bf16.msra.mxu3 %v1635_v49  ;;  %v598_v41 = vunpack.c.l.b16 %v432_v37  ;;  %v440_v49 = vor.u32 %v439_v43, %v436_v42  ;;  %v455_v57 = vrot.slane %v453_v51, 5  ;;  %v467_v60 = vshll.u32 %v325_v54, 16  ;;  %v332_v52 = vld [vmem:[%s1781_s24 + $0x50] sm:$0x1] }
  0x25   : > { %683 = vmatpush.bf16.msra.mxu0 %v1618_v61  ;;  %v450_v50 = vor.u32 %v449_v45, %v445_v44  ;;  %v471_v61 = vshrl.u32 %v325_v54, 16  ;;  %v460_v0 = vrot.slane %v458_v58, 4  ;;  %v463_v1 = vrot.slane %v461_v59, 5  ;;  %v1604_v54 = vld [vmem:[%s1781_s24 + $0x3c] sm:$0xff]  ;;  %v333_v59 = vld [vmem:[%s1781_s24 + $0x54] sm:$0xf] }
  0x26   : > { %839 = vmatpush.bf16.msra.mxu1 %v1610_v62  ;;  %v613_v48 = vpack.c.b16 %v598_v41, %v597_v40  ;;  %v441_v55 = vrot.slane %v440_v49, 4  ;;  %v469_v2 = vrot.slane %v467_v60, 5  ;;  %v477_v9 = vshll.u32 %v326_v6, 16  ;;  %v334_v60 = vld [vmem:[%s1781_s24 + $0x58] sm:$0xf] }
  0x27   : > { %963 = vmatpush.bf16.msra.mxu2 %v1626_v3  ;;  %v451_v56 = vrot.slane %v450_v50, 4  ;;  %v473_v3 = vrot.slane %v471_v61, 4  ;;  %v464_v7 = vor.u32 %v463_v1, %v460_v0  ;;  %v501_v34 = vshll.u32 %v329_v29, 16 }
  0x28   : > { %1127 = vmatpush.bf16.msra.mxu3 %v1634_v4  ;;  %v446_v62 = vsel %vm1827_vm2, %v441_v55, %v445_v44  ;;  %v479_v14 = vrot.slane %v477_v9, 5  ;;  %v506_v42 = vshrl.u32 %v330_v38, 16  ;;  %v509_v43 = vshll.u32 %v330_v38, 16 }
  0x29   : > { %684 = vmatpush.bf16.msra.mxu0 %v1617_v11  ;;  %v456_v63 = vsel %vm1827_vm2, %v451_v56, %v455_v57  ;;  %v599_v4 = vunpack.c.l.b16 %v446_v62  ;;  %v474_v8 = vor.u32 %v473_v3, %v469_v2  ;;  %v503_v37 = vrot.slane %v501_v34, 5 }
  0x2a   : > { %840 = vmatpush.bf16.msra.mxu1 %v1609_v12  ;;  %v600_v5 = vunpack.c.l.b16 %v456_v63  ;;  %v465_v12 = vrot.slane %v464_v7, 4  ;;  %v515_v44 = vshll.u32 %v331_v39, 16  ;;  %v519_v45 = vshrl.u32 %v331_v39, 16 }
  0x2b   : > { %964 = vmatpush.bf16.msra.mxu2 %v1625_v15  ;;  %v475_v13 = vrot.slane %v474_v8, 4  ;;  %v327_v15 = vld [vmem:[%s1781_s24 + $0x3c] sm:$0xf]  ;;  %v511_v49 = vrot.slane %v509_v43, 5  ;;  %v525_v58 = vshll.u32 %v332_v52, 16  ;;  %v530_v0 = vshrl.u32 %v333_v59, 16 }
  0x2c   : > { %1128 = vmatpush.bf16.msra.mxu3 %v1633_v16  ;;  %685 = vmatmul.bf16.vlgmr.msra.gmra.mxu0 %v611_v22  ;;  %v614_v11 = vpack.c.b16 %v600_v5, %v599_v4  ;;  %v328_v16 = vld [vmem:[%s1781_s24 + $0x40] sm:$0xf]  ;;  %v470_v17 = vsel %vm1827_vm2, %v465_v12, %v469_v2  ;;  %v482_v19 = vshrl.u32 %v327_v15, 16  ;;  %v485_v20 = vshll.u32 %v327_v15, 16  ;;  %v335_v12 = vld [vmem:[%s1781_s24 + $0x5c] sm:$0x1] }
  0x2d   : > { %841 = vmatmul.bf16.vlgmr.msra.gmra.mxu1 %v1599_v23  ;;  %v480_v18 = vsel %vm1827_vm2, %v475_v13, %v479_v14  ;;  %v491_v21 = vshll.u32 %v328_v16, 16  ;;  %v495_v22 = vshrl.u32 %v328_v16, 16  ;;  %v601_v23 = vunpack.c.l.b16 %v470_v17  ;;  %v1605_v16 = vld [vmem:[%s1781_s24 + $0x48] sm:$0xff] }
  0x2e   : > { %965 = vmatmul.bf16.vlgmr.msra.gmra.mxu2 %v1600_v24  ;;  %v487_v26 = vrot.slane %v485_v20, 5  ;;  %v517_v50 = vrot.slane %v515_v44, 5  ;;  %v521_v51 = vrot.slane %v519_v45, 4  ;;  %v527_v63 = vrot.slane %v525_v58, 5  ;;  %v339_v44 = vld [vmem:[%s1921_s28] sm:$0xf] }
  0x2f   : > { %1129 = vmatmul.bf16.vlgmr.msra.gmra.mxu3 %v612_v25  ;;  %v493_v27 = vrot.slane %v491_v21, 5  ;;  %v497_v28 = vrot.slane %v495_v22, 4  ;;  %v533_v1 = vshll.u32 %v333_v59, 16  ;;  %v539_v2 = vshll.u32 %v334_v60, 16  ;;  %v336_v21 = vld [vmem:[%s1781_s24 + $0x60] sm:$0xf] }
  0x30   : > { %v522_v57 = vor.u32 %v521_v51, %v517_v50  ;;  %v543_v3 = vshrl.u32 %v334_v60, 16  ;;  %v532_v6 = vrot.slane %v530_v0, 4  ;;  %v549_v15 = vshll.u32 %v335_v12, 16  ;;  %v337_v22 = vld [vmem:[%s1781_s24 + $0x64] sm:$0xf] }
  0x31   : > { %v498_v33 = vor.u32 %v497_v28, %v493_v27  ;;  %v535_v7 = vrot.slane %v533_v1, 5  ;;  %v541_v8 = vrot.slane %v539_v2, 5  ;;  %v567_v28 = vshrl.u32 %v337_v22, 16  ;;  %v340_v45 = vld [vmem:[%s1921_s28 + $0x4] sm:$0xf] }
  0x32   : > { %v523_v62 = vrot.slane %v522_v57, 4  ;;  %v545_v9 = vrot.slane %v543_v3, 4  ;;  %v551_v20 = vrot.slane %v549_v15, 5  ;;  %v1043_v51 = vshrl.u32 %v340_v45, 16  ;;  %v341_v59 = vld [vmem:[%s1921_s28 + $0x8] sm:$0x1] }
  0x33   : > { %v499_v36 = vrot.slane %v498_v33, 4  ;;  %v536_v13 = vor.u32 %v535_v7, %v532_v6  ;;  %v569_v34 = vrot.slane %v567_v28, 4  ;;  %v1607_v60 = vld [vmem:[%s1781_s24 + $0x60] sm:$0xff]  ;;  %v1049_v0 = vshll.u32 %v341_v59, 16 }
  0x34   : > { %v528_v5 = vsel %vm1827_vm2, %v523_v62, %v527_v63  ;;  %v546_v14 = vor.u32 %v545_v9, %v541_v8  ;;  %v1045_v58 = vrot.slane %v1043_v51, 4 }
  0x35   : > { %v504_v41 = vsel %vm1827_vm2, %v499_v36, %v503_v37  ;;  %v1606_v36 = vld [vmem:[%s1781_s24 + $0x54] sm:$0xff]  ;;  %v1051_v3 = vrot.slane %v1049_v0, 5 }
  0x3c   : > { %690 = vmatmul.bf16.gmra.mxu0 %v612_v25  ;;  %v484_v25 = vrot.slane %v482_v19, 4  ;;  %v547_v19 = vrot.slane %v546_v14, 4 }
  0x3d   : > { %846 = vmatmul.bf16.gmra.mxu1 %v1600_v24  ;;  %v602_v24 = vunpack.c.l.b16 %v480_v18  ;;  %v537_v18 = vrot.slane %v536_v13, 4 }
  0x3e   : > { %970 = vmatmul.bf16.gmra.mxu2 %v1601_v47  ;;  %v488_v32 = vor.u32 %v487_v26, %v484_v25  ;;  %v554_v25 = vshrl.u32 %v336_v21, 16  ;;  %v557_v26 = vshll.u32 %v336_v21, 16 }
  0x3f   : > { %1134 = vmatmul.bf16.gmra.mxu3 %v613_v48  ;;  %v615_v31 = vpack.c.b16 %v602_v24, %v601_v23  ;;  %v542_v23 = vsel %vm1827_vm2, %v537_v18, %v541_v8  ;;  %v552_v24 = vsel %vm1827_vm2, %v547_v19, %v551_v20 }
  0x40   : > { %v489_v35 = vrot.slane %v488_v32, 4  ;;  %v607_v29 = vunpack.c.l.b16 %v542_v23  ;;  %v559_v32 = vrot.slane %v557_v26, 5 }
  0x42   : > { %v494_v40 = vsel %vm1827_vm2, %v489_v35, %v493_v27  ;;  %v563_v27 = vshll.u32 %v337_v22, 16  ;;  %v338_v35 = vld [vmem:[%s1781_s24 + $0x68] sm:$0x1] }
  0x43   : > { %v603_v46 = vunpack.c.l.b16 %v494_v40  ;;  %v573_v40 = vshll.u32 %v338_v35, 16 }
  0x44   : > { %v565_v33 = vrot.slane %v563_v27, 5 }
  0x45   : > { %v575_v43 = vrot.slane %v573_v40, 5 }
  0x46   : > { %v570_v39 = vor.u32 %v569_v34, %v565_v33 }
  0x4c   : > { %695 = vmatmul.bf16.gmra.mxu0 %v613_v48  ;;  %v508_v48 = vrot.slane %v506_v42, 4  ;;  %v571_v42 = vrot.slane %v570_v39, 4 }
  0x4d   : > { %851 = vmatmul.bf16.gmra.mxu1 %v1601_v47  ;;  %v604_v47 = vunpack.c.l.b16 %v504_v41 }
  0x4e   : > { %975 = vmatmul.bf16.gmra.mxu2 %v1602_v10  ;;  %v512_v56 = vor.u32 %v511_v49, %v508_v48  ;;  %v1030_v48 = vshrl.u32 %v339_v44, 16  ;;  %v1033_v49 = vshll.u32 %v339_v44, 16 }
  0x4f   : > { %1139 = vmatmul.bf16.gmra.mxu3 %v614_v11  ;;  %v616_v55 = vpack.c.b16 %v604_v47, %v603_v46  ;;  %v576_v47 = vsel %vm1827_vm2, %v571_v42, %v575_v43 }
  0x50   : > { %v513_v61 = vrot.slane %v512_v56, 4  ;;  %v1035_v56 = vrot.slane %v1033_v49, 5 }
  0x52   : > { %v518_v4 = vsel %vm1827_vm2, %v513_v61, %v517_v50  ;;  %v1039_v50 = vshll.u32 %v340_v45, 16 }
  0x54   : > { %v1041_v57 = vrot.slane %v1039_v50, 5 }
  0x56   : > { %v1046_v63 = vor.u32 %v1045_v58, %v1041_v57 }
  0x58   : > { %v1047_v2 = vrot.slane %v1046_v63, 4 }
  0x5c   : > { %700 = vmatmul.bf16.gmra.mxu0 %v614_v11  ;;  %v606_v11 = vunpack.c.l.b16 %v528_v5  ;;  %v1052_v5 = vsel %vm1827_vm2, %v1047_v2, %v1051_v3 }
  0x5d   : > { %856 = vmatmul.bf16.gmra.mxu1 %v1602_v10  ;;  %v605_v10 = vunpack.c.l.b16 %v518_v4  ;;  %v1070_v7 = vunpack.c.l.b16 %v1052_v5 }
  0x5e   : > { %980 = vmatmul.bf16.gmra.mxu2 %v1603_v30 }
  0x5f   : > { %1144 = vmatmul.bf16.gmra.mxu3 %v615_v31  ;;  %v617_v17 = vpack.c.b16 %v606_v11, %v605_v10  ;;  %v1608_v10 = vld [vmem:[%s1921_s28] sm:$0xff] }
  0x6c   : > { %705 = vmatmul.bf16.gmra.mxu0 %v615_v31  ;;  %v556_v31 = vrot.slane %v554_v25, 4 }
  0x6d   : > { %861 = vmatmul.bf16.gmra.mxu1 %v1603_v30  ;;  %v608_v30 = vunpack.c.l.b16 %v552_v24 }
  0x6e   : > { %985 = vmatmul.bf16.gmra.mxu2 %v1604_v54  ;;  %v560_v38 = vor.u32 %v559_v32, %v556_v31 }
  0x6f   : > { %1149 = vmatmul.bf16.gmra.mxu3 %v616_v55  ;;  %v618_v37 = vpack.c.b16 %v608_v30, %v607_v29 }
  0x70   : > { %v561_v41 = vrot.slane %v560_v38, 4 }
  0x72   : > { %v566_v46 = vsel %vm1827_vm2, %v561_v41, %v565_v33 }
  0x73   : > { %v609_v52 = vunpack.c.l.b16 %v566_v46 }
  0x7c   : > { %710 = vmatmul.bf16.gmra.mxu0 %v616_v55  ;;  %v1032_v55 = vrot.slane %v1030_v48, 4 }
  0x7d   : > { %866 = vmatmul.bf16.gmra.mxu1 %v1604_v54  ;;  %v610_v54 = vunpack.c.l.b16 %v576_v47 }
  0x7e   : > { %990 = vmatmul.bf16.gmra.mxu2 %v1605_v16  ;;  %v1036_v62 = vor.u32 %v1035_v56, %v1032_v55 }
  0x7f   : > { %1154 = vmatmul.bf16.gmra.mxu3 %v617_v17  ;;  %v619_v61 = vpack.c.b16 %v610_v54, %v609_v52 }
  0x80   : > { %v1037_v1 = vrot.slane %v1036_v62, 4 }
  0x82   : > { %v1042_v4 = vsel %vm1827_vm2, %v1037_v1, %v1041_v57 }
  0x83   : > { %v1069_v6 = vunpack.c.l.b16 %v1042_v4 }
  0x85   : > { %v1071_v11 = vpack.c.b16 %v1070_v7, %v1069_v6 }
  0x8c   : > { %715 = vmatmul.bf16.gmra.mxu0 %v617_v17 }
  0x8d   : > { %871 = vmatmul.bf16.gmra.mxu1 %v1605_v16 }
  0x8e   : > { %995 = vmatmul.bf16.gmra.mxu2 %v1606_v36 }
  0x8f   : > { %1159 = vmatmul.bf16.gmra.mxu3 %v618_v37 }
  0x9c   : > { %720 = vmatmul.bf16.gmra.mxu0 %v618_v37 }
  0x9d   : > { %876 = vmatmul.bf16.gmra.mxu1 %v1606_v36 }
  0x9e   : > { %1000 = vmatmul.bf16.gmra.mxu2 %v1607_v60 }
  0x9f   : > { %1164 = vmatmul.bf16.gmra.mxu3 %v619_v61 }
  0xa9   : > { %v686_v8 = vpop.f32.mrf.mxu0 }
  0xaa   : > { %v842_v9 = vpop.f32.mrf.mxu1 }
  0xab   : > { %v843_v12 = vadd.f32 %v842_v9, %v686_v8 }
  0xac   : > { %725 = vmatmul.bf16.gmra.mxu0 %v619_v61 }
  0xad   : > { %881 = vmatmul.bf16.gmra.mxu1 %v1607_v60 }
  0xae   : > { %1005 = vmatmul.bf16.gmra.mxu2 %v1608_v10 }
  0xaf   : > { %1169 = vmatmul.bf16.gmra.mxu3 %v1071_v11 }
  0xb1   : > { %v966_v13 = vpop.f32.mrf.mxu2  ;;  %v688_v16 = vpop.f32.mrf.mxu0 }
  0xb2   : > { %v1130_v14 = vpop.f32.mrf.mxu3  ;;  %v1011_v15 = vadd.f32 %v966_v13, %v843_v12  ;;  %v844_v17 = vpop.f32.mrf.mxu1 }
  0xb3   : > { %v845_v21 = vadd.f32 %v844_v17, %v688_v16 }
  0xb4   : > { %v1175_v18 = vadd.f32 %v1130_v14, %v1011_v15 }
  0xb6   : > { %v1197_v19 = vadd.f32 %v1939_v53, %v1175_v18 }
  0xb8   : > { %vm1215_vm3 = vcmp.gt.f32.partialorder %v1197_v19, 0.0  ;;  %v1233_v20 = vmul.f32 0.2, %v1197_v19 }
  0xb9   : > { %v968_v22 = vpop.f32.mrf.mxu2  ;;  %v691_v26 = vpop.f32.mrf.mxu0 }
  0xba   : > { %v1132_v23 = vpop.f32.mrf.mxu3  ;;  %v1251_v24 = vsel %vm1215_vm3, %v1197_v19, %v1233_v20  ;;  %v1012_v25 = vadd.f32 %v968_v22, %v845_v21  ;;  %v847_v27 = vpop.f32.mrf.mxu1 }
  0xbb   : > { %v1269_v28 = vpack.c.bf16 %v1251_v24, %v1251_v24  ;;  %v848_v31 = vadd.f32 %v847_v27, %v691_v26 }
  0xbc   : > { %v1176_v29 = vadd.f32 %v1132_v23, %v1012_v25 }
  0xbd   : > { %1288 = vst.msk [vmem:[%s1946_s6] sm:$0xf] %vm1287_vm4, %v1269_v28 }
  0xbe   : > { %v1198_v30 = vadd.f32 %v1939_v53, %v1176_v29 }
  0xc0   : > { %vm1216_vm5 = vcmp.gt.f32.partialorder %v1198_v30, 0.0  ;;  %v1234_v32 = vmul.f32 0.2, %v1198_v30 }
  0xc1   : > { %v971_v33 = vpop.f32.mrf.mxu2  ;;  %v693_v37 = vpop.f32.mrf.mxu0 }
  0xc2   : > { %v1135_v34 = vpop.f32.mrf.mxu3  ;;  %v1252_v35 = vsel %vm1216_vm5, %v1198_v30, %v1234_v32  ;;  %v1013_v36 = vadd.f32 %v971_v33, %v848_v31  ;;  %v849_v38 = vpop.f32.mrf.mxu1 }
  0xc3   : > { %v1270_v39 = vpack.c.bf16 %v1252_v35, %v1252_v35  ;;  %v850_v43 = vadd.f32 %v849_v38, %v693_v37 }
  0xc4   : > { %v1177_v40 = vadd.f32 %v1135_v34, %v1013_v36 }
  0xc5   : > { %1289 = vst.msk [vmem:[%s1946_s6 + $0x4] sm:$0xf] %vm1287_vm4, %v1270_v39 }
  0xc6   : > { %v1199_v41 = vadd.f32 %v1939_v53, %v1177_v40 }
  0xc8   : > { %vm1217_vm6 = vcmp.gt.f32.partialorder %v1199_v41, 0.0  ;;  %v1235_v42 = vmul.f32 0.2, %v1199_v41 }
  0xc9   : > { %v973_v44 = vpop.f32.mrf.mxu2  ;;  %v696_v48 = vpop.f32.mrf.mxu0 }
  0xca   : > { %v1137_v45 = vpop.f32.mrf.mxu3  ;;  %v1253_v46 = vsel %vm1217_vm6, %v1199_v41, %v1235_v42  ;;  %v1014_v47 = vadd.f32 %v973_v44, %v850_v43  ;;  %v852_v49 = vpop.f32.mrf.mxu1 }
  0xcb   : > { %v1271_v50 = vpack.c.bf16 %v1253_v46, %v1253_v46  ;;  %v853_v54 = vadd.f32 %v852_v49, %v696_v48 }
  0xcc   : > { %v1178_v51 = vadd.f32 %v1137_v45, %v1014_v47 }
  0xcd   : > { %1290 = vst.msk [vmem:[%s1946_s6 + $0x8] sm:$0xf] %vm1287_vm4, %v1271_v50 }
  0xce   : > { %v1200_v52 = vadd.f32 %v1939_v53, %v1178_v51 }
  0xd0   : > { %vm1218_vm7 = vcmp.gt.f32.partialorder %v1200_v52, 0.0  ;;  %v1236_v55 = vmul.f32 0.2, %v1200_v52 }
  0xd1   : > { %v976_v56 = vpop.f32.mrf.mxu2  ;;  %v698_v60 = vpop.f32.mrf.mxu0 }
  0xd2   : > { %v1140_v57 = vpop.f32.mrf.mxu3  ;;  %v1254_v58 = vsel %vm1218_vm7, %v1200_v52, %v1236_v55  ;;  %v1015_v59 = vadd.f32 %v976_v56, %v853_v54  ;;  %v854_v61 = vpop.f32.mrf.mxu1 }
  0xd3   : > { %v1272_v62 = vpack.c.bf16 %v1254_v58, %v1254_v58  ;;  %v855_v2 = vadd.f32 %v854_v61, %v698_v60 }
  0xd4   : > { %v1179_v63 = vadd.f32 %v1140_v57, %v1015_v59 }
  0xd5   : > { %1291 = vst.msk [vmem:[%s1946_s6 + $0xc] sm:$0xf] %vm1287_vm4, %v1272_v62 }
  0xd6   : > { %v1201_v0 = vadd.f32 %v1939_v53, %v1179_v63 }
  0xd8   : > { %vm1219_vm8 = vcmp.gt.f32.partialorder %v1201_v0, 0.0  ;;  %v1237_v1 = vmul.f32 0.2, %v1201_v0 }
  0xd9   : > { %v978_v3 = vpop.f32.mrf.mxu2  ;;  %v701_v7 = vpop.f32.mrf.mxu0 }
  0xda   : > { %v1142_v4 = vpop.f32.mrf.mxu3  ;;  %v1255_v5 = vsel %vm1219_vm8, %v1201_v0, %v1237_v1  ;;  %v1016_v6 = vadd.f32 %v978_v3, %v855_v2  ;;  %v857_v8 = vpop.f32.mrf.mxu1 }
  0xdb   : > { %v1273_v9 = vpack.c.bf16 %v1255_v5, %v1255_v5  ;;  %v858_v12 = vadd.f32 %v857_v8, %v701_v7 }
  0xdc   : > { %v1180_v10 = vadd.f32 %v1142_v4, %v1016_v6 }
  0xdd   : > { %1292 = vst.msk [vmem:[%s1946_s6 + $0x10] sm:$0xf] %vm1287_vm4, %v1273_v9 }
  0xde   : > { %v1202_v11 = vadd.f32 %v1939_v53, %v1180_v10 }
  0xe0   : > { %vm1220_vm9 = vcmp.gt.f32.partialorder %v1202_v11, 0.0  ;;  %v1238_v13 = vmul.f32 0.2, %v1202_v11 }
  0xe1   : > { %v981_v14 = vpop.f32.mrf.mxu2  ;;  %v703_v18 = vpop.f32.mrf.mxu0 }
  0xe2   : > { %v1145_v15 = vpop.f32.mrf.mxu3  ;;  %v1256_v16 = vsel %vm1220_vm9, %v1202_v11, %v1238_v13  ;;  %v1017_v17 = vadd.f32 %v981_v14, %v858_v12  ;;  %v859_v19 = vpop.f32.mrf.mxu1 }
  0xe3   : > { %v1274_v20 = vpack.c.bf16 %v1256_v16, %v1256_v16  ;;  %v860_v24 = vadd.f32 %v859_v19, %v703_v18 }
  0xe4   : > { %v1181_v21 = vadd.f32 %v1145_v15, %v1017_v17 }
  0xe5   : > { %1293 = vst.msk [vmem:[%s1946_s6 + $0x14] sm:$0xf] %vm1287_vm4, %v1274_v20 }
  0xe6   : > { %v1203_v22 = vadd.f32 %v1939_v53, %v1181_v21 }
  0xe8   : > { %vm1221_vm10 = vcmp.gt.f32.partialorder %v1203_v22, 0.0  ;;  %v1239_v23 = vmul.f32 0.2, %v1203_v22 }
  0xe9   : > { %v983_v25 = vpop.f32.mrf.mxu2  ;;  %v706_v29 = vpop.f32.mrf.mxu0 }
  0xea   : > { %v1147_v26 = vpop.f32.mrf.mxu3  ;;  %v1257_v27 = vsel %vm1221_vm10, %v1203_v22, %v1239_v23  ;;  %v1018_v28 = vadd.f32 %v983_v25, %v860_v24  ;;  %v862_v30 = vpop.f32.mrf.mxu1 }
  0xeb   : > { %v1275_v31 = vpack.c.bf16 %v1257_v27, %v1257_v27  ;;  %v863_v34 = vadd.f32 %v862_v30, %v706_v29 }
  0xec   : > { %v1182_v32 = vadd.f32 %v1147_v26, %v1018_v28 }
  0xed   : > { %1294 = vst.msk [vmem:[%s1946_s6 + $0x18] sm:$0xf] %vm1287_vm4, %v1275_v31 }
  0xee   : > { %v1204_v33 = vadd.f32 %v1939_v53, %v1182_v32 }
  0xf0   : > { %vm1222_vm11 = vcmp.gt.f32.partialorder %v1204_v33, 0.0  ;;  %v1240_v35 = vmul.f32 0.2, %v1204_v33 }
  0xf1   : > { %v986_v36 = vpop.f32.mrf.mxu2  ;;  %v708_v40 = vpop.f32.mrf.mxu0 }
  0xf2   : > { %v1150_v37 = vpop.f32.mrf.mxu3  ;;  %v1258_v38 = vsel %vm1222_vm11, %v1204_v33, %v1240_v35  ;;  %v1019_v39 = vadd.f32 %v986_v36, %v863_v34  ;;  %v864_v41 = vpop.f32.mrf.mxu1 }
  0xf3   : > { %v1276_v42 = vpack.c.bf16 %v1258_v38, %v1258_v38  ;;  %v865_v46 = vadd.f32 %v864_v41, %v708_v40 }
  0xf4   : > { %v1183_v43 = vadd.f32 %v1150_v37, %v1019_v39 }
  0xf5   : > { %1295 = vst.msk [vmem:[%s1946_s6 + $0x1c] sm:$0xf] %vm1287_vm4, %v1276_v42 }
  0xf6   : > { %v1205_v44 = vadd.f32 %v1939_v53, %v1183_v43 }
  0xf8   : > { %vm1223_vm12 = vcmp.gt.f32.partialorder %v1205_v44, 0.0  ;;  %v1241_v45 = vmul.f32 0.2, %v1205_v44 }
  0xf9   : > { %v988_v47 = vpop.f32.mrf.mxu2  ;;  %v711_v51 = vpop.f32.mrf.mxu0 }
  0xfa   : > { %v1152_v48 = vpop.f32.mrf.mxu3  ;;  %v1259_v49 = vsel %vm1223_vm12, %v1205_v44, %v1241_v45  ;;  %v1020_v50 = vadd.f32 %v988_v47, %v865_v46  ;;  %v867_v52 = vpop.f32.mrf.mxu1 }
  0xfb   : > { %v1277_v54 = vpack.c.bf16 %v1259_v49, %v1259_v49  ;;  %v868_v57 = vadd.f32 %v867_v52, %v711_v51 }
  0xfc   : > { %v1184_v55 = vadd.f32 %v1152_v48, %v1020_v50 }
  0xfd   : > { %1296 = vst.msk [vmem:[%s1946_s6 + $0x20] sm:$0xf] %vm1287_vm4, %v1277_v54 }
  0xfe   : > { %v1206_v56 = vadd.f32 %v1939_v53, %v1184_v55 }
 0x100   : > { %vm1224_vm13 = vcmp.gt.f32.partialorder %v1206_v56, 0.0  ;;  %v1242_v58 = vmul.f32 0.2, %v1206_v56 }
 0x101   : > { %v991_v59 = vpop.f32.mrf.mxu2  ;;  %v713_v63 = vpop.f32.mrf.mxu0 }
 0x102   : > { %v1155_v60 = vpop.f32.mrf.mxu3  ;;  %v1260_v61 = vsel %vm1224_vm13, %v1206_v56, %v1242_v58  ;;  %v1021_v62 = vadd.f32 %v991_v59, %v868_v57  ;;  %v869_v0 = vpop.f32.mrf.mxu1 }
 0x103   : > { %v1278_v1 = vpack.c.bf16 %v1260_v61, %v1260_v61  ;;  %v870_v5 = vadd.f32 %v869_v0, %v713_v63 }
 0x104   : > { %v1185_v2 = vadd.f32 %v1155_v60, %v1021_v62 }
 0x105   : > { %1297 = vst.msk [vmem:[%s1946_s6 + $0x24] sm:$0xf] %vm1287_vm4, %v1278_v1 }
 0x106   : > { %v1207_v3 = vadd.f32 %v1939_v53, %v1185_v2 }
 0x108   : > { %vm1225_vm14 = vcmp.gt.f32.partialorder %v1207_v3, 0.0  ;;  %v1243_v4 = vmul.f32 0.2, %v1207_v3 }
 0x109   : > { %v993_v6 = vpop.f32.mrf.mxu2  ;;  %v716_v10 = vpop.f32.mrf.mxu0 }
 0x10a   : > { %v1157_v7 = vpop.f32.mrf.mxu3  ;;  %v1261_v8 = vsel %vm1225_vm14, %v1207_v3, %v1243_v4  ;;  %v1022_v9 = vadd.f32 %v993_v6, %v870_v5  ;;  %v872_v11 = vpop.f32.mrf.mxu1 }
 0x10b   : > { %v1279_v12 = vpack.c.bf16 %v1261_v8, %v1261_v8  ;;  %v873_v15 = vadd.f32 %v872_v11, %v716_v10 }
 0x10c   : > { %v1186_v13 = vadd.f32 %v1157_v7, %v1022_v9 }
 0x10d   : > { %1298 = vst.msk [vmem:[%s1946_s6 + $0x28] sm:$0xf] %vm1287_vm4, %v1279_v12 }
 0x10e   : > { %v1208_v14 = vadd.f32 %v1939_v53, %v1186_v13 }
 0x110   : > { %vm1226_vm15 = vcmp.gt.f32.partialorder %v1208_v14, 0.0  ;;  %v1244_v16 = vmul.f32 0.2, %v1208_v14 }
 0x111   : > { %v996_v17 = vpop.f32.mrf.mxu2  ;;  %v718_v21 = vpop.f32.mrf.mxu0 }
 0x112   : > { %v1160_v18 = vpop.f32.mrf.mxu3  ;;  %v1262_v19 = vsel %vm1226_vm15, %v1208_v14, %v1244_v16  ;;  %v1023_v20 = vadd.f32 %v996_v17, %v873_v15  ;;  %v874_v22 = vpop.f32.mrf.mxu1 }
 0x113   : > { %v1280_v23 = vpack.c.bf16 %v1262_v19, %v1262_v19  ;;  %v875_v27 = vadd.f32 %v874_v22, %v718_v21 }
 0x114   : > { %v1187_v24 = vadd.f32 %v1160_v18, %v1023_v20 }
 0x115   : > { %1299 = vst.msk [vmem:[%s1946_s6 + $0x2c] sm:$0xf] %vm1287_vm4, %v1280_v23 }
 0x116   : > { %v1209_v25 = vadd.f32 %v1939_v53, %v1187_v24 }
 0x118   : > { %vm1227_vm0 = vcmp.gt.f32.partialorder %v1209_v25, 0.0  ;;  %v1245_v26 = vmul.f32 0.2, %v1209_v25 }
 0x119   : > { %v998_v28 = vpop.f32.mrf.mxu2  ;;  %v721_v32 = vpop.f32.mrf.mxu0 }
 0x11a   : > { %v1162_v29 = vpop.f32.mrf.mxu3  ;;  %v1263_v30 = vsel %vm1227_vm0, %v1209_v25, %v1245_v26  ;;  %v1024_v31 = vadd.f32 %v998_v28, %v875_v27  ;;  %v877_v33 = vpop.f32.mrf.mxu1 }
 0x11b   : > { %v1281_v34 = vpack.c.bf16 %v1263_v30, %v1263_v30  ;;  %v878_v37 = vadd.f32 %v877_v33, %v721_v32 }
 0x11c   : > { %v1188_v35 = vadd.f32 %v1162_v29, %v1024_v31 }
 0x11d   : > { %1300 = vst.msk [vmem:[%s1946_s6 + $0x30] sm:$0xf] %vm1287_vm4, %v1281_v34 }
 0x11e   : > { %v1210_v36 = vadd.f32 %v1939_v53, %v1188_v35 }
 0x120   : > { %vm1228_vm1 = vcmp.gt.f32.partialorder %v1210_v36, 0.0  ;;  %v1246_v38 = vmul.f32 0.2, %v1210_v36 }
 0x121   : > { %v1001_v39 = vpop.f32.mrf.mxu2  ;;  %v723_v43 = vpop.f32.mrf.mxu0 }
 0x122   : > { %v1165_v40 = vpop.f32.mrf.mxu3  ;;  %v1264_v41 = vsel %vm1228_vm1, %v1210_v36, %v1246_v38  ;;  %v1025_v42 = vadd.f32 %v1001_v39, %v878_v37  ;;  %v879_v44 = vpop.f32.mrf.mxu1 }
 0x123   : > { %v1282_v45 = vpack.c.bf16 %v1264_v41, %v1264_v41  ;;  %v880_v49 = vadd.f32 %v879_v44, %v723_v43 }
 0x124   : > { %v1189_v46 = vadd.f32 %v1165_v40, %v1025_v42 }
 0x125   : > { %1301 = vst.msk [vmem:[%s1946_s6 + $0x34] sm:$0xf] %vm1287_vm4, %v1282_v45 }
 0x126   : > { %v1211_v47 = vadd.f32 %v1939_v53, %v1189_v46 }
 0x128   : > { %vm1229_vm2 = vcmp.gt.f32.partialorder %v1211_v47, 0.0  ;;  %v1247_v48 = vmul.f32 0.2, %v1211_v47 }
 0x129   : > { %v1003_v50 = vpop.f32.mrf.mxu2  ;;  %v726_v56 = vpop.f32.mrf.mxu0 }
 0x12a   : > { %v1167_v51 = vpop.f32.mrf.mxu3  ;;  %v1265_v52 = vsel %vm1229_vm2, %v1211_v47, %v1247_v48  ;;  %v1026_v54 = vadd.f32 %v1003_v50, %v880_v49  ;;  %v882_v57 = vpop.f32.mrf.mxu1 }
 0x12b   : > { %v1283_v55 = vpack.c.bf16 %v1265_v52, %v1265_v52  ;;  %v883_v60 = vadd.f32 %v882_v57, %v726_v56 }
 0x12c   : > { %v1190_v58 = vadd.f32 %v1167_v51, %v1026_v54 }
 0x12d   : > { %1302 = vst.msk [vmem:[%s1946_s6 + $0x38] sm:$0xf] %vm1287_vm4, %v1283_v55 }
 0x12e   : > { %v1212_v59 = vadd.f32 %v1939_v53, %v1190_v58 }
 0x130   : > { %vm1230_vm3 = vcmp.gt.f32.partialorder %v1212_v59, 0.0  ;;  %v1248_v61 = vmul.f32 0.2, %v1212_v59 }
 0x131   : > { %v1006_v62 = vpop.f32.mrf.mxu2  ;;  %v728_v4 = vpop.f32.mrf.mxu0 }
 0x132   : > { %v1170_v63 = vpop.f32.mrf.mxu3  ;;  %v1266_v0 = vsel %vm1230_vm3, %v1212_v59, %v1248_v61  ;;  %v1027_v1 = vadd.f32 %v1006_v62, %v883_v60  ;;  %v884_v5 = vpop.f32.mrf.mxu1 }
 0x133   : > { %v1284_v2 = vpack.c.bf16 %v1266_v0, %v1266_v0  ;;  %v885_v8 = vadd.f32 %v884_v5, %v728_v4 }
 0x134   : > { %v1191_v3 = vadd.f32 %v1170_v63, %v1027_v1 }
 0x135   : > { %1303 = vst.msk [vmem:[%s1946_s6 + $0x3c] sm:$0xf] %vm1287_vm4, %v1284_v2 }
 0x136   : > { %v1213_v6 = vadd.f32 %v1939_v53, %v1191_v3 }
 0x138   : > { %vm1231_vm5 = vcmp.gt.f32.partialorder %v1213_v6, 0.0  ;;  %v1249_v7 = vmul.f32 0.2, %v1213_v6 }
 0x139   : > { %v1008_v9 = vpop.f32.mrf.mxu2 }
 0x13a   : > { %v1267_v10 = vsel %vm1231_vm5, %v1213_v6, %v1249_v7  ;;  %v1028_v11 = vadd.f32 %v1008_v9, %v885_v8  ;;  %v1172_v13 = vpop.f32.mrf.mxu3 }
 0x13b   : > { %v1285_v12 = vpack.c.bf16 %v1267_v10, %v1267_v10 }
 0x13c   : > { %v1192_v14 = vadd.f32 %v1172_v13, %v1028_v11 }
 0x13d   : > { %1304 = vst.msk [vmem:[%s1946_s6 + $0x40] sm:$0xf] %vm1287_vm4, %v1285_v12 }
 0x13e   : > { %v1214_v15 = vadd.f32 %v1939_v53, %v1192_v14 }
 0x140   : > { %vm1232_vm6 = vcmp.gt.f32.partialorder %v1214_v15, 0.0  ;;  %v1250_v16 = vmul.f32 0.2, %v1214_v15 }
 0x142   : > { %v1268_v17 = vsel %vm1232_vm6, %v1214_v15, %v1250_v16 }
 0x143   : > { %v1286_v18 = vpack.c.bf16 %v1268_v17, %v1268_v17 }
 0x145   : > { %1305 = vst.msk [vmem:[%s1946_s6 + $0x44] sm:$0xf] %vm1287_vm4, %v1286_v18 }
 0x146 PF: > { %s14_s17 = sadd.s32 1, %s1692_s17   ;;  %s2017_s15 = smov %s1688_s16 }
 0x147   : > { %p11_p5 = scmp.ge.s32.totalorder %s14_s17, 4   ;;  %s2018_s16 = smov %s2020_s18 }
 0x149   :  { %13 = sbr.rel (!%p11_p5) target bundleno = 2 (0x2), region = 69 }

// kernel: dis_forward.4
= control target key start
LH: loop header
LB: loop body
LE: loop exit
PB: predicated region body
PF: predicated region fallthrough
CT: control target
= control target key end

     0   :  { %s2070_s15 = smov 0   ;;  %s2072_s16 = smov 0   ;;  %s2465_s0 = inlined_call_operand.vmem [shape: bf16[2,6,17,256], index: 0, kind: input, shape index: {}, may-alias: {0,1}]   ;;  %s2466_s1 = inlined_call_operand.vmem [shape: bf16[2,6,17,256], index: 1, kind: input, shape index: {}, may-alias: {0,1}]   ;;  %s2467_s2 = inlined_call_operand.vmem [shape: bf16[1024,128], index: 2, kind: input, shape index: {}]   ;;  %s2468_s3 = inlined_call_operand.vmem [shape: f32[1,128], index: 3, kind: input, shape index: {}]   ;;  %s2469_s4 = inlined_call_operand.vmem [shape: bf16[2,1,80,128], index: 4, kind: output, shape index: {}]  }
   0x1   :  { %s2074_s17 = smov 0  }
   0x2 LB: > { %s26_s18 = sadd.s32 1, %s2039_s16  ;;  %p1575_p0 = scmp.ge.s32.totalorder %s2043_s17, 1  ;;  %s2043_s17 = sphi %s2074_s17, %s14_s17   ;;  %s2039_s16 = sphi %s2072_s16, %s2473_s16   ;;  %s2035_s15 = sphi %s2070_s15, %s2472_s15  }
   0x3   : > { %p28_p1 = scmp.ge.s32.totalorder %s26_s18, 2  ;;  %p220_p2 = scmp.lt.s32.totalorder %s2043_s17, 3 }
   0x5   : > { %s2475_s18 = smov (%p28_p1, %s26_s18), 0  ;;  %p221_p3 = pnand %p1575_p0, %p220_p2 }
   0x6   : > { %p279_p4 = scmp.lt.s32.totalorder (!%p221_p3), %s2035_s15, 1 }
   0x7   : > { %224 = sbr.rel (%p221_p3) target bundleno = 343 (0x157), region = 36 }
   0xc   : > { %v1922_v0 = vld [vmem:[%s2467_s2 + $0xb8] sm:$0xff]  ;;  %v1921_v4 = vld [vmem:[%s2467_s2 + $0xb0] sm:$0xff]  ;;  %s2477_s15 = smov (!%p279_p4, %s2035_s15), 1  ;;  %v1920_v8 = vld [vmem:[%s2467_s2 + $0xa8] sm:$0xff]  ;;  %vm367_vm0 = vsmask.f32 3328 }
   0xd   : > { %v1930_v1 = vld [vmem:[%s2467_s2 + $0xf8] sm:$0xff]  ;;  %658 = vmatpush.bf16.msra.mxu0 %v1922_v0  ;;  %v1929_v5 = vld [vmem:[%s2467_s2 + $0xf0] sm:$0xff]  ;;  %s1992_s9 = smul.u32 144, %s2477_s15  ;;  %v1928_v9 = vld [vmem:[%s2467_s2 + $0xe8] sm:$0xff]  ;;  %vm368_vm1 = vsmask.f32 7440 }
   0xe   : > { %v1906_v2 = vld [vmem:[%s2467_s2 + $0x38] sm:$0xff]  ;;  %692 = vmatpush.bf16.msra.mxu1 %v1930_v1  ;;  %v1905_v6 = vld [vmem:[%s2467_s2 + $0x30] sm:$0xff]  ;;  %v1904_v10 = vld [vmem:[%s2467_s2 + $0x28] sm:$0xff]  ;;  %s1994_s7 = smul.u32 40, %s2477_s15 }
   0xf   : > { %v1914_v3 = vld [vmem:[%s2467_s2 + $0x78] sm:$0xff]  ;;  %872 = vmatpush.bf16.msra.mxu2 %v1906_v2  ;;  %v1913_v7 = vld [vmem:[%s2467_s2 + $0x70] sm:$0xff]  ;;  %v1912_v11 = vld [vmem:[%s2467_s2 + $0x68] sm:$0xff]  ;;  %s2132_s24 = scalar_lea.vmem %s2465_s0, %s1992_s9 }
  0x10   : > { %906 = vmatpush.bf16.msra.mxu3 %v1914_v3  ;;  %v1919_v12 = vld [vmem:[%s2467_s2 + $0xa0] sm:$0xff]  ;;  %v318_v17 = vld [vmem:[%s2132_s24 + $0x8] sm:$0xff]  ;;  %v319_v18 = vld [vmem:[%s2132_s24 + $0x10] sm:$0x11]  ;;  %s2433_s11 = scalar_lea.vmem %s2469_s4, %s1994_s7 }
  0x11   : > { %659 = vmatpush.bf16.msra.mxu0 %v1921_v4  ;;  %v1927_v13 = vld [vmem:[%s2467_s2 + $0xe0] sm:$0xff]  ;;  %v380_v21 = vshll.u32 %v318_v17, 16  ;;  %v384_v22 = vshrl.u32 %v318_v17, 16  ;;  %v1918_v25 = vld [vmem:[%s2467_s2 + $0x98] sm:$0xff]  ;;  %v390_v29 = vshll.u32 %v319_v18, 16  ;;  %v1917_v34 = vld [vmem:[%s2467_s2 + $0x90] sm:$0xff] }
  0x12   : > { %693 = vmatpush.bf16.msra.mxu1 %v1929_v5  ;;  %v1903_v14 = vld [vmem:[%s2467_s2 + $0x20] sm:$0xff]  ;;  %v1926_v26 = vld [vmem:[%s2467_s2 + $0xd8] sm:$0xff]  ;;  %v1925_v35 = vld [vmem:[%s2467_s2 + $0xd0] sm:$0xff] }
  0x13   : > { %873 = vmatpush.bf16.msra.mxu2 %v1905_v6  ;;  %v317_v15 = vld [vmem:[%s2132_s24] sm:$0xff]  ;;  %v382_v27 = vrot.slane %v380_v21, 5  ;;  %v386_v28 = vrot.slane %v384_v22, 4  ;;  %v1902_v30 = vld [vmem:[%s2467_s2 + $0x18] sm:$0xff]  ;;  %v1901_v36 = vld [vmem:[%s2467_s2 + $0x10] sm:$0xff]  ;;  %v392_v39 = vrot.slane %v390_v29, 5 }
  0x14   : > { %907 = vmatpush.bf16.msra.mxu3 %v1913_v7  ;;  %v1911_v16 = vld [vmem:[%s2467_s2 + $0x60] sm:$0xff]  ;;  %v371_v19 = vshrl.u32 %v317_v15, 16  ;;  %v374_v20 = vshll.u32 %v317_v15, 16  ;;  %v1910_v31 = vld [vmem:[%s2467_s2 + $0x58] sm:$0xff]  ;;  %v1909_v41 = vld [vmem:[%s2467_s2 + $0x50] sm:$0xff] }
  0x15   : > { %660 = vmatpush.bf16.msra.mxu0 %v1920_v8  ;;  %v387_v33 = vor.u32 %v386_v28, %v382_v27  ;;  %v320_v40 = vld [vmem:[%s2132_s24 + $0x18] sm:$0xff]  ;;  %vm2175_vm2 = vmor %vm367_vm0, %vm368_vm1  ;;  %v321_v43 = vld [vmem:[%s2132_s24 + $0x20] sm:$0xff] }
  0x16   : > { %694 = vmatpush.bf16.msra.mxu1 %v1928_v9  ;;  %v373_v23 = vrot.slane %v371_v19, 4  ;;  %v376_v24 = vrot.slane %v374_v20, 5  ;;  %v395_v44 = vshrl.u32 %v320_v40, 16  ;;  %v398_v45 = vshll.u32 %v320_v40, 16  ;;  %v1916_v46 = vld [vmem:[%s2467_s2 + $0x88] sm:$0xff]  ;;  %v1915_v54 = vld [vmem:[%s2467_s2 + $0x80] sm:$0xff] }
  0x17   : > { %874 = vmatpush.bf16.msra.mxu2 %v1904_v10  ;;  %v388_v38 = vrot.slane %v387_v33, 4  ;;  %v1924_v47 = vld [vmem:[%s2467_s2 + $0xc8] sm:$0xff]  ;;  %v404_v50 = vshll.u32 %v321_v43, 16  ;;  %v408_v51 = vshrl.u32 %v321_v43, 16  ;;  %v1923_v55 = vld [vmem:[%s2467_s2 + $0xc0] sm:$0xff]  ;;  %v1954_v7 = vld [vmem:[%s2467_s2 + $0x1b8] sm:$0xff] }
  0x18   : > { %908 = vmatpush.bf16.msra.mxu3 %v1912_v11  ;;  %v377_v32 = vor.u32 %v376_v24, %v373_v23  ;;  %v1900_v52 = vld [vmem:[%s2467_s2 + $0x8] sm:$0xff]  ;;  %v1899_v56 = vld [vmem:[%s2467_s2] sm:$0xff]  ;;  %v397_v0 = vrot.slane %v395_v44, 4  ;;  %v400_v1 = vrot.slane %v398_v45, 5  ;;  %v1962_v8 = vld [vmem:[%s2467_s2 + $0x1f8] sm:$0xff] }
  0x19   : > { %661 = vmatpush.bf16.msra.mxu0 %v1919_v12  ;;  %v393_v49 = vsel %vm2175_vm2, %v388_v38, %v392_v39  ;;  %v1908_v53 = vld [vmem:[%s2467_s2 + $0x48] sm:$0xff]  ;;  %v1907_v57 = vld [vmem:[%s2467_s2 + $0x40] sm:$0xff]  ;;  %v406_v2 = vrot.slane %v404_v50, 5  ;;  %v410_v3 = vrot.slane %v408_v51, 4  ;;  %v1946_v17 = vld [vmem:[%s2467_s2 + $0x178] sm:$0xff] }
  0x1a   : > { %695 = vmatpush.bf16.msra.mxu1 %v1927_v13  ;;  %v378_v37 = vrot.slane %v377_v32, 4  ;;  %v524_v59 = vunpack.c.l.b16 %v393_v49  ;;  %v525_v61 = vunpack.c.h.b16 %v393_v49  ;;  %v1645_v62 = vld [vmem:[%s2132_s24] sm:$0xf]  ;;  %v1888_v63 = vld [vmem:[%s2132_s24 + $0x4] sm:$0xf0]  ;;  %v401_v13 = vor.u32 %v400_v1, %v397_v0  ;;  %v1953_v18 = vld [vmem:[%s2467_s2 + $0x1b0] sm:$0xff] }
  0x1b   : > { %875 = vmatpush.bf16.msra.mxu2 %v1903_v14  ;;  %v1887_v4 = vld [vmem:[%s2132_s24 + $0x4] sm:$0xf]  ;;  %v1647_v5 = vld [vmem:[%s2132_s24 + $0x8] sm:$0xf0]  ;;  %v1646_v11 = vor.u32 %v1888_v63, %v1645_v62  ;;  %v411_v14 = vor.u32 %v410_v3, %v406_v2  ;;  %v1961_v19 = vld [vmem:[%s2467_s2 + $0x1f0] sm:$0xff] }
  0x1c   : > { %909 = vmatpush.bf16.msra.mxu3 %v1911_v16  ;;  %v383_v48 = vsel %vm2175_vm2, %v378_v37, %v382_v27  ;;  %v322_v6 = vld [vmem:[%s2132_s24 + $0x28] sm:$0x11]  ;;  %v1650_v12 = vor.u32 %v1887_v4, %v1647_v5  ;;  %v1938_v16 = vld [vmem:[%s2467_s2 + $0x138] sm:$0xff]  ;;  %v323_v20 = vld [vmem:[%s2132_s24 + $0x30] sm:$0xff]  ;;  %v402_v22 = vrot.slane %v401_v13, 4 }
  0x1d   : > { %662 = vmatpush.bf16.msra.mxu0 %v1918_v25  ;;  %v522_v58 = vunpack.c.l.b16 %v383_v48  ;;  %v523_v60 = vunpack.c.h.b16 %v383_v48  ;;  %v414_v15 = vshll.u32 %v322_v6, 16  ;;  %v324_v21 = vld [vmem:[%s2132_s24 + $0x38] sm:$0xff]  ;;  %v412_v23 = vrot.slane %v411_v14, 4  ;;  %v1937_v25 = vld [vmem:[%s2467_s2 + $0x130] sm:$0xff]  ;;  %v1952_v27 = vld [vmem:[%s2467_s2 + $0x1a8] sm:$0xff] }
  0x1e   : > { %696 = vmatpush.bf16.msra.mxu1 %v1926_v26  ;;  %v1945_v26 = vld [vmem:[%s2467_s2 + $0x170] sm:$0xff]  ;;  %v1960_v28 = vld [vmem:[%s2467_s2 + $0x1e8] sm:$0xff]  ;;  %v419_v29 = vshrl.u32 %v323_v20, 16  ;;  %v432_v32 = vshrl.u32 %v324_v21, 16  ;;  %v407_v33 = vsel %vm2175_vm2, %v402_v22, %v406_v2  ;;  %v1951_v37 = vld [vmem:[%s2467_s2 + $0x1a0] sm:$0xff] }
  0x1f   : > { %876 = vmatpush.bf16.msra.mxu2 %v1902_v30  ;;  %v542_v9 = vpack.c.b16 %v524_v59, %v522_v58  ;;  %v543_v10 = vpack.c.b16 %v525_v61, %v523_v60  ;;  %v416_v24 = vrot.slane %v414_v15, 5  ;;  %v422_v30 = vshll.u32 %v323_v20, 16  ;;  %v1959_v38 = vld [vmem:[%s2467_s2 + $0x1e0] sm:$0xff]  ;;  %v1653_v49 = vld [vmem:[%s2132_s24 + $0x18] sm:$0xf]  ;;  %v326_v5 = vld [vmem:[%s2132_s24 + $0x48] sm:$0xff] }
  0x20   : > { %910 = vmatpush.bf16.msra.mxu3 %v1910_v31  ;;  %v428_v31 = vshll.u32 %v324_v21, 16  ;;  %v421_v39 = vrot.slane %v419_v29, 4  ;;  %v434_v43 = vrot.slane %v432_v32, 4  ;;  %v526_v44 = vunpack.c.l.b16 %v407_v33  ;;  %v325_v48 = vld [vmem:[%s2132_s24 + $0x40] sm:$0x11]  ;;  %v1950_v58 = vld [vmem:[%s2467_s2 + $0x198] sm:$0xff] }
  0x21   : > { %663 = vmatpush.bf16.msra.mxu0 %v1917_v34  ;;  %v417_v34 = vsel %vm2175_vm2, %v412_v23, %v416_v24  ;;  %v424_v40 = vrot.slane %v422_v30, 5  ;;  %v1890_v50 = vld [vmem:[%s2132_s24 + $0x1c] sm:$0xf0]  ;;  %v1889_v51 = vld [vmem:[%s2132_s24 + $0x1c] sm:$0xf]  ;;  %v327_v6 = vld [vmem:[%s2132_s24 + $0x50] sm:$0xff] }
  0x22   : > { %697 = vmatpush.bf16.msra.mxu1 %v1925_v35  ;;  %v1936_v35 = vld [vmem:[%s2467_s2 + $0x128] sm:$0xff]  ;;  %v528_v45 = vunpack.c.l.b16 %v417_v34  ;;  %v1958_v59 = vld [vmem:[%s2467_s2 + $0x1d8] sm:$0xff]  ;;  %v2282_v62 = vor.u32 %v1890_v50, %v1653_v49  ;;  %v443_v15 = vshrl.u32 %v326_v5, 16  ;;  %v1891_v30 = vld [vmem:[%s2132_s24 + $0x34] sm:$0xf] }
  0x23   : > { %877 = vmatpush.bf16.msra.mxu2 %v1901_v36  ;;  %v1944_v36 = vld [vmem:[%s2467_s2 + $0x168] sm:$0xff]  ;;  %v1934_v0 = vld [vmem:[%s2467_s2 + $0x118] sm:$0xff]  ;;  %v1931_v49 = vld [vmem:[%s2467_s2 + $0x100] sm:$0xff] }
  0x24   : > { %911 = vmatpush.bf16.msra.mxu3 %v1909_v41  ;;  %v430_v41 = vrot.slane %v428_v31, 5  ;;  %v2278_v60 = vpack.c.b16 %v528_v45, %v526_v44  ;;  %v1942_v1 = vld [vmem:[%s2467_s2 + $0x158] sm:$0xff]  ;;  %v1948_v13 = vld [vmem:[%s2467_s2 + $0x188] sm:$0xff]  ;;  %v445_v23 = vrot.slane %v443_v15, 4  ;;  %v1947_v45 = vld [vmem:[%s2467_s2 + $0x180] sm:$0xff] }
  0x25   : > { %664 = vmatpush.bf16.msra.mxu0 %v1916_v46  ;;  %v527_v46 = vunpack.c.h.b16 %v407_v33  ;;  %v1956_v14 = vld [vmem:[%s2467_s2 + $0x1c8] sm:$0xff]  ;;  %v1892_v29 = vld [vmem:[%s2132_s24 + $0x34] sm:$0xf0]  ;;  %v1663_v31 = vld [vmem:[%s2132_s24 + $0x38] sm:$0xf0] }
  0x26   : > { %698 = vmatpush.bf16.msra.mxu1 %v1924_v47  ;;  %v529_v47 = vunpack.c.h.b16 %v417_v34  ;;  %v1940_v44 = vld [vmem:[%s2467_s2 + $0x148] sm:$0xff]  ;;  %v1939_v50 = vld [vmem:[%s2467_s2 + $0x140] sm:$0xff] }
  0x27   : > { %878 = vmatpush.bf16.msra.mxu2 %v1900_v52  ;;  %v1655_v52 = vld [vmem:[%s2132_s24 + $0x20] sm:$0xf0] }
  0x28   : > { %912 = vmatpush.bf16.msra.mxu3 %v1908_v53  ;;  %v1935_v53 = vld [vmem:[%s2467_s2 + $0x120] sm:$0xff]  ;;  %v2280_v61 = vpack.c.b16 %v529_v47, %v527_v46  ;;  %v2284_v63 = vor.u32 %v1889_v51, %v1655_v52  ;;  %v330_v47 = vld [vmem:[%s2132_s24 + $0x68] sm:$0xff] }
  0x29   : > { %665 = vmatpush.bf16.msra.mxu0 %v1915_v54  ;;  %v1943_v54 = vld [vmem:[%s2467_s2 + $0x160] sm:$0xff] }
  0x2a   : > { %699 = vmatpush.bf16.msra.mxu1 %v1923_v55  ;;  %v425_v55 = vor.u32 %v424_v40, %v421_v39  ;;  %v329_v46 = vld [vmem:[%s2132_s24 + $0x60] sm:$0xff] }
  0x2b   : > { %879 = vmatpush.bf16.msra.mxu2 %v1899_v56  ;;  %v435_v56 = vor.u32 %v434_v43, %v430_v41  ;;  %v1932_v43 = vld [vmem:[%s2467_s2 + $0x108] sm:$0xff] }
  0x2c   : > { %913 = vmatpush.bf16.msra.mxu3 %v1907_v57  ;;  %666 = vmatmul.bf16.vlgmr.msra.gmra.mxu0 %v542_v9  ;;  %v438_v57 = vshll.u32 %v325_v48, 16  ;;  %v426_v2 = vrot.slane %v425_v55, 4  ;;  %v1933_v9 = vld [vmem:[%s2467_s2 + $0x110] sm:$0xff]  ;;  %v1955_v48 = vld [vmem:[%s2467_s2 + $0x1c0] sm:$0xff]  ;;  %v476_v55 = vshll.u32 %v330_v47, 16 }
  0x2d   : > { %700 = vmatmul.bf16.vlgmr.msra.gmra.mxu1 %v543_v10  ;;  %1078 = vmatpush.bf16.msrb.mxu0 %v1938_v16  ;;  %v436_v3 = vrot.slane %v435_v56, 4  ;;  %v1941_v10 = vld [vmem:[%s2467_s2 + $0x150] sm:$0xff]  ;;  %v446_v16 = vshll.u32 %v326_v5, 16  ;;  %v480_v56 = vshrl.u32 %v330_v47, 16 }
  0x2e   : > { %880 = vmatmul.bf16.vlgmr.msra.gmra.mxu2 %v1646_v11  ;;  %1112 = vmatpush.bf16.msrb.mxu1 %v1946_v17  ;;  %v440_v4 = vrot.slane %v438_v57, 5  ;;  %v431_v11 = vsel %vm2175_vm2, %v426_v2, %v430_v41  ;;  %v452_v17 = vshll.u32 %v327_v6, 16  ;;  %v1894_v2 = vld [vmem:[%s2132_s24 + $0x4c] sm:$0xf0]  ;;  %v478_v5 = vrot.slane %v476_v55, 5 }
  0x2f   : > { %1316 = vmatpush.bf16.msrb.mxu2 %v1954_v7  ;;  %914 = vmatmul.bf16.vlgmr.msra.gmra.mxu3 %v1650_v12  ;;  %v1949_v7 = vld [vmem:[%s2467_s2 + $0x190] sm:$0xff]  ;;  %v531_v21 = vunpack.c.h.b16 %v431_v11  ;;  %v448_v24 = vrot.slane %v446_v16, 5 }
  0x30   : > { %1350 = vmatpush.bf16.msrb.mxu3 %v1962_v8  ;;  %v1957_v8 = vld [vmem:[%s2467_s2 + $0x1d0] sm:$0xff]  ;;  %v441_v12 = vsel %vm2175_vm2, %v436_v3, %v440_v4 }
  0x31   : > { %1079 = vmatpush.bf16.msrb.mxu0 %v1937_v25  ;;  %v532_v20 = vunpack.c.l.b16 %v441_v12  ;;  %v533_v22 = vunpack.c.h.b16 %v441_v12  ;;  %v454_v25 = vrot.slane %v452_v17, 5  ;;  %v449_v34 = vor.u32 %v448_v24, %v445_v23 }
  0x32   : > { %1113 = vmatpush.bf16.msrb.mxu1 %v1945_v26 }
  0x33   : > { %1317 = vmatpush.bf16.msrb.mxu2 %v1953_v18  ;;  %v456_v18 = vshrl.u32 %v327_v6, 16  ;;  %v2327_v33 = vpack.c.b16 %v533_v22, %v531_v21  ;;  %v450_v39 = vrot.slane %v449_v34, 4  ;;  %v482_v6 = vrot.slane %v480_v56, 4 }
  0x34   : > { %1351 = vmatpush.bf16.msrb.mxu3 %v1961_v19  ;;  %v530_v19 = vunpack.c.l.b16 %v431_v11 }
  0x35   : > { %1080 = vmatpush.bf16.msrb.mxu0 %v1936_v35  ;;  %v458_v26 = vrot.slane %v456_v18, 4  ;;  %v455_v51 = vsel %vm2175_vm2, %v450_v39, %v454_v25  ;;  %v483_v15 = vor.u32 %v482_v6, %v478_v5 }
  0x36   : > { %1114 = vmatpush.bf16.msrb.mxu1 %v1944_v36  ;;  %v2325_v32 = vpack.c.b16 %v532_v20, %v530_v19  ;;  %v534_v57 = vunpack.c.l.b16 %v455_v51 }
  0x37   : > { %1318 = vmatpush.bf16.msrb.mxu2 %v1952_v27  ;;  %v1661_v27 = vld [vmem:[%s2132_s24 + $0x30] sm:$0xf]  ;;  %v459_v35 = vor.u32 %v458_v26, %v454_v25  ;;  %v484_v18 = vrot.slane %v483_v15, 4  ;;  %v1677_v26 = vld [vmem:[%s2132_s24 + $0x60] sm:$0xf] }
  0x38   : > { %1352 = vmatpush.bf16.msrb.mxu3 %v1960_v28  ;;  %v328_v28 = vld [vmem:[%s2132_s24 + $0x58] sm:$0x11] }
  0x39   : > { %1081 = vmatpush.bf16.msrb.mxu0 %v1935_v53  ;;  %v462_v36 = vshll.u32 %v328_v28, 16  ;;  %v460_v40 = vrot.slane %v459_v35, 4  ;;  %v467_v53 = vshrl.u32 %v329_v46, 16  ;;  %v1895_v28 = vld [vmem:[%s2132_s24 + $0x64] sm:$0xf] }
  0x3a   : > { %1115 = vmatpush.bf16.msrb.mxu1 %v1943_v54  ;;  %v470_v54 = vshll.u32 %v329_v46, 16 }
  0x3b   : > { %1319 = vmatpush.bf16.msrb.mxu2 %v1951_v37  ;;  %v2329_v37 = vor.u32 %v1892_v29, %v1661_v27  ;;  %v464_v41 = vrot.slane %v462_v36, 5  ;;  %v469_v3 = vrot.slane %v467_v53, 4  ;;  %v1896_v27 = vld [vmem:[%s2132_s24 + $0x64] sm:$0xf0]  ;;  %v1679_v29 = vld [vmem:[%s2132_s24 + $0x68] sm:$0xf0] }
  0x3c   : > { %1353 = vmatpush.bf16.msrb.mxu3 %v1959_v38  ;;  %671 = vmatmul.bf16.gmra.mxu0 %v2278_v60  ;;  %v2331_v38 = vor.u32 %v1891_v30, %v1663_v31  ;;  %v472_v4 = vrot.slane %v470_v54, 5  ;;  %v1678_v34 = vor.u32 %v1896_v27, %v1677_v26  ;;  %v1682_v35 = vor.u32 %v1895_v28, %v1679_v29 }
  0x3d   : > { %705 = vmatmul.bf16.gmra.mxu1 %v2280_v61  ;;  %1082 = vmatpush.bf16.msrb.mxu0 %v1934_v0  ;;  %v465_v52 = vsel %vm2175_vm2, %v460_v40, %v464_v41 }
  0x3e   : > { %885 = vmatmul.bf16.gmra.mxu2 %v2282_v62  ;;  %1116 = vmatpush.bf16.msrb.mxu1 %v1942_v1  ;;  %v537_v0 = vunpack.c.h.b16 %v465_v52  ;;  %v1669_v1 = vld [vmem:[%s2132_s24 + $0x48] sm:$0xf] }
  0x3f   : > { %1320 = vmatpush.bf16.msrb.mxu2 %v1950_v58  ;;  %919 = vmatmul.bf16.gmra.mxu3 %v2284_v63  ;;  %v536_v58 = vunpack.c.l.b16 %v465_v52  ;;  %v1670_v12 = vor.u32 %v1894_v2, %v1669_v1 }
  0x40   : > { %1354 = vmatpush.bf16.msrb.mxu3 %v1958_v59  ;;  %v535_v59 = vunpack.c.h.b16 %v455_v51 }
  0x41   : > { %1083 = vmatpush.bf16.msrb.mxu0 %v1933_v9  ;;  %v331_v9 = vld [vmem:[%s2132_s24 + $0x70] sm:$0x11] }
  0x42   : > { %1117 = vmatpush.bf16.msrb.mxu1 %v1941_v10  ;;  %v548_v10 = vpack.c.b16 %v536_v58, %v534_v57  ;;  %v549_v11 = vpack.c.b16 %v537_v0, %v535_v59  ;;  %v486_v16 = vshll.u32 %v331_v9, 16 }
  0x43   : > { %1321 = vmatpush.bf16.msrb.mxu2 %v1949_v7  ;;  %v1893_v7 = vld [vmem:[%s2132_s24 + $0x4c] sm:$0xf] }
  0x44   : > { %1355 = vmatpush.bf16.msrb.mxu3 %v1957_v8  ;;  %v1671_v8 = vld [vmem:[%s2132_s24 + $0x50] sm:$0xf0]  ;;  %v488_v19 = vrot.slane %v486_v16, 5  ;;  %s1886_s24 = sadd.s32 120, %s1992_s9 }
  0x45   : > { %1084 = vmatpush.bf16.msrb.mxu0 %v1932_v43  ;;  %s2387_s5 = scalar_lea.vmem %s2466_s1, %s1886_s24 }
  0x46   : > { %1118 = vmatpush.bf16.msrb.mxu1 %v1940_v44  ;;  %v489_v21 = vsel %vm2175_vm2, %v484_v18, %v488_v19  ;;  %v334_v40 = vld [vmem:[%s2387_s5 + $0x10] sm:$0x11]  ;;  %v1749_v0 = vld [vmem:[%s2387_s5] sm:$0xf]  ;;  %v1898_v1 = vld [vmem:[%s2387_s5 + $0x4] sm:$0xf0] }
  0x47   : > { %1322 = vmatpush.bf16.msrb.mxu2 %v1948_v13  ;;  %v1674_v13 = vor.u32 %v1893_v7, %v1671_v8  ;;  %v540_v23 = vunpack.c.l.b16 %v489_v21  ;;  %v541_v25 = vunpack.c.h.b16 %v489_v21  ;;  %v1176_v47 = vshll.u32 %v334_v40, 16  ;;  %v1897_v2 = vld [vmem:[%s2387_s5 + $0x4] sm:$0xf] }
  0x48   : > { %1356 = vmatpush.bf16.msrb.mxu3 %v1956_v14  ;;  %v473_v14 = vor.u32 %v472_v4, %v469_v3  ;;  %v1751_v3 = vld [vmem:[%s2387_s5 + $0x8] sm:$0xf0] }
  0x49   : > { %1085 = vmatpush.bf16.msrb.mxu0 %v1931_v49 }
  0x4a   : > { %1119 = vmatpush.bf16.msrb.mxu1 %v1939_v50  ;;  %v474_v17 = vrot.slane %v473_v14, 4  ;;  %v1178_v50 = vrot.slane %v1176_v47, 5 }
  0x4b   : > { %1323 = vmatpush.bf16.msrb.mxu2 %v1947_v45 }
  0x4c   : > { %676 = vmatmul.bf16.gmra.mxu0 %v2325_v32  ;;  %1357 = vmatpush.bf16.msrb.mxu3 %v1955_v48  ;;  %v479_v20 = vsel %vm2175_vm2, %v474_v17, %v478_v5 }
  0x4d   : > { %710 = vmatmul.bf16.gmra.mxu1 %v2327_v33  ;;  %v538_v22 = vunpack.c.l.b16 %v479_v20  ;;  %v539_v24 = vunpack.c.h.b16 %v479_v20 }
  0x4e   : > { %890 = vmatmul.bf16.gmra.mxu2 %v2329_v37 }
  0x4f   : > { %924 = vmatmul.bf16.gmra.mxu3 %v2331_v38  ;;  %v550_v30 = vpack.c.b16 %v540_v23, %v538_v22  ;;  %v551_v31 = vpack.c.b16 %v541_v25, %v539_v24 }
  0x5c   : > { %681 = vmatmul.bf16.gmra.mxu0 %v548_v10 }
  0x5d   : > { %715 = vmatmul.bf16.gmra.mxu1 %v549_v11 }
  0x5e   : > { %895 = vmatmul.bf16.gmra.mxu2 %v1670_v12 }
  0x5f   : > { %929 = vmatmul.bf16.gmra.mxu3 %v1674_v13 }
  0x6c   : > { %686 = vmatmul.bf16.gmra.mxu0 %v550_v30 }
  0x6d   : > { %720 = vmatmul.bf16.gmra.mxu1 %v551_v31 }
  0x6e   : > { %900 = vmatmul.bf16.gmra.mxu2 %v1678_v34 }
  0x6f   : > { %934 = vmatmul.bf16.gmra.mxu3 %v1682_v35 }
  0x7c   : > { %1086 = vmatmul.bf16.vlgmr.msrb.gmra.mxu0 %v2282_v62 }
  0x7d   : > { %1120 = vmatmul.bf16.vlgmr.msrb.gmra.mxu1 %v2284_v63 }
  0x7e   : > { %1324 = vmatmul.bf16.vlgmr.msrb.gmra.mxu2 %v2278_v60  ;;  %v332_v60 = vld [vmem:[%s2387_s5] sm:$0xff] }
  0x7f   : > { %1358 = vmatmul.bf16.vlgmr.msrb.gmra.mxu3 %v2280_v61  ;;  %v333_v61 = vld [vmem:[%s2387_s5 + $0x8] sm:$0xff]  ;;  %v1157_v62 = vshrl.u32 %v332_v60, 16  ;;  %v1160_v63 = vshll.u32 %v332_v60, 16 }
  0x81   : > { %v1159_v36 = vrot.slane %v1157_v62, 4 }
  0x8c   : > { %1091 = vmatmul.bf16.gmra.mxu0 %v2329_v37  ;;  %v1162_v37 = vrot.slane %v1160_v63, 5 }
  0x8d   : > { %1125 = vmatmul.bf16.gmra.mxu1 %v2331_v38 }
  0x8e   : > { %1329 = vmatmul.bf16.gmra.mxu2 %v2325_v32  ;;  %v1166_v32 = vshll.u32 %v333_v61, 16  ;;  %v1163_v45 = vor.u32 %v1162_v37, %v1159_v36 }
  0x8f   : > { %1363 = vmatmul.bf16.gmra.mxu3 %v2327_v33  ;;  %v1170_v33 = vshrl.u32 %v333_v61, 16 }
  0x90   : > { %v1168_v38 = vrot.slane %v1166_v32, 5  ;;  %v1164_v48 = vrot.slane %v1163_v45, 4 }
  0x91   : > { %v1172_v39 = vrot.slane %v1170_v33, 4 }
  0x92   : > { %v1169_v57 = vsel %vm2175_vm2, %v1164_v48, %v1168_v38 }
  0x93   : > { %v1173_v46 = vor.u32 %v1172_v39, %v1168_v38  ;;  %v1212_v4 = vunpack.c.l.b16 %v1169_v57  ;;  %v1213_v6 = vunpack.c.h.b16 %v1169_v57 }
  0x95   : > { %v1174_v49 = vrot.slane %v1173_v46, 4 }
  0x97   : > { %v1179_v58 = vsel %vm2175_vm2, %v1174_v49, %v1178_v50 }
  0x98   : > { %v1214_v5 = vunpack.c.l.b16 %v1179_v58  ;;  %v1215_v7 = vunpack.c.h.b16 %v1179_v58 }
  0x9a   : > { %v1216_v15 = vpack.c.b16 %v1214_v5, %v1212_v4  ;;  %v1217_v42 = vpack.c.b16 %v1215_v7, %v1213_v6 }
  0x9c   : > { %1096 = vmatmul.bf16.gmra.mxu0 %v1670_v12 }
  0x9d   : > { %1130 = vmatmul.bf16.gmra.mxu1 %v1674_v13 }
  0x9e   : > { %1334 = vmatmul.bf16.gmra.mxu2 %v548_v10  ;;  %v1750_v10 = vor.u32 %v1898_v1, %v1749_v0 }
  0x9f   : > { %1368 = vmatmul.bf16.gmra.mxu3 %v549_v11  ;;  %v1754_v11 = vor.u32 %v1897_v2, %v1751_v3 }
  0xa9   : > { %v667_v41 = vpop.f32.mrf.mxu0 }
  0xaa   : > { %v701_v43 = vpop.f32.mrf.mxu1 }
  0xab   : > { %v702_v44 = vadd.f32 %v701_v43, %v667_v41 }
  0xac   : > { %1101 = vmatmul.bf16.gmra.mxu0 %v1678_v34 }
  0xad   : > { %1135 = vmatmul.bf16.gmra.mxu1 %v1682_v35 }
  0xae   : > { %1339 = vmatmul.bf16.gmra.mxu2 %v550_v30 }
  0xaf   : > { %1373 = vmatmul.bf16.gmra.mxu3 %v551_v31 }
  0xb1   : > { %v881_v51 = vpop.f32.mrf.mxu2  ;;  %v669_v54 = vpop.f32.mrf.mxu0 }
  0xb2   : > { %v915_v52 = vpop.f32.mrf.mxu3  ;;  %v882_v53 = vadd.f32 %v881_v51, %v702_v44  ;;  %v703_v55 = vpop.f32.mrf.mxu1 }
  0xb3   : > { %v704_v56 = vadd.f32 %v703_v55, %v669_v54 }
  0xb4   : > { %v2396_v59 = vadd.f32 %v915_v52, %v882_v53 }
  0xb9   : > { %v883_v8 = vpop.f32.mrf.mxu2  ;;  %v672_v13 = vpop.f32.mrf.mxu0 }
  0xba   : > { %v917_v9 = vpop.f32.mrf.mxu3  ;;  %v884_v12 = vadd.f32 %v883_v8, %v704_v56  ;;  %v706_v14 = vpop.f32.mrf.mxu1 }
  0xbb   : > { %v707_v16 = vadd.f32 %v706_v14, %v672_v13 }
  0xbc   : > { %v2402_v17 = vadd.f32 %v917_v9, %v884_v12  ;;  %1106 = vmatmul.bf16.gmra.mxu0 %v1750_v10 }
  0xbd   : > { %1140 = vmatmul.bf16.gmra.mxu1 %v1754_v11 }
  0xbe   : > { %1344 = vmatmul.bf16.gmra.mxu2 %v1216_v15 }
  0xbf   : > { %1378 = vmatmul.bf16.gmra.mxu3 %v1217_v42 }
  0xc1   : > { %v886_v18 = vpop.f32.mrf.mxu2  ;;  %v674_v21 = vpop.f32.mrf.mxu0 }
  0xc2   : > { %v920_v19 = vpop.f32.mrf.mxu3  ;;  %v887_v20 = vadd.f32 %v886_v18, %v707_v16  ;;  %v708_v22 = vpop.f32.mrf.mxu1 }
  0xc3   : > { %v709_v23 = vadd.f32 %v708_v22, %v674_v21 }
  0xc4   : > { %v2404_v24 = vadd.f32 %v920_v19, %v887_v20  ;;  %v2424_v19 = vld [vmem:[%s2468_s3] ss:$0 sm:$0xff] }
  0xc9   : > { %v888_v25 = vpop.f32.mrf.mxu2  ;;  %v677_v28 = vpop.f32.mrf.mxu0 }
  0xca   : > { %v922_v26 = vpop.f32.mrf.mxu3  ;;  %v889_v27 = vadd.f32 %v888_v25, %v709_v23  ;;  %v711_v29 = vpop.f32.mrf.mxu1 }
  0xcb   : > { %v712_v30 = vadd.f32 %v711_v29, %v677_v28 }
  0xcc   : > { %v2406_v31 = vadd.f32 %v922_v26, %v889_v27 }
  0xd1   : > { %v891_v34 = vpop.f32.mrf.mxu2  ;;  %v679_v61 = vpop.f32.mrf.mxu0 }
  0xd2   : > { %v925_v35 = vpop.f32.mrf.mxu3  ;;  %v892_v60 = vadd.f32 %v891_v34, %v712_v30  ;;  %v713_v62 = vpop.f32.mrf.mxu1 }
  0xd3   : > { %v714_v63 = vadd.f32 %v713_v62, %v679_v61 }
  0xd4   : > { %v2408_v32 = vadd.f32 %v925_v35, %v892_v60 }
  0xd9   : > { %v893_v33 = vpop.f32.mrf.mxu2  ;;  %v682_v38 = vpop.f32.mrf.mxu0 }
  0xda   : > { %v927_v36 = vpop.f32.mrf.mxu3  ;;  %v894_v37 = vadd.f32 %v893_v33, %v714_v63  ;;  %v716_v39 = vpop.f32.mrf.mxu1 }
  0xdb   : > { %v717_v40 = vadd.f32 %v716_v39, %v682_v38 }
  0xdc   : > { %v2410_v41 = vadd.f32 %v927_v36, %v894_v37 }
  0xe1   : > { %v896_v43 = vpop.f32.mrf.mxu2  ;;  %v684_v46 = vpop.f32.mrf.mxu0 }
  0xe2   : > { %v930_v44 = vpop.f32.mrf.mxu3  ;;  %v897_v45 = vadd.f32 %v896_v43, %v717_v40  ;;  %v718_v47 = vpop.f32.mrf.mxu1 }
  0xe3   : > { %v719_v48 = vadd.f32 %v718_v47, %v684_v46 }
  0xe4   : > { %v2412_v49 = vadd.f32 %v930_v44, %v897_v45 }
  0xe9   : > { %v898_v50 = vpop.f32.mrf.mxu2  ;;  %v687_v53 = vpop.f32.mrf.mxu0 }
  0xea   : > { %v932_v51 = vpop.f32.mrf.mxu3  ;;  %v899_v52 = vadd.f32 %v898_v50, %v719_v48  ;;  %v721_v54 = vpop.f32.mrf.mxu1 }
  0xeb   : > { %v722_v55 = vadd.f32 %v721_v54, %v687_v53 }
  0xec   : > { %v2414_v56 = vadd.f32 %v932_v51, %v899_v52 }
  0xf1   : > { %v901_v57 = vpop.f32.mrf.mxu2  ;;  %v689_v1 = vpop.f32.mrf.mxu0 }
  0xf2   : > { %v935_v58 = vpop.f32.mrf.mxu3  ;;  %v902_v0 = vadd.f32 %v901_v57, %v722_v55  ;;  %v723_v2 = vpop.f32.mrf.mxu1 }
  0xf3   : > { %v724_v3 = vadd.f32 %v723_v2, %v689_v1 }
  0xf4   : > { %v2416_v4 = vadd.f32 %v935_v58, %v902_v0 }
  0xf9   : > { %v903_v5 = vpop.f32.mrf.mxu2  ;;  %v1087_v8 = vpop.f32.mrf.mxu0 }
  0xfa   : > { %v937_v6 = vpop.f32.mrf.mxu3  ;;  %v904_v7 = vadd.f32 %v903_v5, %v724_v3  ;;  %v1121_v9 = vpop.f32.mrf.mxu1 }
  0xfb   : > { %v1122_v11 = vadd.f32 %v1121_v9, %v1087_v8 }
  0xfc   : > { %v2418_v10 = vadd.f32 %v937_v6, %v904_v7 }
  0xfd   : > { %v1146_v16 = vadd.f32 %v1122_v11, %v2396_v59 }
 0x101   : > { %v1325_v12 = vpop.f32.mrf.mxu2  ;;  %v1089_v15 = vpop.f32.mrf.mxu0 }
 0x102   : > { %v1359_v13 = vpop.f32.mrf.mxu3  ;;  %v1123_v42 = vpop.f32.mrf.mxu1 }
 0x103   : > { %v1360_v14 = vadd.f32 %v1359_v13, %v1325_v12  ;;  %v1124_v20 = vadd.f32 %v1123_v42, %v1089_v15 }
 0x105   : > { %v1384_v18 = vadd.f32 %v1360_v14, %v1146_v16  ;;  %v1147_v25 = vadd.f32 %v1124_v20, %v2402_v17 }
 0x107   : > { %v1398_v23 = vadd.f32 %v2424_v19, %v1384_v18 }
 0x109   : > { %v1327_v21 = vpop.f32.mrf.mxu2  ;;  %v1092_v27 = vpop.f32.mrf.mxu0  ;;  %v1418_v30 = vmul.f32 0.2, %v1398_v23  ;;  %vm1408_vm3 = vcmp.gt.f32.partialorder %v1398_v23, 0.0 }
 0x10a   : > { %v1361_v22 = vpop.f32.mrf.mxu3  ;;  %v1126_v28 = vpop.f32.mrf.mxu1 }
 0x10b   : > { %v1362_v26 = vadd.f32 %v1361_v22, %v1327_v21  ;;  %v1127_v35 = vadd.f32 %v1126_v28, %v1092_v27  ;;  %v1428_v62 = vsel %vm1408_vm3, %v1398_v23, %v1418_v30 }
 0x10d   : > { %v1385_v29 = vadd.f32 %v1362_v26, %v1147_v25  ;;  %v1148_v38 = vadd.f32 %v1127_v35, %v2404_v24 }
 0x10f   : > { %v1399_v59 = vadd.f32 %v2424_v19, %v1385_v29 }
 0x111   : > { %vm1409_vm4 = vcmp.gt.f32.partialorder %v1399_v59, 0.0  ;;  %v1419_v34 = vmul.f32 0.2, %v1399_v59  ;;  %v1330_v60 = vpop.f32.mrf.mxu2  ;;  %v1094_v33 = vpop.f32.mrf.mxu0 }
 0x112   : > { %v1364_v61 = vpop.f32.mrf.mxu3  ;;  %v1128_v36 = vpop.f32.mrf.mxu1 }
 0x113   : > { %v1429_v17 = vsel %vm1409_vm4, %v1399_v59, %v1419_v34  ;;  %v1365_v63 = vadd.f32 %v1364_v61, %v1330_v60  ;;  %v1129_v40 = vadd.f32 %v1128_v36, %v1094_v33 }
 0x114   : > { %v1966_v37 = vpack.c.bf16 %v1429_v17, %v1428_v62 }
 0x115   : > { %v1386_v39 = vadd.f32 %v1365_v63, %v1148_v38  ;;  %v1149_v46 = vadd.f32 %v1129_v40, %v2406_v31 }
 0x116   : > { %1967 = vst [vmem:[%s2433_s11] sm:$0xff] %v1966_v37  }
 0x117   : > { %v1400_v45 = vadd.f32 %v2424_v19, %v1386_v39 }
 0x119   : > { %v1332_v43 = vpop.f32.mrf.mxu2  ;;  %v1097_v48 = vpop.f32.mrf.mxu0  ;;  %v1420_v52 = vmul.f32 0.2, %v1400_v45  ;;  %vm1410_vm5 = vcmp.gt.f32.partialorder %v1400_v45, 0.0 }
 0x11a   : > { %v1366_v44 = vpop.f32.mrf.mxu3  ;;  %v1131_v50 = vpop.f32.mrf.mxu1 }
 0x11b   : > { %v1367_v47 = vadd.f32 %v1366_v44, %v1332_v43  ;;  %v1132_v54 = vadd.f32 %v1131_v50, %v1097_v48  ;;  %v1430_v58 = vsel %vm1410_vm5, %v1400_v45, %v1420_v52 }
 0x11d   : > { %v1387_v51 = vadd.f32 %v1367_v47, %v1149_v46  ;;  %v1150_v5 = vadd.f32 %v1132_v54, %v2408_v32 }
 0x11f   : > { %v1401_v53 = vadd.f32 %v2424_v19, %v1387_v51 }
 0x121   : > { %vm1411_vm6 = vcmp.gt.f32.partialorder %v1401_v53, 0.0  ;;  %v1421_v24 = vmul.f32 0.2, %v1401_v53  ;;  %v1335_v55 = vpop.f32.mrf.mxu2  ;;  %v1099_v2 = vpop.f32.mrf.mxu0 }
 0x122   : > { %v1369_v57 = vpop.f32.mrf.mxu3  ;;  %v1133_v3 = vpop.f32.mrf.mxu1 }
 0x123   : > { %v1431_v0 = vsel %vm1411_vm6, %v1401_v53, %v1421_v24  ;;  %v1370_v1 = vadd.f32 %v1369_v57, %v1335_v55  ;;  %v1134_v7 = vadd.f32 %v1133_v3, %v1099_v2 }
 0x124   : > { %v1971_v31 = vpack.c.bf16 %v1431_v0, %v1430_v58 }
 0x125   : > { %v1388_v6 = vadd.f32 %v1370_v1, %v1150_v5  ;;  %v1151_v12 = vadd.f32 %v1134_v7, %v2410_v41 }
 0x126   : > { %1988 = vst [vmem:[%s2433_s11 + $0x8] sm:$0xff] %v1971_v31  }
 0x127   : > { %v1402_v11 = vadd.f32 %v2424_v19, %v1388_v6 }
 0x129   : > { %v1337_v8 = vpop.f32.mrf.mxu2  ;;  %v1102_v14 = vpop.f32.mrf.mxu0  ;;  %v1422_v16 = vmul.f32 0.2, %v1402_v11  ;;  %vm1412_vm7 = vcmp.gt.f32.partialorder %v1402_v11, 0.0 }
 0x12a   : > { %v1371_v9 = vpop.f32.mrf.mxu3  ;;  %v1136_v15 = vpop.f32.mrf.mxu1 }
 0x12b   : > { %v1372_v13 = vadd.f32 %v1371_v9, %v1337_v8  ;;  %v1137_v20 = vadd.f32 %v1136_v15, %v1102_v14  ;;  %v1432_v23 = vsel %vm1412_vm7, %v1402_v11, %v1422_v16 }
 0x12d   : > { %v1389_v42 = vadd.f32 %v1372_v13, %v1151_v12  ;;  %v1152_v29 = vadd.f32 %v1137_v20, %v2412_v49 }
 0x12f   : > { %v1403_v18 = vadd.f32 %v2424_v19, %v1389_v42 }
 0x131   : > { %vm1413_vm8 = vcmp.gt.f32.partialorder %v1403_v18, 0.0  ;;  %v1423_v32 = vmul.f32 0.2, %v1403_v18  ;;  %v1340_v21 = vpop.f32.mrf.mxu2  ;;  %v1104_v27 = vpop.f32.mrf.mxu0 }
 0x132   : > { %v1374_v22 = vpop.f32.mrf.mxu3  ;;  %v1138_v28 = vpop.f32.mrf.mxu1 }
 0x133   : > { %v1433_v25 = vsel %vm1413_vm8, %v1403_v18, %v1423_v32  ;;  %v1375_v26 = vadd.f32 %v1374_v22, %v1340_v21  ;;  %v1139_v59 = vadd.f32 %v1138_v28, %v1104_v27 }
 0x134   : > { %v1976_v41 = vpack.c.bf16 %v1433_v25, %v1432_v23 }
 0x135   : > { %v1390_v30 = vadd.f32 %v1375_v26, %v1152_v29  ;;  %v1153_v61 = vadd.f32 %v1139_v59, %v2414_v56 }
 0x136   : > { %1989 = vst [vmem:[%s2433_s11 + $0x10] sm:$0xff] %v1976_v41  }
 0x137   : > { %v1404_v60 = vadd.f32 %v2424_v19, %v1390_v30 }
 0x139   : > { %v1342_v34 = vpop.f32.mrf.mxu2  ;;  %v1107_v17 = vpop.f32.mrf.mxu0  ;;  %v1424_v36 = vmul.f32 0.2, %v1404_v60  ;;  %vm1414_vm9 = vcmp.gt.f32.partialorder %v1404_v60, 0.0 }
 0x13a   : > { %v1376_v35 = vpop.f32.mrf.mxu3  ;;  %v1141_v63 = vpop.f32.mrf.mxu1 }
 0x13b   : > { %v1377_v62 = vadd.f32 %v1376_v35, %v1342_v34  ;;  %v1142_v38 = vadd.f32 %v1141_v63, %v1107_v17  ;;  %v1434_v43 = vsel %vm1414_vm9, %v1404_v60, %v1424_v36 }
 0x13d   : > { %v1391_v33 = vadd.f32 %v1377_v62, %v1153_v61  ;;  %v1154_v45 = vadd.f32 %v1142_v38, %v2416_v4 }
 0x13f   : > { %v1405_v37 = vadd.f32 %v2424_v19, %v1391_v33 }
 0x141   : > { %vm1415_vm10 = vcmp.gt.f32.partialorder %v1405_v37, 0.0  ;;  %v1425_v49 = vmul.f32 0.2, %v1405_v37  ;;  %v1345_v39 = vpop.f32.mrf.mxu2  ;;  %v1109_v47 = vpop.f32.mrf.mxu0 }
 0x142   : > { %v1379_v40 = vpop.f32.mrf.mxu3  ;;  %v1143_v48 = vpop.f32.mrf.mxu1 }
 0x143   : > { %v1435_v44 = vsel %vm1415_vm10, %v1405_v37, %v1425_v49  ;;  %v1380_v46 = vadd.f32 %v1379_v40, %v1345_v39  ;;  %v1144_v52 = vadd.f32 %v1143_v48, %v1109_v47 }
 0x144   : > { %v1981_v56 = vpack.c.bf16 %v1435_v44, %v1434_v43 }
 0x145   : > { %v1392_v50 = vadd.f32 %v1380_v46, %v1154_v45  ;;  %v1155_v54 = vadd.f32 %v1144_v52, %v2418_v10 }
 0x146   : > { %1990 = vst [vmem:[%s2433_s11 + $0x18] sm:$0xff] %v1981_v56  }
 0x147   : > { %v1406_v51 = vadd.f32 %v2424_v19, %v1392_v50 }
 0x149   : > { %v1347_v53 = vpop.f32.mrf.mxu2  ;;  %v1426_v58 = vmul.f32 0.2, %v1406_v51  ;;  %vm1416_vm11 = vcmp.gt.f32.partialorder %v1406_v51, 0.0 }
 0x14a   : > { %v1381_v24 = vpop.f32.mrf.mxu3 }
 0x14b   : > { %v1382_v55 = vadd.f32 %v1381_v24, %v1347_v53  ;;  %v1436_v1 = vsel %vm1416_vm11, %v1406_v51, %v1426_v58 }
 0x14d   : > { %v1393_v57 = vadd.f32 %v1382_v55, %v1155_v54 }
 0x14f   : > { %v1407_v0 = vadd.f32 %v2424_v19, %v1393_v57 }
 0x151   : > { %vm1417_vm12 = vcmp.gt.f32.partialorder %v1407_v0, 0.0  ;;  %v1427_v4 = vmul.f32 0.2, %v1407_v0 }
 0x153   : > { %v1437_v2 = vsel %vm1417_vm12, %v1407_v0, %v1427_v4 }
 0x154   : > { %v1986_v3 = vpack.c.bf16 %v1437_v2, %v1436_v1 }
 0x156   : > { %1991 = vst [vmem:[%s2433_s11 + $0x20] sm:$0xff] %v1986_v3  }
 0x157 PF: > { %s14_s17 = sadd.s32 1, %s2043_s17   ;;  %s2472_s15 = smov %s2039_s16 }
 0x158   : > { %p11_p5 = scmp.ge.s32.totalorder %s14_s17, 4   ;;  %s2473_s16 = smov %s2475_s18 }
 0x15a   :  { %13 = sbr.rel (!%p11_p5) target bundleno = 2 (0x2), region = 69 }

// kernel: dis_forward.5
= control target key start
LH: loop header
LB: loop body
LE: loop exit
PB: predicated region body
PF: predicated region fallthrough
CT: control target
= control target key end

     0   :  { %s4764_s23 = smov 0   ;;  %s4766_s24 = smov 0   ;;  %s6855_s0 = inlined_call_operand.vmem [shape: bf16[2,4,17,512], index: 0, kind: input, shape index: {}, may-alias: {0,1}]   ;;  %s6856_s1 = inlined_call_operand.vmem [shape: bf16[2,4,17,512], index: 1, kind: input, shape index: {}, may-alias: {0,1}]   ;;  %s6857_s2 = inlined_call_operand.vmem [shape: bf16[2048,256], index: 2, kind: input, shape index: {}]   ;;  %s6858_s3 = inlined_call_operand.vmem [shape: f32[1,256], index: 3, kind: input, shape index: {}]   ;;  %s6859_s4 = inlined_call_operand.vmem [shape: f32[1,256], index: 4, kind: input, shape index: {}]   ;;  %s6860_s5 = inlined_call_operand.<no memory space> [shape: f32[1,1], index: 5, kind: input, shape index: {}]   ;;  %s6861_s6 = inlined_call_operand.vmem [shape: f32[2,1,48,1], index: 6, kind: output, shape index: {}]  }
   0x1   :  { %v11_v0 = vstv %s6860_s5  ;;  %s4768_s25 = smov 0  }
   0x2   :  { %12 = vst [vmem:[#allocation2] sm:$0x1] %v11_v0 }
   0x3 LB: > { %s30_s5 = sadd.s32 1, %s4720_s24  ;;  %p3306_p0 = scmp.ge.s32.totalorder %s4724_s25, 1  ;;  %s4724_s25 = sphi %s4768_s25, %s18_s25   ;;  %s4720_s24 = sphi %s4766_s24, %s6865_s24   ;;  %s4716_s23 = sphi %s4764_s23, %s6864_s23  }
   0x4   : > { %p32_p1 = scmp.ge.s32.totalorder %s30_s5, 2  ;;  %p272_p2 = scmp.lt.s32.totalorder %s4724_s25, 3 }
   0x6   : > { %s6867_s5 = smov (%p32_p1, %s30_s5), 0  ;;  %p273_p3 = pnand %p3306_p0, %p272_p2 }
   0x7   : > { %p335_p4 = scmp.lt.s32.totalorder (!%p273_p3), %s4716_s23, 1 }
   0x8   : > { %276 = sbr.rel (%p273_p3) target bundleno = 706 (0x2c2), region = 44 }
   0xd   : > { %v3368_v1 = vld [vmem:[%s6857_s2 + $0x270] sm:$0xf]  ;;  %v4497_v2 = vld [vmem:[%s6857_s2 + $0x274] sm:$0xf0]  ;;  %v3360_v12 = vld [vmem:[%s6857_s2 + $0x260] sm:$0xf] }
   0xe   : > { %v3432_v3 = vld [vmem:[%s6857_s2 + $0x2f0] sm:$0xf]  ;;  %v3369_v4 = vor.u32 %v4497_v2, %v3368_v1  ;;  %v4513_v5 = vld [vmem:[%s6857_s2 + $0x2f4] sm:$0xf0]  ;;  %v4495_v14 = vld [vmem:[%s6857_s2 + $0x264] sm:$0xf0] }
   0xf   : > { %v3496_v6 = vld [vmem:[%s6857_s2 + $0x370] sm:$0xf]  ;;  %v4529_v7 = vld [vmem:[%s6857_s2 + $0x374] sm:$0xf0]  ;;  %v3433_v8 = vor.u32 %v4513_v5, %v3432_v3  ;;  %v3424_v15 = vld [vmem:[%s6857_s2 + $0x2e0] sm:$0xf]  ;;  %v3361_v17 = vor.u32 %v4495_v14, %v3360_v12 }
  0x10   : > { %v3497_v9 = vor.u32 %v4529_v7, %v3496_v6  ;;  %v3560_v10 = vld [vmem:[%s6857_s2 + $0x3f0] sm:$0xf]  ;;  %v4545_v11 = vld [vmem:[%s6857_s2 + $0x3f4] sm:$0xf0]  ;;  %1040 = vmatpush.bf16.msra.mxu0 %v3369_v4  ;;  %v4511_v16 = vld [vmem:[%s6857_s2 + $0x2e4] sm:$0xf0] }
  0x11   : > { %v3561_v13 = vor.u32 %v4545_v11, %v3560_v10  ;;  %1064 = vmatpush.bf16.msra.mxu1 %v3433_v8  ;;  %v3425_v18 = vor.u32 %v4511_v16, %v3424_v15  ;;  %v3488_v19 = vld [vmem:[%s6857_s2 + $0x360] sm:$0xf]  ;;  %v4527_v20 = vld [vmem:[%s6857_s2 + $0x364] sm:$0xf0]  ;;  %v3352_v24 = vld [vmem:[%s6857_s2 + $0x250] sm:$0xf] }
  0x12   : > { %1088 = vmatpush.bf16.msra.mxu2 %v3497_v9  ;;  %v3552_v21 = vld [vmem:[%s6857_s2 + $0x3e0] sm:$0xf]  ;;  %v3489_v22 = vor.u32 %v4527_v20, %v3488_v19  ;;  %v4543_v23 = vld [vmem:[%s6857_s2 + $0x3e4] sm:$0xf0]  ;;  %v4493_v25 = vld [vmem:[%s6857_s2 + $0x254] sm:$0xf0] }
  0x13   : > { %1112 = vmatpush.bf16.msra.mxu3 %v3561_v13  ;;  %v3553_v26 = vor.u32 %v4543_v23, %v3552_v21  ;;  %v3416_v27 = vld [vmem:[%s6857_s2 + $0x2d0] sm:$0xf]  ;;  %v4509_v28 = vld [vmem:[%s6857_s2 + $0x2d4] sm:$0xf0]  ;;  %v3353_v30 = vor.u32 %v4493_v25, %v3352_v24  ;;  %v3344_v36 = vld [vmem:[%s6857_s2 + $0x240] sm:$0xf] }
  0x14   : > { %v3480_v29 = vld [vmem:[%s6857_s2 + $0x350] sm:$0xf]  ;;  %1041 = vmatpush.bf16.msra.mxu0 %v3361_v17  ;;  %v4525_v31 = vld [vmem:[%s6857_s2 + $0x354] sm:$0xf0]  ;;  %v3417_v34 = vor.u32 %v4509_v28, %v3416_v27  ;;  %v4491_v37 = vld [vmem:[%s6857_s2 + $0x244] sm:$0xf0] }
  0x15   : > { %v3544_v32 = vld [vmem:[%s6857_s2 + $0x3d0] sm:$0xf]  ;;  %v4541_v33 = vld [vmem:[%s6857_s2 + $0x3d4] sm:$0xf0]  ;;  %1065 = vmatpush.bf16.msra.mxu1 %v3425_v18  ;;  %v3481_v35 = vor.u32 %v4525_v31, %v3480_v29  ;;  %v3408_v38 = vld [vmem:[%s6857_s2 + $0x2c0] sm:$0xf]  ;;  %v3345_v45 = vor.u32 %v4491_v37, %v3344_v36 }
  0x16   : > { %1089 = vmatpush.bf16.msra.mxu2 %v3489_v22  ;;  %v3545_v39 = vor.u32 %v4541_v33, %v3544_v32  ;;  %v4507_v40 = vld [vmem:[%s6857_s2 + $0x2c4] sm:$0xf0]  ;;  %v3472_v41 = vld [vmem:[%s6857_s2 + $0x340] sm:$0xf]  ;;  %v3336_v48 = vld [vmem:[%s6857_s2 + $0x230] sm:$0xf] }
  0x17   : > { %1113 = vmatpush.bf16.msra.mxu3 %v3553_v26  ;;  %v4523_v42 = vld [vmem:[%s6857_s2 + $0x344] sm:$0xf0]  ;;  %v3536_v43 = vld [vmem:[%s6857_s2 + $0x3c0] sm:$0xf]  ;;  %v3409_v46 = vor.u32 %v4507_v40, %v3408_v38  ;;  %v4489_v49 = vld [vmem:[%s6857_s2 + $0x234] sm:$0xf0] }
  0x18   : > { %v4539_v44 = vld [vmem:[%s6857_s2 + $0x3c4] sm:$0xf0]  ;;  %1042 = vmatpush.bf16.msra.mxu0 %v3353_v30  ;;  %v3473_v47 = vor.u32 %v4523_v42, %v3472_v41  ;;  %v3400_v50 = vld [vmem:[%s6857_s2 + $0x2b0] sm:$0xf]  ;;  %v4505_v52 = vld [vmem:[%s6857_s2 + $0x2b4] sm:$0xf0]  ;;  %v3337_v57 = vor.u32 %v4489_v49, %v3336_v48 }
  0x19   : > { %1066 = vmatpush.bf16.msra.mxu1 %v3417_v34  ;;  %v3537_v51 = vor.u32 %v4539_v44, %v3536_v43  ;;  %v3464_v53 = vld [vmem:[%s6857_s2 + $0x330] sm:$0xf]  ;;  %v4521_v54 = vld [vmem:[%s6857_s2 + $0x334] sm:$0xf0]  ;;  %v3328_v58 = vld [vmem:[%s6857_s2 + $0x220] sm:$0xf]  ;;  %v3401_v59 = vor.u32 %v4505_v52, %v3400_v50 }
  0x1a   : > { %1090 = vmatpush.bf16.msra.mxu2 %v3481_v35  ;;  %v3528_v55 = vld [vmem:[%s6857_s2 + $0x3b0] sm:$0xf]  ;;  %v4537_v56 = vld [vmem:[%s6857_s2 + $0x3b4] sm:$0xf0]  ;;  %v3465_v60 = vor.u32 %v4521_v54, %v3464_v53  ;;  %v4487_v61 = vld [vmem:[%s6857_s2 + $0x224] sm:$0xf0] }
  0x1b   : > { %1114 = vmatpush.bf16.msra.mxu3 %v3545_v39  ;;  %v3392_v62 = vld [vmem:[%s6857_s2 + $0x2a0] sm:$0xf]  ;;  %v4503_v63 = vld [vmem:[%s6857_s2 + $0x2a4] sm:$0xf0]  ;;  %v3529_v0 = vor.u32 %v4537_v56, %v3528_v55  ;;  %v3320_v5 = vld [vmem:[%s6857_s2 + $0x210] sm:$0xf]  ;;  %v3329_v7 = vor.u32 %v4487_v61, %v3328_v58 }
  0x1c   : > { %1043 = vmatpush.bf16.msra.mxu0 %v3345_v45  ;;  %v3456_v1 = vld [vmem:[%s6857_s2 + $0x320] sm:$0xf]  ;;  %v4519_v2 = vld [vmem:[%s6857_s2 + $0x324] sm:$0xf0]  ;;  %v4485_v6 = vld [vmem:[%s6857_s2 + $0x214] sm:$0xf0]  ;;  %v3393_v11 = vor.u32 %v4503_v63, %v3392_v62 }
  0x1d   : > { %1067 = vmatpush.bf16.msra.mxu1 %v3409_v46  ;;  %v3520_v3 = vld [vmem:[%s6857_s2 + $0x3a0] sm:$0xf]  ;;  %v4535_v4 = vld [vmem:[%s6857_s2 + $0x3a4] sm:$0xf0]  ;;  %v3384_v8 = vld [vmem:[%s6857_s2 + $0x290] sm:$0xf]  ;;  %v3457_v12 = vor.u32 %v4519_v2, %v3456_v1  ;;  %v3321_v27 = vor.u32 %v4485_v6, %v3320_v5 }
  0x1e   : > { %1091 = vmatpush.bf16.msra.mxu2 %v3473_v47  ;;  %v4501_v9 = vld [vmem:[%s6857_s2 + $0x294] sm:$0xf0]  ;;  %v3448_v10 = vld [vmem:[%s6857_s2 + $0x310] sm:$0xf]  ;;  %v3521_v16 = vor.u32 %v4535_v4, %v3520_v3  ;;  %v4955_v17 = vld [vmem:[%s6857_s2 + $0x200] sm:$0xf] }
  0x1f   : > { %1115 = vmatpush.bf16.msra.mxu3 %v3537_v51  ;;  %v4517_v13 = vld [vmem:[%s6857_s2 + $0x314] sm:$0xf0]  ;;  %v3512_v14 = vld [vmem:[%s6857_s2 + $0x390] sm:$0xf]  ;;  %v4960_v18 = vld [vmem:[%s6857_s2 + $0x204] sm:$0xf0]  ;;  %v3385_v30 = vor.u32 %v4501_v9, %v3384_v8 }
  0x20   : > { %1044 = vmatpush.bf16.msra.mxu0 %v3337_v57  ;;  %v4533_v15 = vld [vmem:[%s6857_s2 + $0x394] sm:$0xf0]  ;;  %v4965_v19 = vld [vmem:[%s6857_s2 + $0x280] sm:$0xf]  ;;  %v4970_v20 = vld [vmem:[%s6857_s2 + $0x284] sm:$0xf0]  ;;  %v3449_v31 = vor.u32 %v4517_v13, %v3448_v10  ;;  %v3313_v38 = vor.u32 %v4960_v18, %v4955_v17 }
  0x21   : > { %1068 = vmatpush.bf16.msra.mxu1 %v3401_v59  ;;  %v4975_v21 = vld [vmem:[%s6857_s2 + $0x300] sm:$0xf]  ;;  %v4980_v22 = vld [vmem:[%s6857_s2 + $0x304] sm:$0xf0]  ;;  %vm461_vm0 = vsmask.f32 3328  ;;  %v3513_v35 = vor.u32 %v4533_v15, %v3512_v14  ;;  %v3377_v39 = vor.u32 %v4970_v20, %v4965_v19 }
  0x22   : > { %1092 = vmatpush.bf16.msra.mxu2 %v3465_v60  ;;  %v4985_v23 = vld [vmem:[%s6857_s2 + $0x380] sm:$0xf]  ;;  %v4990_v24 = vld [vmem:[%s6857_s2 + $0x384] sm:$0xf0]  ;;  %v4996_v25 = vld [vmem:[%s6857_s2 + $0x374] sm:$0xf]  ;;  %v3441_v40 = vor.u32 %v4980_v22, %v4975_v21 }
  0x23   : > { %1116 = vmatpush.bf16.msra.mxu3 %v3529_v0  ;;  %v5001_v26 = vld [vmem:[%s6857_s2 + $0x378] sm:$0xf0]  ;;  %s6869_s23 = smov (!%p335_p4, %s4716_s23), 1  ;;  %v5009_v28 = vld [vmem:[%s6857_s2 + $0x3f4] sm:$0xf]  ;;  %v3505_v41 = vor.u32 %v4990_v24, %v4985_v23  ;;  %vm3182_vm15 = vcmask 7168  }
  0x24   : > { %1045 = vmatpush.bf16.msra.mxu0 %v3329_v7  ;;  %v5014_v29 = vld [vmem:[%s6857_s2 + $0x3f8] sm:$0xf0]  ;;  %v5019_v32 = vld [vmem:[%s6857_s2 + $0x274] sm:$0xf]  ;;  %s4674_s18 = smul.u32 192, %s6869_s23  ;;  %v3501_v45 = vor.u32 %v4996_v25, %v5001_v26 }
  0x25   : > { %1069 = vmatpush.bf16.msra.mxu1 %v3393_v11  ;;  %v5024_v33 = vld [vmem:[%s6857_s2 + $0x278] sm:$0xf0]  ;;  %v5029_v34 = vld [vmem:[%s6857_s2 + $0x2f4] sm:$0xf]  ;;  %v5040_v37 = vld [vmem:[%s6857_s2 + $0x364] sm:$0xf]  ;;  %v3565_v46 = vor.u32 %v5009_v28, %v5014_v29 }
  0x26   : > { %1093 = vmatpush.bf16.msra.mxu2 %v3457_v12  ;;  %v5035_v36 = vld [vmem:[%s6857_s2 + $0x2f8] sm:$0xf0]  ;;  %v5053_v42 = vld [vmem:[%s6857_s2 + $0x368] sm:$0xf0]  ;;  %v5058_v43 = vld [vmem:[%s6857_s2 + $0x3e4] sm:$0xf]  ;;  %s5070_s10 = scalar_lea.vmem %s6855_s0, %s4674_s18  ;;  %v3373_v47 = vor.u32 %v5019_v32, %v5024_v33 }
  0x27   : > { %1117 = vmatpush.bf16.msra.mxu3 %v3521_v16  ;;  %v5063_v44 = vld [vmem:[%s6857_s2 + $0x3e8] sm:$0xf0]  ;;  %v3437_v48 = vor.u32 %v5029_v34, %v5035_v36  ;;  %v5083_v49 = vld [vmem:[%s6857_s2 + $0x264] sm:$0xf]  ;;  %v375_v52 = vld [vmem:[%s5070_s10 + $0x10] sm:$0xff]  ;;  %v3493_v54 = vor.u32 %v5040_v37, %v5053_v42  ;;  %s4401_s30 = sadd.s32 144, %s4674_s18 }
  0x28   : > { %1046 = vmatpush.bf16.msra.mxu0 %v3321_v27  ;;  %v5088_v50 = vld [vmem:[%s6857_s2 + $0x268] sm:$0xf0]  ;;  %v373_v51 = vld [vmem:[%s5070_s10] sm:$0xff]  ;;  %vm462_vm1 = vsmask.f32 7440  ;;  %v3557_v55 = vor.u32 %v5058_v43, %v5063_v44  ;;  %v474_v59 = vshll.u32 %v375_v52, 16  ;;  %s6224_s14 = scalar_lea.vmem %s6856_s1, %s4401_s30 }
  0x29   : > { %1070 = vmatpush.bf16.msra.mxu1 %v3385_v30  ;;  %v377_v53 = vld [vmem:[%s5070_s10 + $0x20] sm:$0x11]  ;;  %v3365_v56 = vor.u32 %v5083_v49, %v5088_v50  ;;  %v465_v57 = vshrl.u32 %v373_v51, 16  ;;  %v468_v58 = vshll.u32 %v373_v51, 16  ;;  %v492_v60 = vshrl.u32 %v375_v52, 16  ;;  %v374_v61 = vld [vmem:[%s5070_s10 + $0x8] sm:$0xff]  ;;  %vm5113_vm2 = vmor %vm461_vm0, %vm462_vm1 }
  0x2a   : > { %1094 = vmatpush.bf16.msra.mxu2 %v3449_v31  ;;  %v376_v62 = vld [vmem:[%s5070_s10 + $0x18] sm:$0xff]  ;;  %v4510_v63 = vld [vmem:[%s6857_s2 + $0x2e4] sm:$0xf]  ;;  %v498_v0 = vshll.u32 %v377_v53, 16  ;;  %v378_v1 = vld [vmem:[%s5070_s10 + $0x28] sm:$0x11] }
  0x2b   : > { %1118 = vmatpush.bf16.msra.mxu3 %v3513_v35  ;;  %v479_v2 = vshrl.u32 %v374_v61, 16  ;;  %v482_v3 = vshll.u32 %v374_v61, 16  ;;  %v488_v4 = vshll.u32 %v376_v62, 16  ;;  %v467_v5 = vrot.slane %v465_v57, 4  ;;  %v3426_v9 = vld [vmem:[%s6857_s2 + $0x2e8] sm:$0xf0] }
  0x2c   : > { %1047 = vmatpush.bf16.msra.mxu0 %v3313_v38  ;;  %v470_v6 = vrot.slane %v468_v58, 5  ;;  %v476_v7 = vrot.slane %v474_v59, 5  ;;  %v494_v8 = vrot.slane %v492_v60, 4  ;;  %v500_v10 = vrot.slane %v498_v0, 5  ;;  %v4524_v14 = vld [vmem:[%s6857_s2 + $0x354] sm:$0xf] }
  0x2d   : > { %1071 = vmatpush.bf16.msra.mxu1 %v3377_v39  ;;  %v481_v11 = vrot.slane %v479_v2, 4  ;;  %v484_v12 = vrot.slane %v482_v3, 5  ;;  %v490_v13 = vrot.slane %v488_v4, 5  ;;  %v502_v18 = vshrl.u32 %v376_v62, 16  ;;  %v3482_v20 = vld [vmem:[%s6857_s2 + $0x358] sm:$0xf0] }
  0x2e   : > { %1095 = vmatpush.bf16.msra.mxu2 %v3441_v40  ;;  %v471_v16 = vor.u32 %v470_v6, %v467_v5  ;;  %v495_v17 = vor.u32 %v494_v8, %v476_v7  ;;  %v508_v19 = vshll.u32 %v378_v1, 16  ;;  %v4540_v21 = vld [vmem:[%s6857_s2 + $0x3d4] sm:$0xf]  ;;  %v3429_v23 = vor.u32 %v4510_v63, %v3426_v9  ;;  %v3546_v25 = vld [vmem:[%s6857_s2 + $0x3d8] sm:$0xf0]  ;;  %v381_v27 = vld [vmem:[%s5070_s10 + $0x40] sm:$0xff] }
  0x2f   : > { %1119 = vmatpush.bf16.msra.mxu3 %v3505_v41  ;;  %v485_v22 = vor.u32 %v484_v12, %v481_v11  ;;  %v3485_v24 = vor.u32 %v4524_v14, %v3482_v20  ;;  %v379_v26 = vld [vmem:[%s5070_s10 + $0x30] sm:$0xff]  ;;  %v504_v30 = vrot.slane %v502_v18, 4  ;;  %v3549_v33 = vor.u32 %v4540_v21, %v3546_v25  ;;  %v380_v49 = vld [vmem:[%s5070_s10 + $0x38] sm:$0xff]  ;;  %v4522_v8 = vld [vmem:[%s6857_s2 + $0x344] sm:$0xf]  ;;  %s4675_s8 = smul.u32 48, %s6869_s23 }
  0x30   : > { %1136 = vmatpush.bf16.msrb.mxu0 %v3373_v47  ;;  %v472_v28 = vrot.slane %v471_v16, 4  ;;  %v496_v29 = vrot.slane %v495_v17, 4  ;;  %v510_v31 = vrot.slane %v508_v19, 5  ;;  %v513_v34 = vshrl.u32 %v379_v26, 16  ;;  %v384_v59 = vld [vmem:[%s5070_s10 + $0x58] sm:$0x11] }
  0x31   : > { %1160 = vmatpush.bf16.msrb.mxu1 %v3437_v48  ;;  %v486_v32 = vrot.slane %v485_v22, 4  ;;  %v516_v35 = vshll.u32 %v379_v26, 16  ;;  %v505_v38 = vor.u32 %v504_v30, %v490_v13  ;;  %v522_v39 = vshll.u32 %v381_v27, 16  ;;  %v4492_v0 = vld [vmem:[%s6857_s2 + $0x254] sm:$0xf] }
  0x32   : > { %1184 = vmatpush.bf16.msrb.mxu2 %v3501_v45  ;;  %v477_v36 = vsel %vm5113_vm2, %v472_v28, %v476_v7  ;;  %v501_v37 = vsel %vm5113_vm2, %v496_v29, %v500_v10  ;;  %v515_v47 = vrot.slane %v513_v34, 4  ;;  %v540_v58 = vshrl.u32 %v381_v27, 16  ;;  %v3354_v1 = vld [vmem:[%s6857_s2 + $0x258] sm:$0xf0]  ;;  %v4508_v2 = vld [vmem:[%s6857_s2 + $0x2d4] sm:$0xf] }
  0x33   : > { %1208 = vmatpush.bf16.msrb.mxu3 %v3565_v46  ;;  %v672_v40 = vunpack.c.l.b16 %v477_v36  ;;  %v676_v41 = vunpack.c.l.b16 %v501_v37  ;;  %v673_v42 = vunpack.c.h.b16 %v477_v36  ;;  %v677_v43 = vunpack.c.h.b16 %v501_v37  ;;  %v383_v46 = vld [vmem:[%s5070_s10 + $0x50] sm:$0x11]  ;;  %v3418_v3 = vld [vmem:[%s6857_s2 + $0x2d8] sm:$0xf0]  ;;  %v3474_v9 = vld [vmem:[%s6857_s2 + $0x348] sm:$0xf0] }
  0x34   : > { %1137 = vmatpush.bf16.msrb.mxu0 %v3365_v56  ;;  %v491_v44 = vsel %vm5113_vm2, %v486_v32, %v490_v13  ;;  %v506_v45 = vrot.slane %v505_v38, 4  ;;  %v518_v48 = vrot.slane %v516_v35, 5  ;;  %v524_v57 = vrot.slane %v522_v39, 5  ;;  %v4538_v10 = vld [vmem:[%s6857_s2 + $0x3c4] sm:$0xf] }
  0x35   : > { %1161 = vmatpush.bf16.msrb.mxu1 %v3429_v23  ;;  %v5136_v50 = vpack.c.b16 %v676_v41, %v672_v40  ;;  %v5138_v51 = vpack.c.b16 %v677_v43, %v673_v42  ;;  %v674_v52 = vunpack.c.l.b16 %v491_v44  ;;  %v675_v53 = vunpack.c.h.b16 %v491_v44  ;;  %v3538_v11 = vld [vmem:[%s6857_s2 + $0x3c8] sm:$0xf0]  ;;  %v4490_v17 = vld [vmem:[%s6857_s2 + $0x244] sm:$0xf]  ;;  %v4520_v25 = vld [vmem:[%s6857_s2 + $0x334] sm:$0xf] }
  0x36   : > { %1185 = vmatpush.bf16.msrb.mxu2 %v3493_v54  ;;  %v382_v54 = vld [vmem:[%s5070_s10 + $0x48] sm:$0xff]  ;;  %v519_v56 = vor.u32 %v518_v48, %v515_v47  ;;  %v546_v62 = vshll.u32 %v383_v46, 16  ;;  %v527_v63 = vshrl.u32 %v380_v49, 16  ;;  %v542_v5 = vrot.slane %v540_v58, 4  ;;  %v4506_v19 = vld [vmem:[%s6857_s2 + $0x2c4] sm:$0xf] }
  0x37   : > { %1209 = vmatpush.bf16.msrb.mxu3 %v3557_v55  ;;  %v511_v55 = vsel %vm5113_vm2, %v506_v45, %v510_v31  ;;  %1048 = vmatmul.bf16.vlgmr.msra.gmra.mxu0 %v5136_v50  ;;  %v530_v6 = vshll.u32 %v380_v49, 16  ;;  %v536_v7 = vshll.u32 %v382_v54, 16  ;;  %v3346_v18 = vld [vmem:[%s6857_s2 + $0x248] sm:$0xf0]  ;;  %v3466_v26 = vld [vmem:[%s6857_s2 + $0x338] sm:$0xf0]  ;;  %v3357_v35 = vor.u32 %v4492_v0, %v3354_v1 }
  0x38   : > { %1072 = vmatmul.bf16.vlgmr.msra.gmra.mxu1 %v5138_v51  ;;  %v678_v60 = vunpack.c.l.b16 %v511_v55  ;;  %v679_v61 = vunpack.c.h.b16 %v511_v55  ;;  %v520_v4 = vrot.slane %v519_v56, 4  ;;  %v548_v14 = vrot.slane %v546_v62, 5  ;;  %v3410_v20 = vld [vmem:[%s6857_s2 + $0x2c8] sm:$0xf0]  ;;  %v4536_v31 = vld [vmem:[%s6857_s2 + $0x3b4] sm:$0xf] }
  0x39   : > { %v529_v16 = vrot.slane %v527_v63, 4  ;;  %v543_v22 = vor.u32 %v542_v5, %v524_v57  ;;  %v532_v23 = vrot.slane %v530_v6, 5  ;;  %v550_v29 = vshrl.u32 %v382_v54, 16  ;;  %v3530_v32 = vld [vmem:[%s6857_s2 + $0x3b8] sm:$0xf0]  ;;  %1138 = vmatpush.bf16.msrb.mxu0 %v3357_v35  ;;  %v387_v62 = vld [vmem:[%s5070_s10 + $0x70] sm:$0xff] }
  0x3a   : > { %1186 = vmatpush.bf16.msrb.mxu2 %v3485_v24  ;;  %v5170_v12 = vpack.c.b16 %v678_v60, %v674_v52  ;;  %v5172_v13 = vpack.c.b16 %v679_v61, %v675_v53  ;;  %v525_v21 = vsel %vm5113_vm2, %v520_v4, %v524_v57  ;;  %v538_v24 = vrot.slane %v536_v7, 5  ;;  %v4488_v37 = vld [vmem:[%s6857_s2 + $0x234] sm:$0xf]  ;;  %v3338_v38 = vld [vmem:[%s6857_s2 + $0x238] sm:$0xf0]  ;;  %v385_v57 = vld [vmem:[%s5070_s10 + $0x60] sm:$0xff] }
  0x3b   : > { %1210 = vmatpush.bf16.msrb.mxu3 %v3549_v33  ;;  %v680_v27 = vunpack.c.l.b16 %v525_v21  ;;  %v681_v28 = vunpack.c.h.b16 %v525_v21  ;;  %v556_v30 = vshll.u32 %v384_v59, 16  ;;  %v544_v33 = vrot.slane %v543_v22, 4  ;;  %v4504_v43 = vld [vmem:[%s6857_s2 + $0x2b4] sm:$0xf]  ;;  %v3402_v44 = vld [vmem:[%s6857_s2 + $0x2b8] sm:$0xf0] }
  0x3c   : > { %1096 = vmatmul.bf16.vlgmr.msra.gmra.mxu2 %v5170_v12  ;;  %1120 = vmatmul.bf16.vlgmr.msra.gmra.mxu3 %v5172_v13  ;;  %v533_v34 = vor.u32 %v532_v23, %v529_v16  ;;  %v3421_v36 = vor.u32 %v4508_v2, %v3418_v3  ;;  %v552_v39 = vrot.slane %v550_v29, 4  ;;  %v3477_v41 = vor.u32 %v4522_v8, %v3474_v9  ;;  %v4518_v55 = vld [vmem:[%s6857_s2 + $0x324] sm:$0xf]  ;;  %v3458_v56 = vld [vmem:[%s6857_s2 + $0x328] sm:$0xf0]  ;;  %v388_v16 = vld [vmem:[%s5070_s10 + $0x78] sm:$0xff] }
  0x3d   : > { %v558_v40 = vrot.slane %v556_v30, 5  ;;  %v3541_v42 = vor.u32 %v4538_v10, %v3538_v11  ;;  %v549_v45 = vsel %vm5113_vm2, %v544_v33, %v548_v14  ;;  %v3349_v47 = vor.u32 %v4490_v17, %v3346_v18  ;;  %v389_v63 = vld [vmem:[%s5070_s10 + $0x80] sm:$0x11]  ;;  %v386_v8 = vld [vmem:[%s5070_s10 + $0x68] sm:$0xff] }
  0x3e   : > { %v534_v46 = vrot.slane %v533_v34, 4  ;;  %1162 = vmatpush.bf16.msrb.mxu1 %v3421_v36  ;;  %v3413_v48 = vor.u32 %v4506_v19, %v3410_v20  ;;  %v684_v49 = vunpack.c.l.b16 %v549_v45  ;;  %v685_v52 = vunpack.c.h.b16 %v549_v45  ;;  %1187 = vmatpush.bf16.msrb.mxu2 %v3477_v41  ;;  %v390_v17 = vld [vmem:[%s5070_s10 + $0x88] sm:$0x11]  ;;  %v4534_v18 = vld [vmem:[%s6857_s2 + $0x3a4] sm:$0xf] }
  0x3f   : > { %v553_v53 = vor.u32 %v552_v39, %v538_v24  ;;  %1211 = vmatpush.bf16.msrb.mxu3 %v3541_v42  ;;  %v3469_v54 = vor.u32 %v4520_v25, %v3466_v26  ;;  %v3533_v59 = vor.u32 %v4536_v31, %v3530_v32  ;;  %v3341_v60 = vor.u32 %v4488_v37, %v3338_v38  ;;  %v3522_v23 = vld [vmem:[%s6857_s2 + $0x3a8] sm:$0xf0]  ;;  %v4502_v34 = vld [vmem:[%s6857_s2 + $0x2a4] sm:$0xf]  ;;  %v3450_v41 = vld [vmem:[%s6857_s2 + $0x318] sm:$0xf0] }
  0x40   : > { %v539_v58 = vsel %vm5113_vm2, %v534_v46, %v538_v24  ;;  %v3405_v61 = vor.u32 %v4504_v43, %v3402_v44  ;;  %v5227_v0 = vpack.c.b16 %v684_v49, %v680_v27  ;;  %v5229_v1 = vpack.c.b16 %v685_v52, %v681_v28  ;;  %1139 = vmatpush.bf16.msrb.mxu0 %v3349_v47  ;;  %v4486_v24 = vld [vmem:[%s6857_s2 + $0x224] sm:$0xf]  ;;  %v3330_v29 = vld [vmem:[%s6857_s2 + $0x228] sm:$0xf0]  ;;  %v4532_v46 = vld [vmem:[%s6857_s2 + $0x394] sm:$0xf] }
  0x41   : > { %v554_v2 = vrot.slane %v553_v53, 4  ;;  %v682_v3 = vunpack.c.l.b16 %v539_v58  ;;  %v683_v4 = vunpack.c.h.b16 %v539_v58  ;;  %v3461_v5 = vor.u32 %v4518_v55, %v3458_v56  ;;  %v3394_v35 = vld [vmem:[%s6857_s2 + $0x2a8] sm:$0xf0]  ;;  %v3514_v47 = vld [vmem:[%s6857_s2 + $0x398] sm:$0xf0] }
  0x42   : > { %1163 = vmatpush.bf16.msrb.mxu1 %v3413_v48  ;;  %v561_v6 = vshrl.u32 %v385_v57, 16  ;;  %v564_v7 = vshll.u32 %v385_v57, 16  ;;  %1188 = vmatpush.bf16.msrb.mxu2 %v3469_v54  ;;  %v570_v10 = vshll.u32 %v387_v62, 16  ;;  %v588_v11 = vshrl.u32 %v387_v62, 16  ;;  %v4484_v48 = vld [vmem:[%s6857_s2 + $0x214] sm:$0xf] }
  0x43   : > { %v559_v9 = vsel %vm5113_vm2, %v554_v2, %v558_v40  ;;  %1212 = vmatpush.bf16.msrb.mxu3 %v3533_v59  ;;  %v594_v14 = vshll.u32 %v389_v63, 16  ;;  %v575_v28 = vshrl.u32 %v386_v8, 16  ;;  %v578_v33 = vshll.u32 %v386_v8, 16  ;;  %v4516_v40 = vld [vmem:[%s6857_s2 + $0x314] sm:$0xf] }
  0x44   : > { %v686_v19 = vunpack.c.l.b16 %v559_v9  ;;  %v687_v20 = vunpack.c.h.b16 %v559_v9  ;;  %v563_v21 = vrot.slane %v561_v6, 4  ;;  %v566_v22 = vrot.slane %v564_v7, 5  ;;  %1140 = vmatpush.bf16.msrb.mxu0 %v3341_v60  ;;  %v3322_v49 = vld [vmem:[%s6857_s2 + $0x218] sm:$0xf0]  ;;  %v4500_v52 = vld [vmem:[%s6857_s2 + $0x294] sm:$0xf] }
  0x45   : > { %v572_v25 = vrot.slane %v570_v10, 5  ;;  %v590_v26 = vrot.slane %v588_v11, 4  ;;  %v596_v27 = vrot.slane %v594_v14, 5  ;;  %v577_v37 = vrot.slane %v575_v28, 4  ;;  %v3386_v53 = vld [vmem:[%s6857_s2 + $0x298] sm:$0xf0] }
  0x46   : > { %v5248_v30 = vpack.c.b16 %v686_v19, %v682_v3  ;;  %v5250_v31 = vpack.c.b16 %v687_v20, %v683_v4  ;;  %1164 = vmatpush.bf16.msrb.mxu1 %v3405_v61  ;;  %v567_v32 = vor.u32 %v566_v22, %v563_v21  ;;  %v584_v38 = vshll.u32 %v388_v16, 16  ;;  %1189 = vmatpush.bf16.msrb.mxu2 %v3461_v5  ;;  %v4514_v58 = vld [vmem:[%s6857_s2 + $0x304] sm:$0xf]  ;;  %v3442_v62 = vld [vmem:[%s6857_s2 + $0x308] sm:$0xf0] }
  0x47   : > { %1053 = vmatmul.bf16.gmra.mxu0 %v5227_v0  ;;  %v591_v36 = vor.u32 %v590_v26, %v572_v25  ;;  %v598_v39 = vshrl.u32 %v388_v16, 16  ;;  %v580_v43 = vrot.slane %v578_v33, 5  ;;  %v604_v44 = vshll.u32 %v390_v17, 16  ;;  %v4530_v63 = vld [vmem:[%s6857_s2 + $0x384] sm:$0xf] }
  0x48   : > { %1077 = vmatmul.bf16.gmra.mxu1 %v5229_v1  ;;  %v568_v42 = vrot.slane %v567_v32, 4  ;;  %v3525_v45 = vor.u32 %v4534_v18, %v3522_v23  ;;  %v586_v55 = vrot.slane %v584_v38, 5  ;;  %v3333_v57 = vor.u32 %v4486_v24, %v3330_v29  ;;  %v3506_v2 = vld [vmem:[%s6857_s2 + $0x388] sm:$0xf0]  ;;  %v4482_v5 = vld [vmem:[%s6857_s2 + $0x204] sm:$0xf] }
  0x49   : > { %v592_v54 = vrot.slane %v591_v36, 4  ;;  %v600_v56 = vrot.slane %v598_v39, 4  ;;  %v581_v60 = vor.u32 %v580_v43, %v577_v37  ;;  %v3397_v61 = vor.u32 %v4502_v34, %v3394_v35  ;;  %v3314_v6 = vld [vmem:[%s6857_s2 + $0x208] sm:$0xf0]  ;;  %v4498_v7 = vld [vmem:[%s6857_s2 + $0x284] sm:$0xf] }
  0x4a   : > { %v573_v59 = vsel %vm5113_vm2, %v568_v42, %v572_v25  ;;  %1213 = vmatpush.bf16.msrb.mxu3 %v3525_v45  ;;  %v606_v10 = vrot.slane %v604_v44, 5  ;;  %1141 = vmatpush.bf16.msrb.mxu0 %v3333_v57  ;;  %v3453_v11 = vor.u32 %v4516_v40, %v3450_v41  ;;  %v3378_v14 = vld [vmem:[%s6857_s2 + $0x288] sm:$0xf0]  ;;  %v3800_v16 = vld [vmem:[%s6857_s2 + $0x170] sm:$0xf]  ;;  %v3517_v18 = vor.u32 %v4532_v46, %v3514_v47 }
  0x4b   : > { %v597_v3 = vsel %vm5113_vm2, %v592_v54, %v596_v27  ;;  %v601_v4 = vor.u32 %v600_v56, %v586_v55  ;;  %v688_v8 = vunpack.c.l.b16 %v573_v59  ;;  %v582_v9 = vrot.slane %v581_v60, 4  ;;  %1165 = vmatpush.bf16.msrb.mxu1 %v3397_v61  ;;  %v4465_v21 = vld [vmem:[%s6857_s2 + $0x174] sm:$0xf0]  ;;  %v3864_v22 = vld [vmem:[%s6857_s2 + $0x1f0] sm:$0xf] }
  0x4c   : > { %1101 = vmatmul.bf16.gmra.mxu2 %v5248_v30  ;;  %1125 = vmatmul.bf16.gmra.mxu3 %v5250_v31  ;;  %v3325_v19 = vor.u32 %v4484_v48, %v3322_v49  ;;  %v3389_v20 = vor.u32 %v4500_v52, %v3386_v53  ;;  %v692_v23 = vunpack.c.l.b16 %v597_v3  ;;  %v689_v24 = vunpack.c.h.b16 %v573_v59  ;;  %v4481_v27 = vld [vmem:[%s6857_s2 + $0x1f4] sm:$0xf0]  ;;  %v3672_v28 = vld [vmem:[%s6857_s2 + $0x70] sm:$0xf]  ;;  %v3792_v39 = vld [vmem:[%s6857_s2 + $0x160] sm:$0xf] }
  0x4d   : > { %v602_v17 = vrot.slane %v601_v4, 4  ;;  %v693_v25 = vunpack.c.h.b16 %v597_v3  ;;  %1190 = vmatpush.bf16.msrb.mxu2 %v3453_v11  ;;  %v3445_v26 = vor.u32 %v4514_v58, %v3442_v62  ;;  %v4433_v29 = vld [vmem:[%s6857_s2 + $0x74] sm:$0xf0]  ;;  %v587_v32 = vsel %vm5113_vm2, %v582_v9, %v586_v55  ;;  %v3736_v34 = vld [vmem:[%s6857_s2 + $0xf0] sm:$0xf] }
  0x4e   : > { %1214 = vmatpush.bf16.msrb.mxu3 %v3517_v18  ;;  %v3509_v33 = vor.u32 %v4530_v63, %v3506_v2  ;;  %v4449_v35 = vld [vmem:[%s6857_s2 + $0xf4] sm:$0xf0]  ;;  %1142 = vmatpush.bf16.msrb.mxu0 %v3325_v19  ;;  %v3317_v37 = vor.u32 %v4482_v5, %v3314_v6  ;;  %v3381_v38 = vor.u32 %v4498_v7, %v3378_v14  ;;  %v4463_v43 = vld [vmem:[%s6857_s2 + $0x164] sm:$0xf0]  ;;  %v3856_v44 = vld [vmem:[%s6857_s2 + $0x1e0] sm:$0xf]  ;;  %v690_v53 = vunpack.c.l.b16 %v587_v32 }
  0x4f   : > { %v607_v36 = vsel %vm5113_vm2, %v602_v17, %v606_v10  ;;  %1166 = vmatpush.bf16.msrb.mxu1 %v3389_v20  ;;  %v3801_v40 = vor.u32 %v4465_v21, %v3800_v16  ;;  %v3865_v41 = vor.u32 %v4481_v27, %v3864_v22  ;;  %v3673_v42 = vor.u32 %v4433_v29, %v3672_v28  ;;  %v4479_v45 = vld [vmem:[%s6857_s2 + $0x1e4] sm:$0xf0]  ;;  %v3664_v49 = vld [vmem:[%s6857_s2 + $0x60] sm:$0xf]  ;;  %v3784_v62 = vld [vmem:[%s6857_s2 + $0x150] sm:$0xf] }
  0x50   : > { %v5354_v46 = vpack.c.b16 %v692_v23, %v688_v8  ;;  %v5356_v47 = vpack.c.b16 %v693_v25, %v689_v24  ;;  %v3737_v48 = vor.u32 %v4449_v35, %v3736_v34  ;;  %v4431_v52 = vld [vmem:[%s6857_s2 + $0x64] sm:$0xf0]  ;;  %v694_v54 = vunpack.c.l.b16 %v607_v36  ;;  %v3728_v57 = vld [vmem:[%s6857_s2 + $0xe0] sm:$0xf]  ;;  %v4461_v63 = vld [vmem:[%s6857_s2 + $0x154] sm:$0xf0] }
  0x51   : > { %1191 = vmatpush.bf16.msrb.mxu2 %v3445_v26  ;;  %v691_v55 = vunpack.c.h.b16 %v587_v32  ;;  %v695_v56 = vunpack.c.h.b16 %v607_v36  ;;  %v4447_v58 = vld [vmem:[%s6857_s2 + $0xe4] sm:$0xf0]  ;;  %v3793_v59 = vor.u32 %v4463_v43, %v3792_v39  ;;  %v3857_v60 = vor.u32 %v4479_v45, %v3856_v44  ;;  %v3848_v3 = vld [vmem:[%s6857_s2 + $0x1d0] sm:$0xf]  ;;  %v4477_v4 = vld [vmem:[%s6857_s2 + $0x1d4] sm:$0xf0] }
  0x52   : > { %1215 = vmatpush.bf16.msrb.mxu3 %v3509_v33  ;;  %1143 = vmatpush.bf16.msrb.mxu0 %v3317_v37  ;;  %v3665_v61 = vor.u32 %v4431_v52, %v3664_v49  ;;  %v3729_v2 = vor.u32 %v4447_v58, %v3728_v57  ;;  %v5384_v5 = vpack.c.b16 %v694_v54, %v690_v53  ;;  %v3656_v9 = vld [vmem:[%s6857_s2 + $0x50] sm:$0xf]  ;;  %v4429_v10 = vld [vmem:[%s6857_s2 + $0x54] sm:$0xf0]  ;;  %v3776_v17 = vld [vmem:[%s6857_s2 + $0x140] sm:$0xf] }
  0x53   : > { %1167 = vmatpush.bf16.msrb.mxu1 %v3381_v38  ;;  %v5386_v6 = vpack.c.b16 %v695_v56, %v691_v55  ;;  %v3785_v7 = vor.u32 %v4461_v63, %v3784_v62  ;;  %v3849_v8 = vor.u32 %v4477_v4, %v3848_v3  ;;  %v3720_v11 = vld [vmem:[%s6857_s2 + $0xd0] sm:$0xf]  ;;  %v3657_v14 = vor.u32 %v4429_v10, %v3656_v9  ;;  %v4445_v16 = vld [vmem:[%s6857_s2 + $0xd4] sm:$0xf0]  ;;  %v4459_v18 = vld [vmem:[%s6857_s2 + $0x144] sm:$0xf0] }
  0x54   : > { %v3721_v19 = vor.u32 %v4445_v16, %v3720_v11  ;;  %v3777_v20 = vor.u32 %v4459_v18, %v3776_v17  ;;  %v3840_v21 = vld [vmem:[%s6857_s2 + $0x1c0] sm:$0xf]  ;;  %v4475_v22 = vld [vmem:[%s6857_s2 + $0x1c4] sm:$0xf0]  ;;  %v3768_v32 = vld [vmem:[%s6857_s2 + $0x130] sm:$0xf] }
  0x55   : > { %1660 = vmatpush.bf16.msra.mxu2 %v3801_v40  ;;  %v3648_v23 = vld [vmem:[%s6857_s2 + $0x40] sm:$0xf]  ;;  %v3841_v24 = vor.u32 %v4475_v22, %v3840_v21  ;;  %v4427_v25 = vld [vmem:[%s6857_s2 + $0x44] sm:$0xf0]  ;;  %v4457_v33 = vld [vmem:[%s6857_s2 + $0x134] sm:$0xf0] }
  0x56   : > { %1684 = vmatpush.bf16.msra.mxu3 %v3865_v41  ;;  %1612 = vmatpush.bf16.msra.mxu0 %v3673_v42  ;;  %v3712_v26 = vld [vmem:[%s6857_s2 + $0xc0] sm:$0xf]  ;;  %v4443_v27 = vld [vmem:[%s6857_s2 + $0xc4] sm:$0xf0]  ;;  %v3649_v28 = vor.u32 %v4427_v25, %v3648_v23  ;;  %v3832_v34 = vld [vmem:[%s6857_s2 + $0x1b0] sm:$0xf]  ;;  %v3769_v35 = vor.u32 %v4457_v33, %v3768_v32 }
  0x57   : > { %1636 = vmatpush.bf16.msra.mxu1 %v3737_v48  ;;  %1058 = vmatmul.bf16.gmra.mxu0 %v5354_v46  ;;  %v3713_v29 = vor.u32 %v4443_v27, %v3712_v26  ;;  %v4473_v36 = vld [vmem:[%s6857_s2 + $0x1b4] sm:$0xf0]  ;;  %v3640_v37 = vld [vmem:[%s6857_s2 + $0x30] sm:$0xf]  ;;  %v3760_v42 = vld [vmem:[%s6857_s2 + $0x120] sm:$0xf] }
  0x58   : > { %1082 = vmatmul.bf16.gmra.mxu1 %v5356_v47  ;;  %v4425_v38 = vld [vmem:[%s6857_s2 + $0x34] sm:$0xf0]  ;;  %v3833_v39 = vor.u32 %v4473_v36, %v3832_v34  ;;  %v3704_v40 = vld [vmem:[%s6857_s2 + $0xb0] sm:$0xf]  ;;  %v4455_v44 = vld [vmem:[%s6857_s2 + $0x124] sm:$0xf0] }
  0x59   : > { %1661 = vmatpush.bf16.msra.mxu2 %v3793_v59  ;;  %v4441_v41 = vld [vmem:[%s6857_s2 + $0xb4] sm:$0xf0]  ;;  %v3641_v43 = vor.u32 %v4425_v38, %v3640_v37  ;;  %v3761_v48 = vor.u32 %v4455_v44, %v3760_v42  ;;  %v3824_v49 = vld [vmem:[%s6857_s2 + $0x1a0] sm:$0xf]  ;;  %v4471_v52 = vld [vmem:[%s6857_s2 + $0x1a4] sm:$0xf0] }
  0x5a   : > { %1685 = vmatpush.bf16.msra.mxu3 %v3857_v60  ;;  %1613 = vmatpush.bf16.msra.mxu0 %v3665_v61  ;;  %v3705_v45 = vor.u32 %v4441_v41, %v3704_v40  ;;  %v3825_v53 = vor.u32 %v4471_v52, %v3824_v49  ;;  %v3752_v56 = vld [vmem:[%s6857_s2 + $0x110] sm:$0xf]  ;;  %v4453_v57 = vld [vmem:[%s6857_s2 + $0x114] sm:$0xf0]  ;;  %v4451_v9 = vld [vmem:[%s6857_s2 + $0x104] sm:$0xf0] }
  0x5b   : > { %1637 = vmatpush.bf16.msra.mxu1 %v3729_v2  ;;  %v3816_v58 = vld [vmem:[%s6857_s2 + $0x190] sm:$0xf]  ;;  %v3753_v59 = vor.u32 %v4453_v57, %v3752_v56  ;;  %v4469_v60 = vld [vmem:[%s6857_s2 + $0x194] sm:$0xf0]  ;;  %v3808_v10 = vld [vmem:[%s6857_s2 + $0x180] sm:$0xf] }
  0x5c   : > { %1106 = vmatmul.bf16.gmra.mxu2 %v5384_v5  ;;  %1130 = vmatmul.bf16.gmra.mxu3 %v5386_v6  ;;  %v3624_v61 = vld [vmem:[%s6857_s2 + $0x10] sm:$0xf]  ;;  %v4421_v62 = vld [vmem:[%s6857_s2 + $0x14] sm:$0xf0]  ;;  %v3817_v63 = vor.u32 %v4469_v60, %v3816_v58  ;;  %v4467_v11 = vld [vmem:[%s6857_s2 + $0x184] sm:$0xf0] }
  0x5d   : > { %1662 = vmatpush.bf16.msra.mxu2 %v3785_v7  ;;  %v3625_v2 = vor.u32 %v4421_v62, %v3624_v61  ;;  %v3688_v3 = vld [vmem:[%s6857_s2 + $0x90] sm:$0xf]  ;;  %v4437_v4 = vld [vmem:[%s6857_s2 + $0x94] sm:$0xf0]  ;;  %v3744_v7 = vld [vmem:[%s6857_s2 + $0x100] sm:$0xf] }
  0x5e   : > { %1686 = vmatpush.bf16.msra.mxu3 %v3849_v8  ;;  %1614 = vmatpush.bf16.msra.mxu0 %v3657_v14  ;;  %v3689_v8 = vor.u32 %v4437_v4, %v3688_v3  ;;  %v3745_v14 = vor.u32 %v4451_v9, %v3744_v7  ;;  %v3616_v16 = vld [vmem:[%s6857_s2] sm:$0xf]  ;;  %v4419_v17 = vld [vmem:[%s6857_s2 + $0x4] sm:$0xf0]  ;;  %v4464_v23 = vld [vmem:[%s6857_s2 + $0x174] sm:$0xf] }
  0x5f   : > { %1638 = vmatpush.bf16.msra.mxu1 %v3721_v19  ;;  %v3680_v18 = vld [vmem:[%s6857_s2 + $0x80] sm:$0xf]  ;;  %v3809_v19 = vor.u32 %v4467_v11, %v3808_v10  ;;  %v3617_v21 = vor.u32 %v4419_v17, %v3616_v16  ;;  %v4480_v25 = vld [vmem:[%s6857_s2 + $0x1f4] sm:$0xf]  ;;  %v3866_v27 = vld [vmem:[%s6857_s2 + $0x1f8] sm:$0xf0] }
  0x60   : > { %v3869_v32 = vor.u32 %v4480_v25, %v3866_v27  ;;  %v4448_v34 = vld [vmem:[%s6857_s2 + $0xf4] sm:$0xf]  ;;  %v4462_v36 = vld [vmem:[%s6857_s2 + $0x164] sm:$0xf]  ;;  %v3794_v38 = vld [vmem:[%s6857_s2 + $0x168] sm:$0xf0] }
  0x61   : > { %1663 = vmatpush.bf16.msra.mxu2 %v3777_v20  ;;  %v4435_v20 = vld [vmem:[%s6857_s2 + $0x84] sm:$0xf0]  ;;  %v3858_v40 = vld [vmem:[%s6857_s2 + $0x1e8] sm:$0xf0]  ;;  %v3797_v41 = vor.u32 %v4462_v36, %v3794_v38  ;;  %v4460_v52 = vld [vmem:[%s6857_s2 + $0x154] sm:$0xf] }
  0x62   : > { %1687 = vmatpush.bf16.msra.mxu3 %v3841_v24  ;;  %1615 = vmatpush.bf16.msra.mxu0 %v3649_v28  ;;  %v3681_v22 = vor.u32 %v4435_v20, %v3680_v18  ;;  %v3802_v24 = vld [vmem:[%s6857_s2 + $0x178] sm:$0xf0]  ;;  %v4432_v28 = vld [vmem:[%s6857_s2 + $0x74] sm:$0xf]  ;;  %v3666_v44 = vld [vmem:[%s6857_s2 + $0x68] sm:$0xf0] }
  0x63   : > { %1639 = vmatpush.bf16.msra.mxu1 %v3713_v29  ;;  %v3805_v26 = vor.u32 %v4464_v23, %v3802_v24  ;;  %v3674_v29 = vld [vmem:[%s6857_s2 + $0x78] sm:$0xf0]  ;;  %v3730_v49 = vld [vmem:[%s6857_s2 + $0xe8] sm:$0xf0]  ;;  %v4444_v57 = vld [vmem:[%s6857_s2 + $0xd4] sm:$0xf] }
  0x64   : > { %v3677_v33 = vor.u32 %v4432_v28, %v3674_v29  ;;  %v3658_v56 = vld [vmem:[%s6857_s2 + $0x58] sm:$0xf0]  ;;  %v4458_v60 = vld [vmem:[%s6857_s2 + $0x144] sm:$0xf]  ;;  %v3778_v61 = vld [vmem:[%s6857_s2 + $0x148] sm:$0xf0] }
  0x65   : > { %1664 = vmatpush.bf16.msra.mxu2 %v3769_v35  ;;  %v3738_v35 = vld [vmem:[%s6857_s2 + $0xf8] sm:$0xf0]  ;;  %v3842_v3 = vld [vmem:[%s6857_s2 + $0x1c8] sm:$0xf0]  ;;  %v4426_v4 = vld [vmem:[%s6857_s2 + $0x44] sm:$0xf] }
  0x66   : > { %1688 = vmatpush.bf16.msra.mxu3 %v3833_v39  ;;  %1616 = vmatpush.bf16.msra.mxu0 %v3641_v43  ;;  %v3741_v37 = vor.u32 %v4448_v34, %v3738_v35  ;;  %v4478_v39 = vld [vmem:[%s6857_s2 + $0x1e4] sm:$0xf]  ;;  %v3568_v7 = vld [vmem:[%s5070_s10] sm:$0xf]  ;;  %v3570_v10 = vld [vmem:[%s5070_s10 + $0x10] sm:$0xf0] }
  0x67   : > { %1144 = vmatmul.bf16.vlgmr.msrb.gmra.mxu0 %v5136_v50  ;;  %1640 = vmatpush.bf16.msra.mxu1 %v3705_v45  ;;  %v3632_v50 = vld [vmem:[%s6857_s2 + $0x20] sm:$0xf]  ;;  %v3861_v42 = vor.u32 %v4478_v39, %v3858_v40  ;;  %v4430_v43 = vld [vmem:[%s6857_s2 + $0x64] sm:$0xf]  ;;  %v3714_v17 = vld [vmem:[%s6857_s2 + $0xc8] sm:$0xf0] }
  0x68   : > { %1168 = vmatmul.bf16.vlgmr.msrb.gmra.mxu1 %v5138_v51  ;;  %v4423_v51 = vld [vmem:[%s6857_s2 + $0x24] sm:$0xf0]  ;;  %v4446_v45 = vld [vmem:[%s6857_s2 + $0xe4] sm:$0xf]  ;;  %v4456_v20 = vld [vmem:[%s6857_s2 + $0x134] sm:$0xf] }
  0x69   : > { %1665 = vmatpush.bf16.msra.mxu2 %v3761_v48  ;;  %v3633_v54 = vor.u32 %v4423_v51, %v3632_v50  ;;  %v3669_v48 = vor.u32 %v4430_v43, %v3666_v44  ;;  %v3786_v50 = vld [vmem:[%s6857_s2 + $0x158] sm:$0xf0]  ;;  %v4476_v51 = vld [vmem:[%s6857_s2 + $0x1d4] sm:$0xf]  ;;  %v4402_v9 = vld [vmem:[%s5070_s10 + $0x4] sm:$0xf] }
  0x6a   : > { %1689 = vmatpush.bf16.msra.mxu3 %v3825_v53  ;;  %v3733_v53 = vor.u32 %v4446_v45, %v3730_v49  ;;  %v4442_v16 = vld [vmem:[%s6857_s2 + $0xc4] sm:$0xf]  ;;  %v3834_v24 = vld [vmem:[%s6857_s2 + $0x1b8] sm:$0xf0]  ;;  %v4424_v25 = vld [vmem:[%s6857_s2 + $0x34] sm:$0xf]  ;;  %v5660_v34 = vor.u32 %v4402_v9, %v3570_v10 }
  0x6b   : > { %1617 = vmatpush.bf16.msra.mxu0 %v3633_v54  ;;  %v4440_v28 = vld [vmem:[%s6857_s2 + $0xb4] sm:$0xf]  ;;  %v3706_v29 = vld [vmem:[%s6857_s2 + $0xb8] sm:$0xf0]  ;;  %v3576_v35 = vld [vmem:[%s5070_s10 + $0x8] sm:$0xf] }
  0x6c   : > { %1192 = vmatmul.bf16.vlgmr.msrb.gmra.mxu2 %v5170_v12  ;;  %1216 = vmatmul.bf16.vlgmr.msrb.gmra.mxu3 %v5172_v13  ;;  %v3696_v12 = vld [vmem:[%s6857_s2 + $0xa0] sm:$0xf]  ;;  %v4439_v13 = vld [vmem:[%s6857_s2 + $0xa4] sm:$0xf0]  ;;  %v4405_v36 = vld [vmem:[%s5070_s10 + $0x14] sm:$0xf0]  ;;  %v3709_v39 = vor.u32 %v4440_v28, %v3706_v29 }
  0x6d   : > { %v3697_v55 = vor.u32 %v4439_v13, %v3696_v12  ;;  %1666 = vmatpush.bf16.msra.mxu2 %v3753_v59  ;;  %v3850_v12 = vld [vmem:[%s6857_s2 + $0x1d8] sm:$0xf0]  ;;  %v3789_v13 = vor.u32 %v4460_v52, %v3786_v50  ;;  %v4454_v40 = vld [vmem:[%s6857_s2 + $0x124] sm:$0xf]  ;;  %v5674_v43 = vor.u32 %v4405_v36, %v3576_v35  ;;  %v3634_v50 = vld [vmem:[%s6857_s2 + $0x28] sm:$0xf0] }
  0x6e   : > { %1690 = vmatpush.bf16.msra.mxu3 %v3817_v63  ;;  %v3853_v54 = vor.u32 %v4476_v51, %v3850_v12  ;;  %v3722_v59 = vld [vmem:[%s6857_s2 + $0xd8] sm:$0xf0]  ;;  %v3781_v63 = vor.u32 %v4458_v60, %v3778_v61  ;;  %v4470_v45 = vld [vmem:[%s6857_s2 + $0x1a4] sm:$0xf]  ;;  %v3698_v51 = vld [vmem:[%s6857_s2 + $0xa8] sm:$0xf0] }
  0x6f   : > { %1641 = vmatpush.bf16.msra.mxu1 %v3697_v55  ;;  %1618 = vmatpush.bf16.msra.mxu0 %v3625_v2  ;;  %v4428_v55 = vld [vmem:[%s6857_s2 + $0x54] sm:$0xf]  ;;  %v3725_v62 = vor.u32 %v4444_v57, %v3722_v59  ;;  %v4474_v2 = vld [vmem:[%s6857_s2 + $0x1c4] sm:$0xf]  ;;  %v3578_v38 = vld [vmem:[%s5070_s10 + $0x18] sm:$0xf0] }
  0x70   : > { %v3661_v58 = vor.u32 %v4428_v55, %v3658_v56  ;;  %v3845_v11 = vor.u32 %v4474_v2, %v3842_v3  ;;  %v4422_v49 = vld [vmem:[%s6857_s2 + $0x24] sm:$0xf]  ;;  %v4408_v55 = vld [vmem:[%s5070_s10 + $0x3c] sm:$0xf0]  ;;  %v4406_v56 = vld [vmem:[%s5070_s10 + $0x34] sm:$0xf] }
  0x71   : > { %1667 = vmatpush.bf16.msra.mxu2 %v3745_v14  ;;  %v3650_v14 = vld [vmem:[%s6857_s2 + $0x48] sm:$0xf0]  ;;  %v3637_v12 = vor.u32 %v4422_v49, %v3634_v50  ;;  %v3586_v57 = vld [vmem:[%s5070_s10 + $0x40] sm:$0xf0]  ;;  %v4409_v59 = vld [vmem:[%s5070_s10 + $0x44] sm:$0xf0] }
  0x72   : > { %1691 = vmatpush.bf16.msra.mxu3 %v3809_v19  ;;  %v3653_v18 = vor.u32 %v4426_v4, %v3650_v14  ;;  %v3717_v19 = vor.u32 %v4442_v16, %v3714_v17  ;;  %v4452_v60 = vld [vmem:[%s6857_s2 + $0x114] sm:$0xf]  ;;  %v3754_v61 = vld [vmem:[%s6857_s2 + $0x118] sm:$0xf0]  ;;  %v4450_v16 = vld [vmem:[%s6857_s2 + $0x104] sm:$0xf] }
  0x73   : > { %1642 = vmatpush.bf16.msra.mxu1 %v3689_v8  ;;  %1619 = vmatpush.bf16.msra.mxu0 %v3617_v21  ;;  %v4404_v8 = vld [vmem:[%s5070_s10 + $0xc] sm:$0xf0]  ;;  %v3770_v21 = vld [vmem:[%s6857_s2 + $0x138] sm:$0xf0]  ;;  %v4420_v3 = vld [vmem:[%s6857_s2 + $0x14] sm:$0xf] }
  0x74   : > { %v3773_v23 = vor.u32 %v4456_v20, %v3770_v21  ;;  %v3818_v2 = vld [vmem:[%s6857_s2 + $0x198] sm:$0xf0]  ;;  %v3746_v20 = vld [vmem:[%s6857_s2 + $0x108] sm:$0xf0]  ;;  %v4434_v28 = vld [vmem:[%s6857_s2 + $0x84] sm:$0xf] }
  0x75   : > { %1756 = vmatpush.bf16.msrb.mxu2 %v3805_v26  ;;  %v3642_v26 = vld [vmem:[%s6857_s2 + $0x38] sm:$0xf0]  ;;  %v3749_v21 = vor.u32 %v4450_v16, %v3746_v20  ;;  %v3682_v29 = vld [vmem:[%s6857_s2 + $0x88] sm:$0xf0]  ;;  %v4410_v49 = vld [vmem:[%s5070_s10 + $0x64] sm:$0xf] }
  0x76   : > { %1780 = vmatpush.bf16.msrb.mxu3 %v3869_v32  ;;  %v3645_v32 = vor.u32 %v4424_v25, %v3642_v26  ;;  %v3626_v4 = vld [vmem:[%s6857_s2 + $0x18] sm:$0xf0]  ;;  %v3685_v36 = vor.u32 %v4434_v28, %v3682_v29  ;;  %v3944_v50 = vld [vmem:[%s6857_s2 + $0x470] sm:$0xf]  ;;  %v4000_v16 = vld [vmem:[%s6857_s2 + $0x4e0] sm:$0xf] }
  0x77   : > { %1149 = vmatmul.bf16.gmra.mxu0 %v5227_v0  ;;  %1643 = vmatpush.bf16.msra.mxu1 %v3681_v22  ;;  %v4472_v22 = vld [vmem:[%s6857_s2 + $0x1b4] sm:$0xf]  ;;  %v3629_v10 = vor.u32 %v4420_v3, %v3626_v4  ;;  %v3690_v14 = vld [vmem:[%s6857_s2 + $0x98] sm:$0xf0]  ;;  %v4607_v3 = vld [vmem:[%s6857_s2 + $0x5e4] sm:$0xf0] }
  0x78   : > { %1173 = vmatmul.bf16.gmra.mxu1 %v5229_v1  ;;  %1708 = vmatpush.bf16.msrb.mxu0 %v3677_v33  ;;  %v3837_v27 = vor.u32 %v4472_v22, %v3834_v24  ;;  %v5658_v33 = vor.u32 %v4404_v8, %v3568_v7  ;;  %v5724_v8 = vor.u32 %v4406_v56, %v3586_v57  ;;  %v4407_v17 = vld [vmem:[%s5070_s10 + $0x3c] sm:$0xf]  ;;  %v4466_v22 = vld [vmem:[%s6857_s2 + $0x184] sm:$0xf]  ;;  %v4577_v57 = vld [vmem:[%s6857_s2 + $0x4f4] sm:$0xf0] }
  0x79   : > { %1757 = vmatpush.bf16.msrb.mxu2 %v3797_v41  ;;  %v3762_v41 = vld [vmem:[%s6857_s2 + $0x128] sm:$0xf0]  ;;  %v4418_v24 = vld [vmem:[%s6857_s2 + $0x4] sm:$0xf]  ;;  %v3936_v4 = vld [vmem:[%s6857_s2 + $0x460] sm:$0xf] }
  0x7a   : > { %1781 = vmatpush.bf16.msrb.mxu3 %v3861_v42  ;;  %v3765_v42 = vor.u32 %v4454_v40, %v3762_v41  ;;  %v4609_v41 = vld [vmem:[%s6857_s2 + $0x5f4] sm:$0xf0] }
  0x7b   : > { %1732 = vmatpush.bf16.msrb.mxu1 %v3741_v37  ;;  %v4403_v37 = vld [vmem:[%s5070_s10 + $0xc] sm:$0xf]  ;;  %v4605_v28 = vld [vmem:[%s6857_s2 + $0x5d4] sm:$0xf0] }
  0x7c   : > { %1197 = vmatmul.bf16.gmra.mxu2 %v5248_v30  ;;  %1221 = vmatmul.bf16.gmra.mxu3 %v5250_v31  ;;  %v5676_v44 = vor.u32 %v4403_v37, %v3578_v38  ;;  %v4072_v37 = vld [vmem:[%s6857_s2 + $0x570] sm:$0xf]  ;;  %v4593_v38 = vld [vmem:[%s6857_s2 + $0x574] sm:$0xf0] }
  0x7d   : > { %1709 = vmatpush.bf16.msrb.mxu0 %v3669_v48  ;;  %1758 = vmatpush.bf16.msrb.mxu2 %v3789_v13  ;;  %v3826_v48 = vld [vmem:[%s6857_s2 + $0x1a8] sm:$0xf0]  ;;  %v4073_v40 = vor.u32 %v4593_v38, %v4072_v37  ;;  %v3992_v37 = vld [vmem:[%s6857_s2 + $0x4d0] sm:$0xf] }
  0x7e   : > { %1782 = vmatpush.bf16.msrb.mxu3 %v3853_v54  ;;  %v3829_v52 = vor.u32 %v4470_v45, %v3826_v48  ;;  %v3584_v54 = vld [vmem:[%s5070_s10 + $0x30] sm:$0xf]  ;;  %v3600_v45 = vld [vmem:[%s5070_s10 + $0x60] sm:$0xf] }
  0x7f   : > { %1733 = vmatpush.bf16.msrb.mxu1 %v3733_v53  ;;  %v4438_v53 = vld [vmem:[%s6857_s2 + $0xa4] sm:$0xf]  ;;  %v5722_v7 = vor.u32 %v4408_v55, %v3584_v54  ;;  %v4412_v48 = vld [vmem:[%s5070_s10 + $0x6c] sm:$0xf0]  ;;  %v4411_v54 = vld [vmem:[%s5070_s10 + $0x6c] sm:$0xf] }
  0x80   : > { %v3701_v13 = vor.u32 %v4438_v53, %v3698_v51  ;;  %v4561_v53 = vld [vmem:[%s6857_s2 + $0x474] sm:$0xf0]  ;;  %v4008_v51 = vld [vmem:[%s6857_s2 + $0x4f0] sm:$0xf]  ;;  %v3610_v55 = vld [vmem:[%s5070_s10 + $0x78] sm:$0xf0] }
  0x81   : > { %1710 = vmatpush.bf16.msrb.mxu0 %v3661_v58  ;;  %1759 = vmatpush.bf16.msrb.mxu2 %v3781_v63  ;;  %v3592_v58 = vld [vmem:[%s5070_s10 + $0x38] sm:$0xf]  ;;  %v3757_v63 = vor.u32 %v4452_v60, %v3754_v61  ;;  %v3945_v56 = vor.u32 %v4561_v53, %v3944_v50  ;;  %v5804_v60 = vor.u32 %v4412_v48, %v3600_v45  ;;  %v4587_v45 = vld [vmem:[%s6857_s2 + $0x544] sm:$0xf0] }
  0x82   : > { %1783 = vmatpush.bf16.msrb.mxu3 %v3845_v11  ;;  %v4436_v11 = vld [vmem:[%s6857_s2 + $0x94] sm:$0xf]  ;;  %v5749_v25 = vor.u32 %v4409_v59, %v3592_v58  ;;  %v4064_v58 = vld [vmem:[%s6857_s2 + $0x560] sm:$0xf]  ;;  %v4591_v59 = vld [vmem:[%s6857_s2 + $0x564] sm:$0xf0] }
  0x83   : > { %1734 = vmatpush.bf16.msrb.mxu1 %v3725_v62  ;;  %v4468_v62 = vld [vmem:[%s6857_s2 + $0x194] sm:$0xf] }
  0x84   : > { %v3821_v9 = vor.u32 %v4468_v62, %v3818_v2  ;;  %v4009_v62 = vor.u32 %v4577_v57, %v4008_v51  ;;  %v4128_v2 = vld [vmem:[%s6857_s2 + $0x5e0] sm:$0xf]  ;;  %v4555_v57 = vld [vmem:[%s6857_s2 + $0x444] sm:$0xf0] }
  0x85   : > { %1711 = vmatpush.bf16.msrb.mxu0 %v3653_v18  ;;  %1760 = vmatpush.bf16.msrb.mxu2 %v3773_v23  ;;  %v3594_v18 = vld [vmem:[%s5070_s10 + $0x48] sm:$0xf0] }
  0x86   : > { %1784 = vmatpush.bf16.msrb.mxu3 %v3837_v27  ;;  %v3810_v23 = vld [vmem:[%s6857_s2 + $0x188] sm:$0xf0] }
  0x87   : > { %1154 = vmatmul.bf16.gmra.mxu0 %v5354_v46  ;;  %1735 = vmatpush.bf16.msrb.mxu1 %v3717_v19  ;;  %v3693_v19 = vor.u32 %v4436_v11, %v3690_v14  ;;  %v3813_v26 = vor.u32 %v4466_v22, %v3810_v23  ;;  %v3618_v27 = vld [vmem:[%s6857_s2 + $0x8] sm:$0xf0]  ;;  %v4129_v11 = vor.u32 %v4607_v3, %v4128_v2  ;;  %v4559_v14 = vld [vmem:[%s6857_s2 + $0x464] sm:$0xf0]  ;;  %v4056_v23 = vld [vmem:[%s6857_s2 + $0x550] sm:$0xf] }
  0x88   : > { %1178 = vmatmul.bf16.gmra.mxu1 %v5356_v47  ;;  %v3621_v35 = vor.u32 %v4418_v24, %v3618_v27  ;;  %v5830_v22 = vor.u32 %v4411_v54, %v3610_v55  ;;  %v4589_v24 = vld [vmem:[%s6857_s2 + $0x554] sm:$0xf0]  ;;  %v4603_v54 = vld [vmem:[%s6857_s2 + $0x5c4] sm:$0xf0]  ;;  %v3920_v55 = vld [vmem:[%s6857_s2 + $0x440] sm:$0xf] }
  0x89   : > { %1712 = vmatpush.bf16.msrb.mxu0 %v3645_v32  ;;  %1761 = vmatpush.bf16.msrb.mxu2 %v3765_v42  ;;  %v5762_v32 = vor.u32 %v4407_v17, %v3594_v18  ;;  %v4575_v17 = vld [vmem:[%s6857_s2 + $0x4e4] sm:$0xf0]  ;;  %v4057_v27 = vor.u32 %v4589_v24, %v4056_v23  ;;  %v4040_v2 = vld [vmem:[%s6857_s2 + $0x530] sm:$0xf]  ;;  %v4585_v3 = vld [vmem:[%s6857_s2 + $0x534] sm:$0xf0] }
  0x8a   : > { %1785 = vmatpush.bf16.msrb.mxu3 %v3829_v52  ;;  %v3602_v52 = vld [vmem:[%s5070_s10 + $0x70] sm:$0xf0]  ;;  %v4001_v20 = vor.u32 %v4575_v17, %v4000_v16  ;;  %v3912_v24 = vld [vmem:[%s6857_s2 + $0x430] sm:$0xf] }
  0x8b   : > { %1736 = vmatpush.bf16.msrb.mxu1 %v3709_v39  ;;  %v4136_v39 = vld [vmem:[%s6857_s2 + $0x5f0] sm:$0xf]  ;;  %v5806_v61 = vor.u32 %v4410_v49, %v3602_v52 }
  0x8c   : > { %1202 = vmatmul.bf16.gmra.mxu2 %v5384_v5  ;;  %1226 = vmatmul.bf16.gmra.mxu3 %v5386_v6  ;;  %v4137_v42 = vor.u32 %v4609_v41, %v4136_v39  ;;  %v4573_v41 = vld [vmem:[%s6857_s2 + $0x4d4] sm:$0xf0] }
  0x8d   : > { %1713 = vmatpush.bf16.msrb.mxu0 %v3637_v12  ;;  %1762 = vmatpush.bf16.msrb.mxu2 %v3757_v63  ;;  %v3608_v12 = vld [vmem:[%s5070_s10 + $0x68] sm:$0xf]  ;;  %v4065_v63 = vor.u32 %v4591_v59, %v4064_v58  ;;  %v3993_v49 = vor.u32 %v4573_v41, %v3992_v37  ;;  %v3984_v58 = vld [vmem:[%s6857_s2 + $0x4c0] sm:$0xf] }
  0x8e   : > { %1786 = vmatpush.bf16.msrb.mxu3 %v3821_v9  ;;  %v4571_v59 = vld [vmem:[%s6857_s2 + $0x4c4] sm:$0xf0]  ;;  %v4096_v37 = vld [vmem:[%s6857_s2 + $0x5a0] sm:$0xf] }
  0x8f   : > { %1737 = vmatpush.bf16.msrb.mxu1 %v3701_v13  ;;  %v4413_v13 = vld [vmem:[%s5070_s10 + $0x74] sm:$0xf0] }
  0x91   : > { %1714 = vmatpush.bf16.msrb.mxu0 %v3629_v10  ;;  %1763 = vmatpush.bf16.msrb.mxu2 %v3749_v21  ;;  %v5828_v21 = vor.u32 %v4413_v13, %v3608_v12  ;;  %v4112_v13 = vld [vmem:[%s6857_s2 + $0x5c0] sm:$0xf] }
  0x92   : > { %1787 = vmatpush.bf16.msrb.mxu3 %v3813_v26  ;;  %v4120_v26 = vld [vmem:[%s6857_s2 + $0x5d0] sm:$0xf] }
  0x93   : > { %1738 = vmatpush.bf16.msrb.mxu1 %v3693_v19  ;;  %v3937_v19 = vor.u32 %v4559_v14, %v3936_v4  ;;  %v4121_v29 = vor.u32 %v4605_v28, %v4120_v26  ;;  %v4104_v4 = vld [vmem:[%s6857_s2 + $0x5b0] sm:$0xf]  ;;  %v4601_v14 = vld [vmem:[%s6857_s2 + $0x5b4] sm:$0xf0] }
  0x94   : > { %v4105_v17 = vor.u32 %v4601_v14, %v4104_v4  ;;  %v4553_v26 = vld [vmem:[%s6857_s2 + $0x434] sm:$0xf0] }
  0x95   : > { %1715 = vmatpush.bf16.msrb.mxu0 %v3621_v35  ;;  %v3928_v35 = vld [vmem:[%s6857_s2 + $0x450] sm:$0xf]  ;;  %v3913_v28 = vor.u32 %v4553_v26, %v3912_v24  ;;  %v4565_v4 = vld [vmem:[%s6857_s2 + $0x494] sm:$0xf0]  ;;  %v3888_v24 = vld [vmem:[%s6857_s2 + $0x400] sm:$0xf] }
  0x97   : > { %1620 = vmatmul.bf16.vlgmr.msra.gmra.mxu0 %v5658_v33  ;;  %1739 = vmatpush.bf16.msrb.mxu1 %v3685_v36  ;;  %v4557_v36 = vld [vmem:[%s6857_s2 + $0x454] sm:$0xf0] }
  0x98   : > { %1644 = vmatmul.bf16.vlgmr.msra.gmra.mxu1 %v5660_v34 }
  0x99   : > { %2208 = vmatpush.bf16.msra.mxu0 %v3945_v56  ;;  %v4113_v56 = vor.u32 %v4603_v54, %v4112_v13  ;;  %v4024_v54 = vld [vmem:[%s6857_s2 + $0x510] sm:$0xf] }
  0x9b   : > { %2232 = vmatpush.bf16.msra.mxu1 %v4009_v62  ;;  %v3921_v62 = vor.u32 %v4555_v57, %v3920_v55  ;;  %v4581_v55 = vld [vmem:[%s6857_s2 + $0x514] sm:$0xf0] }
  0x9c   : > { %1668 = vmatmul.bf16.vlgmr.msra.gmra.mxu2 %v5674_v43  ;;  %1692 = vmatmul.bf16.vlgmr.msra.gmra.mxu3 %v5676_v44  ;;  %v4025_v57 = vor.u32 %v4581_v55, %v4024_v54  ;;  %v4560_v54 = vld [vmem:[%s6857_s2 + $0x474] sm:$0xf]  ;;  %v3946_v55 = vld [vmem:[%s6857_s2 + $0x478] sm:$0xf0] }
  0x9d   : > { %2256 = vmatpush.bf16.msra.mxu2 %v4073_v40  ;;  %2280 = vmatpush.bf16.msra.mxu3 %v4137_v42  ;;  %v3929_v40 = vor.u32 %v4557_v36, %v3928_v35  ;;  %v4048_v42 = vld [vmem:[%s6857_s2 + $0x540] sm:$0xf] }
  0x9e   : > { %2209 = vmatpush.bf16.msra.mxu0 %v3937_v19  ;;  %v4049_v52 = vor.u32 %v4587_v45, %v4048_v42  ;;  %v3968_v42 = vld [vmem:[%s6857_s2 + $0x4a0] sm:$0xf]  ;;  %v4567_v45 = vld [vmem:[%s6857_s2 + $0x4a4] sm:$0xf0] }
  0x9f   : > { %2233 = vmatpush.bf16.msra.mxu1 %v4001_v20 }
  0xa1   : > { %2257 = vmatpush.bf16.msra.mxu2 %v4065_v63  ;;  %2281 = vmatpush.bf16.msra.mxu3 %v4129_v11  ;;  %v3985_v63 = vor.u32 %v4571_v59, %v3984_v58  ;;  %v4041_v11 = vor.u32 %v4585_v3, %v4040_v2  ;;  %v4597_v58 = vld [vmem:[%s6857_s2 + $0x594] sm:$0xf0]  ;;  %v3896_v59 = vld [vmem:[%s6857_s2 + $0x410] sm:$0xf] }
  0xa2   : > { %2210 = vmatpush.bf16.msra.mxu0 %v3929_v40  ;;  %v3960_v3 = vld [vmem:[%s6857_s2 + $0x490] sm:$0xf] }
  0xa3   : > { %2234 = vmatpush.bf16.msra.mxu1 %v3993_v49  ;;  %v3961_v14 = vor.u32 %v4565_v4, %v3960_v3  ;;  %v4606_v3 = vld [vmem:[%s6857_s2 + $0x5e4] sm:$0xf]  ;;  %v4130_v4 = vld [vmem:[%s6857_s2 + $0x5e8] sm:$0xf0] }
  0xa5   : > { %2258 = vmatpush.bf16.msra.mxu2 %v4057_v27  ;;  %2282 = vmatpush.bf16.msra.mxu3 %v4121_v29  ;;  %v3976_v27 = vld [vmem:[%s6857_s2 + $0x4b0] sm:$0xf]  ;;  %v4583_v29 = vld [vmem:[%s6857_s2 + $0x524] sm:$0xf0] }
  0xa6   : > { %2211 = vmatpush.bf16.msra.mxu0 %v3921_v62  ;;  %v4549_v62 = vld [vmem:[%s6857_s2 + $0x414] sm:$0xf0] }
  0xa7   : > { %1625 = vmatmul.bf16.gmra.mxu0 %v5722_v7  ;;  %2235 = vmatpush.bf16.msra.mxu1 %v3985_v63  ;;  %v3897_v2 = vor.u32 %v4549_v62, %v3896_v59  ;;  %v4590_v59 = vld [vmem:[%s6857_s2 + $0x564] sm:$0xf]  ;;  %v4066_v62 = vld [vmem:[%s6857_s2 + $0x568] sm:$0xf0] }
  0xa8   : > { %1649 = vmatmul.bf16.gmra.mxu1 %v5724_v8 }
  0xa9   : > { %2259 = vmatpush.bf16.msra.mxu2 %v4049_v52  ;;  %2283 = vmatpush.bf16.msra.mxu3 %v4113_v56  ;;  %v3969_v52 = vor.u32 %v4567_v45, %v3968_v42  ;;  %v4088_v56 = vld [vmem:[%s6857_s2 + $0x590] sm:$0xf]  ;;  %v4138_v45 = vld [vmem:[%s6857_s2 + $0x5f8] sm:$0xf0] }
  0xaa   : > { %2212 = vmatpush.bf16.msra.mxu0 %v3913_v28  ;;  %v4089_v63 = vor.u32 %v4597_v58, %v4088_v56  ;;  %v4576_v56 = vld [vmem:[%s6857_s2 + $0x4f4] sm:$0xf]  ;;  %v4010_v58 = vld [vmem:[%s6857_s2 + $0x4f8] sm:$0xf0] }
  0xac   : > { %1673 = vmatmul.bf16.gmra.mxu2 %v5749_v25  ;;  %1697 = vmatmul.bf16.gmra.mxu3 %v5762_v32 }
  0xad   : > { %2260 = vmatpush.bf16.msra.mxu2 %v4041_v11  ;;  %2284 = vmatpush.bf16.msra.mxu3 %v4105_v17 }
  0xb4   : > { %v1049_v9 = vpop.f32.mrf.mxu0 }
  0xb5   : > { %v1073_v10 = vpop.f32.mrf.mxu1 }
  0xb6   : > { %v1074_v18 = vadd.f32 %v1073_v10, %v1049_v9 }
  0xb7   : > { %1630 = vmatmul.bf16.gmra.mxu0 %v5804_v60 }
  0xb8   : > { %1654 = vmatmul.bf16.gmra.mxu1 %v5806_v61 }
  0xbc   : > { %1678 = vmatmul.bf16.gmra.mxu2 %v5828_v21  ;;  %1702 = vmatmul.bf16.gmra.mxu3 %v5830_v22  ;;  %v1051_v38 = vpop.f32.mrf.mxu0 }
  0xbd   : > { %v1075_v39 = vpop.f32.mrf.mxu1 }
  0xbe   : > { %v1076_v48 = vadd.f32 %v1075_v39, %v1051_v38  ;;  %v4599_v38 = vld [vmem:[%s6857_s2 + $0x5a4] sm:$0xf0]  ;;  %v3904_v39 = vld [vmem:[%s6857_s2 + $0x420] sm:$0xf] }
  0xbf   : > { %v1097_v50 = vpop.f32.mrf.mxu2  ;;  %v1121_v53 = vpop.f32.mrf.mxu3 }
  0xc0   : > { %v1098_v51 = vadd.f32 %v1097_v50, %v1074_v18 }
  0xc2   : > { %v5864_v12 = vadd.f32 %v1121_v53, %v1098_v51 }
  0xc4   : > { %v1054_v9 = vpop.f32.mrf.mxu0 }
  0xc5   : > { %v1078_v10 = vpop.f32.mrf.mxu1 }
  0xc6   : > { %v1079_v16 = vadd.f32 %v1078_v10, %v1054_v9  ;;  %v4016_v9 = vld [vmem:[%s6857_s2 + $0x500] sm:$0xf] }
  0xc7   : > { %v1099_v18 = vpop.f32.mrf.mxu2  ;;  %v1123_v19 = vpop.f32.mrf.mxu3  ;;  %1716 = vmatmul.bf16.vlgmr.msrb.gmra.mxu0 %v5658_v33  ;;  %v4569_v33 = vld [vmem:[%s6857_s2 + $0x4b4] sm:$0xf0] }
  0xc8   : > { %v1100_v20 = vadd.f32 %v1099_v18, %v1076_v48  ;;  %1740 = vmatmul.bf16.vlgmr.msrb.gmra.mxu1 %v5660_v34  ;;  %v4032_v34 = vld [vmem:[%s6857_s2 + $0x520] sm:$0xf]  ;;  %v3977_v35 = vor.u32 %v4569_v33, %v3976_v27  ;;  %v4547_v33 = vld [vmem:[%s6857_s2 + $0x404] sm:$0xf0] }
  0xc9   : > { %v4033_v36 = vor.u32 %v4583_v29, %v4032_v34  ;;  %v3952_v34 = vld [vmem:[%s6857_s2 + $0x480] sm:$0xf]  ;;  %v4563_v29 = vld [vmem:[%s6857_s2 + $0x484] sm:$0xf0] }
  0xca   : > { %v5898_v23 = vadd.f32 %v1123_v19, %v1100_v20  ;;  %2236 = vmatpush.bf16.msra.mxu1 %v3977_v35  ;;  %v4080_v19 = vld [vmem:[%s6857_s2 + $0x580] sm:$0xf]  ;;  %v4595_v20 = vld [vmem:[%s6857_s2 + $0x584] sm:$0xf0] }
  0xcb   : > { %2261 = vmatpush.bf16.msra.mxu2 %v4033_v36  ;;  %v4081_v28 = vor.u32 %v4595_v20, %v4080_v19  ;;  %v3889_v36 = vor.u32 %v4547_v33, %v3888_v24 }
  0xcc   : > { %1764 = vmatmul.bf16.vlgmr.msrb.gmra.mxu2 %v5674_v43  ;;  %1788 = vmatmul.bf16.vlgmr.msrb.gmra.mxu3 %v5676_v44  ;;  %v1056_v40 = vpop.f32.mrf.mxu0  ;;  %v4097_v43 = vor.u32 %v4599_v38, %v4096_v37  ;;  %v4551_v44 = vld [vmem:[%s6857_s2 + $0x424] sm:$0xf0]  ;;  %v3953_v37 = vor.u32 %v4563_v29, %v3952_v34  ;;  %v4588_v34 = vld [vmem:[%s6857_s2 + $0x554] sm:$0xf]  ;;  %v4058_v29 = vld [vmem:[%s6857_s2 + $0x558] sm:$0xf0] }
  0xcd   : > { %v1080_v41 = vpop.f32.mrf.mxu1  ;;  %v3905_v49 = vor.u32 %v4551_v44, %v3904_v39  ;;  %v4592_v39 = vld [vmem:[%s6857_s2 + $0x574] sm:$0xf] }
  0xce   : > { %v1081_v48 = vadd.f32 %v1080_v41, %v1056_v40  ;;  %2285 = vmatpush.bf16.msra.mxu3 %v4097_v43  ;;  %2237 = vmatpush.bf16.msra.mxu1 %v3969_v52  ;;  %v4074_v40 = vld [vmem:[%s6857_s2 + $0x578] sm:$0xf0]  ;;  %v4608_v41 = vld [vmem:[%s6857_s2 + $0x5f4] sm:$0xf] }
  0xcf   : > { %v1102_v50 = vpop.f32.mrf.mxu2  ;;  %v1126_v53 = vpop.f32.mrf.mxu3  ;;  %2213 = vmatpush.bf16.msra.mxu0 %v3905_v49  ;;  %2262 = vmatpush.bf16.msra.mxu2 %v4025_v57  ;;  %v4077_v42 = vor.u32 %v4592_v39, %v4074_v40  ;;  %v4141_v49 = vor.u32 %v4608_v41, %v4138_v45  ;;  %v3949_v57 = vor.u32 %v4560_v54, %v3946_v55  ;;  %v4556_v40 = vld [vmem:[%s6857_s2 + $0x454] sm:$0xf]  ;;  %v3930_v41 = vld [vmem:[%s6857_s2 + $0x458] sm:$0xf0] }
  0xd0   : > { %v1103_v51 = vadd.f32 %v1102_v50, %v1079_v16  ;;  %v4579_v16 = vld [vmem:[%s6857_s2 + $0x504] sm:$0xf0]  ;;  %v3933_v45 = vor.u32 %v4556_v40, %v3930_v41  ;;  %v3978_v41 = vld [vmem:[%s6857_s2 + $0x4b8] sm:$0xf0] }
  0xd1   : > { %v4017_v18 = vor.u32 %v4579_v16, %v4016_v9  ;;  %v4558_v9 = vld [vmem:[%s6857_s2 + $0x464] sm:$0xf]  ;;  %v3938_v16 = vld [vmem:[%s6857_s2 + $0x468] sm:$0xf0] }
  0xd2   : > { %v5938_v13 = vadd.f32 %v1126_v53, %v1103_v51  ;;  %2286 = vmatpush.bf16.msra.mxu3 %v4089_v63  ;;  %2238 = vmatpush.bf16.msra.mxu1 %v3961_v14  ;;  %v4013_v63 = vor.u32 %v4576_v56, %v4010_v58  ;;  %v4133_v14 = vor.u32 %v4606_v3, %v4130_v4  ;;  %v3922_v3 = vld [vmem:[%s6857_s2 + $0x448] sm:$0xf0]  ;;  %v4570_v4 = vld [vmem:[%s6857_s2 + $0x4c4] sm:$0xf] }
  0xd3   : > { %2214 = vmatpush.bf16.msra.mxu0 %v3897_v2  ;;  %2263 = vmatpush.bf16.msra.mxu2 %v4017_v18  ;;  %v4069_v2 = vor.u32 %v4590_v59, %v4066_v62  ;;  %v4002_v18 = vld [vmem:[%s6857_s2 + $0x4e8] sm:$0xf0]  ;;  %v3941_v20 = vor.u32 %v4558_v9, %v3938_v16  ;;  %v4602_v59 = vld [vmem:[%s6857_s2 + $0x5c4] sm:$0xf]  ;;  %v4042_v16 = vld [vmem:[%s6857_s2 + $0x538] sm:$0xf0] }
  0xd4   : > { %v1059_v10 = vpop.f32.mrf.mxu0  ;;  %v4114_v62 = vld [vmem:[%s6857_s2 + $0x5c8] sm:$0xf0] }
  0xd5   : > { %v1083_v11 = vpop.f32.mrf.mxu1  ;;  %v3986_v9 = vld [vmem:[%s6857_s2 + $0x4c8] sm:$0xf0] }
  0xd6   : > { %v1084_v17 = vadd.f32 %v1083_v11, %v1059_v10  ;;  %2287 = vmatpush.bf16.msra.mxu3 %v4081_v28  ;;  %2239 = vmatpush.bf16.msra.mxu1 %v3953_v37  ;;  %v4122_v37 = vld [vmem:[%s6857_s2 + $0x5d8] sm:$0xf0] }
  0xd7   : > { %v1104_v26 = vpop.f32.mrf.mxu2  ;;  %v1128_v27 = vpop.f32.mrf.mxu3  ;;  %1721 = vmatmul.bf16.gmra.mxu0 %v5722_v7  ;;  %2352 = vmatpush.bf16.msrb.mxu2 %v4077_v42 }
  0xd8   : > { %v1105_v35 = vadd.f32 %v1104_v26, %v1081_v48  ;;  %1745 = vmatmul.bf16.gmra.mxu1 %v5724_v8  ;;  %2215 = vmatpush.bf16.msra.mxu0 %v3889_v36  ;;  %v4061_v36 = vor.u32 %v4588_v34, %v4058_v29 }
  0xda   : > { %v5990_v38 = vadd.f32 %v1128_v27, %v1105_v35  ;;  %2376 = vmatpush.bf16.msrb.mxu3 %v4141_v49  ;;  %2328 = vmatpush.bf16.msrb.mxu1 %v4013_v63  ;;  %v4604_v35 = vld [vmem:[%s6857_s2 + $0x5d4] sm:$0xf]  ;;  %v4586_v49 = vld [vmem:[%s6857_s2 + $0x544] sm:$0xf] }
  0xdb   : > { %2353 = vmatpush.bf16.msrb.mxu2 %v4069_v2  ;;  %v4125_v39 = vor.u32 %v4604_v35, %v4122_v37  ;;  %v4554_v63 = vld [vmem:[%s6857_s2 + $0x444] sm:$0xf]  ;;  %v4117_v2 = vor.u32 %v4602_v59, %v4114_v62  ;;  %v3914_v37 = vld [vmem:[%s6857_s2 + $0x438] sm:$0xf0] }
  0xdc   : > { %1769 = vmatmul.bf16.gmra.mxu2 %v5749_v25  ;;  %1793 = vmatmul.bf16.gmra.mxu3 %v5762_v32  ;;  %v1061_v43 = vpop.f32.mrf.mxu0 }
  0xdd   : > { %v1085_v44 = vpop.f32.mrf.mxu1  ;;  %2304 = vmatpush.bf16.msrb.mxu0 %v3949_v57 }
  0xde   : > { %v1086_v48 = vadd.f32 %v1085_v44, %v1061_v43  ;;  %2377 = vmatpush.bf16.msrb.mxu3 %v4133_v14  ;;  %v4572_v43 = vld [vmem:[%s6857_s2 + $0x4d4] sm:$0xf] }
  0xdf   : > { %v1107_v52 = vpop.f32.mrf.mxu2  ;;  %v1131_v50 = vpop.f32.mrf.mxu3  ;;  %2354 = vmatpush.bf16.msrb.mxu2 %v4061_v36  ;;  %v4584_v14 = vld [vmem:[%s6857_s2 + $0x534] sm:$0xf] }
  0xe0   : > { %v1108_v53 = vadd.f32 %v1107_v52, %v1084_v17  ;;  %v4574_v17 = vld [vmem:[%s6857_s2 + $0x4e4] sm:$0xf]  ;;  %v4050_v52 = vld [vmem:[%s6857_s2 + $0x548] sm:$0xf0]  ;;  %v4552_v36 = vld [vmem:[%s6857_s2 + $0x434] sm:$0xf] }
  0xe1   : > { %v4005_v24 = vor.u32 %v4574_v17, %v4002_v18  ;;  %2305 = vmatpush.bf16.msrb.mxu0 %v3941_v20  ;;  %v4053_v54 = vor.u32 %v4586_v49, %v4050_v52  ;;  %v4600_v17 = vld [vmem:[%s6857_s2 + $0x5b4] sm:$0xf]  ;;  %v4045_v20 = vor.u32 %v4584_v14, %v4042_v16  ;;  %v3917_v40 = vor.u32 %v4552_v36, %v3914_v37  ;;  %v4598_v52 = vld [vmem:[%s6857_s2 + $0x5a4] sm:$0xf]  ;;  %v4018_v37 = vld [vmem:[%s6857_s2 + $0x508] sm:$0xf0] }
  0xe2   : > { %v6006_v51 = vadd.f32 %v1131_v50, %v1108_v53  ;;  %2378 = vmatpush.bf16.msrb.mxu3 %v4125_v39  ;;  %v4568_v39 = vld [vmem:[%s6857_s2 + $0x4b4] sm:$0xf] }
  0xe3   : > { %2329 = vmatpush.bf16.msrb.mxu1 %v4005_v24  ;;  %2355 = vmatpush.bf16.msrb.mxu2 %v4053_v54  ;;  %v4106_v24 = vld [vmem:[%s6857_s2 + $0x5b8] sm:$0xf0]  ;;  %v4550_v54 = vld [vmem:[%s6857_s2 + $0x424] sm:$0xf]  ;;  %v4596_v14 = vld [vmem:[%s6857_s2 + $0x594] sm:$0xf] }
  0xe4   : > { %v1145_v10 = vpop.f32.mrf.mxu0 }
  0xe5   : > { %v1169_v11 = vpop.f32.mrf.mxu1  ;;  %2306 = vmatpush.bf16.msrb.mxu0 %v3933_v45 }
  0xe6   : > { %v1170_v19 = vadd.f32 %v1169_v11, %v1145_v10  ;;  %v3925_v10 = vor.u32 %v4554_v63, %v3922_v3  ;;  %v3989_v11 = vor.u32 %v4570_v4, %v3986_v9  ;;  %2379 = vmatpush.bf16.msrb.mxu3 %v4117_v2  ;;  %v4566_v63 = vld [vmem:[%s6857_s2 + $0x4a4] sm:$0xf]  ;;  %v3970_v2 = vld [vmem:[%s6857_s2 + $0x4a8] sm:$0xf0] }
  0xe7   : > { %v1109_v26 = vpop.f32.mrf.mxu2  ;;  %v1133_v27 = vpop.f32.mrf.mxu3  ;;  %1726 = vmatmul.bf16.gmra.mxu0 %v5804_v60  ;;  %2356 = vmatpush.bf16.msrb.mxu2 %v4045_v20  ;;  %v3973_v4 = vor.u32 %v4566_v63, %v3970_v2 }
  0xe8   : > { %v1110_v28 = vadd.f32 %v1109_v26, %v1086_v48  ;;  %1750 = vmatmul.bf16.gmra.mxu1 %v5806_v61  ;;  %v3994_v48 = vld [vmem:[%s6857_s2 + $0x4d8] sm:$0xf0] }
  0xe9   : > { %v3997_v53 = vor.u32 %v4572_v43, %v3994_v48  ;;  %2307 = vmatpush.bf16.msrb.mxu0 %v3925_v10  ;;  %v4582_v43 = vld [vmem:[%s6857_s2 + $0x524] sm:$0xf]  ;;  %v4580_v10 = vld [vmem:[%s6857_s2 + $0x514] sm:$0xf] }
  0xea   : > { %v6046_v33 = vadd.f32 %v1133_v27, %v1110_v28  ;;  %v4109_v27 = vor.u32 %v4600_v17, %v4106_v24  ;;  %v4090_v17 = vld [vmem:[%s6857_s2 + $0x598] sm:$0xf0] }
  0xeb   : > { %2330 = vmatpush.bf16.msrb.mxu1 %v3997_v53  ;;  %v4098_v53 = vld [vmem:[%s6857_s2 + $0x5a8] sm:$0xf0]  ;;  %v4093_v20 = vor.u32 %v4596_v14, %v4090_v17 }
  0xec   : > { %1774 = vmatmul.bf16.gmra.mxu2 %v5828_v21  ;;  %1798 = vmatmul.bf16.gmra.mxu3 %v5830_v22  ;;  %v1147_v44 = vpop.f32.mrf.mxu0  ;;  %v4101_v59 = vor.u32 %v4598_v52, %v4098_v53  ;;  %v4562_v52 = vld [vmem:[%s6857_s2 + $0x484] sm:$0xf]  ;;  %v3954_v53 = vld [vmem:[%s6857_s2 + $0x488] sm:$0xf0] }
  0xed   : > { %v1171_v42 = vpop.f32.mrf.mxu1  ;;  %2380 = vmatpush.bf16.msrb.mxu3 %v4109_v27  ;;  %2308 = vmatpush.bf16.msrb.mxu0 %v3917_v40  ;;  %v3962_v27 = vld [vmem:[%s6857_s2 + $0x498] sm:$0xf0] }
  0xee   : > { %v1172_v50 = vadd.f32 %v1171_v42, %v1147_v44  ;;  %v4034_v44 = vld [vmem:[%s6857_s2 + $0x528] sm:$0xf0]  ;;  %v3981_v42 = vor.u32 %v4568_v39, %v3978_v41  ;;  %v4594_v41 = vld [vmem:[%s6857_s2 + $0x584] sm:$0xf] }
  0xef   : > { %v1193_v55 = vpop.f32.mrf.mxu2  ;;  %v1217_v56 = vpop.f32.mrf.mxu3  ;;  %2331 = vmatpush.bf16.msrb.mxu1 %v3989_v11  ;;  %v4037_v45 = vor.u32 %v4582_v43, %v4034_v44  ;;  %v4026_v11 = vld [vmem:[%s6857_s2 + $0x518] sm:$0xf0]  ;;  %v4082_v43 = vld [vmem:[%s6857_s2 + $0x588] sm:$0xf0]  ;;  %v4546_v44 = vld [vmem:[%s6857_s2 + $0x404] sm:$0xf] }
  0xf0   : > { %v1194_v57 = vadd.f32 %v1193_v55, %v1170_v19  ;;  %v3906_v55 = vld [vmem:[%s6857_s2 + $0x428] sm:$0xf0]  ;;  %v4029_v16 = vor.u32 %v4580_v10, %v4026_v11 }
  0xf1   : > { %2357 = vmatpush.bf16.msrb.mxu2 %v4037_v45  ;;  %v3909_v62 = vor.u32 %v4550_v54, %v3906_v55  ;;  %2381 = vmatpush.bf16.msrb.mxu3 %v4101_v59  ;;  %v4657_v59 = vld [vmem:[%s6857_s2 + $0x774] sm:$0xf0] }
  0xf2   : > { %v6080_v58 = vadd.f32 %v1217_v56, %v1194_v57 }
  0xf3   : > { %2332 = vmatpush.bf16.msrb.mxu1 %v3981_v42  ;;  %2309 = vmatpush.bf16.msrb.mxu0 %v3909_v62  ;;  %v4392_v62 = vld [vmem:[%s6857_s2 + $0x7f0] sm:$0xf] }
  0xf4   : > { %v1150_v18 = vpop.f32.mrf.mxu0 }
  0xf5   : > { %v1174_v19 = vpop.f32.mrf.mxu1  ;;  %2358 = vmatpush.bf16.msrb.mxu2 %v4029_v16  ;;  %2382 = vmatpush.bf16.msrb.mxu3 %v4093_v20  ;;  %v4414_v20 = vld [vmem:[%s6224_s14 + $0x4] sm:$0xf] }
  0xf6   : > { %v1175_v26 = vadd.f32 %v1174_v19, %v1150_v18  ;;  %v4548_v18 = vld [vmem:[%s6857_s2 + $0x414] sm:$0xf]  ;;  %v3898_v19 = vld [vmem:[%s6857_s2 + $0x418] sm:$0xf0] }
  0xf7   : > { %v1195_v28 = vpop.f32.mrf.mxu2  ;;  %v1219_v34 = vpop.f32.mrf.mxu3  ;;  %2216 = vmatmul.bf16.vlgmr.msra.gmra.mxu0 %v5722_v7  ;;  %2333 = vmatpush.bf16.msrb.mxu1 %v3973_v4  ;;  %v3901_v24 = vor.u32 %v4548_v18, %v3898_v19  ;;  %v4673_v4 = vld [vmem:[%s6857_s2 + $0x7f4] sm:$0xf0]  ;;  %v3872_v18 = vld [vmem:[%s6224_s14] sm:$0xf]  ;;  %v4416_v19 = vld [vmem:[%s6224_s14 + $0xc] sm:$0xf0] }
  0xf8   : > { %v1196_v29 = vadd.f32 %v1195_v28, %v1172_v50  ;;  %2240 = vmatmul.bf16.vlgmr.msra.gmra.mxu1 %v5724_v8  ;;  %v4578_v28 = vld [vmem:[%s6857_s2 + $0x504] sm:$0xf]  ;;  %v4393_v11 = vor.u32 %v4673_v4, %v4392_v62  ;;  %v4256_v62 = vld [vmem:[%s6857_s2 + $0x6e0] sm:$0xf] }
  0xf9   : > { %2310 = vmatpush.bf16.msrb.mxu0 %v3901_v24  ;;  %v4021_v40 = vor.u32 %v4578_v28, %v4018_v37  ;;  %v3874_v24 = vld [vmem:[%s6224_s14 + $0x10] sm:$0xf0]  ;;  %v4417_v28 = vld [vmem:[%s6224_s14 + $0x14] sm:$0xf0]  ;;  %v4415_v37 = vld [vmem:[%s6224_s14 + $0xc] sm:$0xf] }
  0xfa   : > { %v6114_v35 = vadd.f32 %v1219_v34, %v1196_v29 }
  0xfb   : > { %2359 = vmatpush.bf16.msrb.mxu2 %v4021_v40 }
  0xfc   : > { %2264 = vmatmul.bf16.vlgmr.msra.gmra.mxu2 %v5749_v25  ;;  %2288 = vmatmul.bf16.vlgmr.msra.gmra.mxu3 %v5762_v32  ;;  %v1152_v48 = vpop.f32.mrf.mxu0 }
  0xfd   : > { %v1176_v49 = vpop.f32.mrf.mxu1 }
  0xfe   : > { %v1177_v50 = vadd.f32 %v1176_v49, %v1152_v48  ;;  %v4085_v48 = vor.u32 %v4594_v41, %v4082_v43  ;;  %v3890_v49 = vld [vmem:[%s6857_s2 + $0x408] sm:$0xf0]  ;;  %v4641_v41 = vld [vmem:[%s6857_s2 + $0x6f4] sm:$0xf0]  ;;  %v4320_v43 = vld [vmem:[%s6857_s2 + $0x760] sm:$0xf] }
  0xff   : > { %v1198_v56 = vpop.f32.mrf.mxu2  ;;  %v1222_v57 = vpop.f32.mrf.mxu3  ;;  %v3893_v55 = vor.u32 %v4546_v44, %v3890_v49  ;;  %v4655_v44 = vld [vmem:[%s6857_s2 + $0x764] sm:$0xf0] }
 0x100   : > { %v1199_v3 = vadd.f32 %v1198_v56, %v1175_v26  ;;  %v4564_v26 = vld [vmem:[%s6857_s2 + $0x494] sm:$0xf]  ;;  %v3957_v56 = vor.u32 %v4562_v52, %v3954_v53  ;;  %2383 = vmatpush.bf16.msrb.mxu3 %v4085_v48  ;;  %v4321_v49 = vor.u32 %v4655_v44, %v4320_v43  ;;  %v4384_v52 = vld [vmem:[%s6857_s2 + $0x7e0] sm:$0xf]  ;;  %v4671_v53 = vld [vmem:[%s6857_s2 + $0x7e4] sm:$0xf0] }
 0x101   : > { %v3965_v36 = vor.u32 %v4564_v26, %v3962_v27  ;;  %2311 = vmatpush.bf16.msrb.mxu0 %v3893_v55  ;;  %v3880_v27 = vld [vmem:[%s6224_s14 + $0x8] sm:$0xf]  ;;  %v4637_v43 = vld [vmem:[%s6857_s2 + $0x6d4] sm:$0xf0]  ;;  %v4304_v44 = vld [vmem:[%s6857_s2 + $0x740] sm:$0xf] }
 0x102   : > { %v6154_v9 = vadd.f32 %v1222_v57, %v1199_v3 }
 0x103   : > { %2334 = vmatpush.bf16.msrb.mxu1 %v3965_v36  ;;  %v4264_v36 = vld [vmem:[%s6857_s2 + $0x6f0] sm:$0xf] }
 0x104   : > { %v1155_v34 = vpop.f32.mrf.mxu0  ;;  %2932 = vmatpush.bf16.msra.mxu3 %v4393_v11  ;;  %v4265_v48 = vor.u32 %v4641_v41, %v4264_v36  ;;  %v4621_v36 = vld [vmem:[%s6857_s2 + $0x654] sm:$0xf0] }
 0x105   : > { %v1179_v29 = vpop.f32.mrf.mxu1 }
 0x106   : > { %v1180_v39 = vadd.f32 %v1179_v29, %v1155_v34  ;;  %v4200_v34 = vld [vmem:[%s6857_s2 + $0x670] sm:$0xf]  ;;  %v4625_v29 = vld [vmem:[%s6857_s2 + $0x674] sm:$0xf0] }
 0x107   : > { %v1200_v42 = vpop.f32.mrf.mxu2  ;;  %v1224_v45 = vpop.f32.mrf.mxu3  ;;  %2221 = vmatmul.bf16.gmra.mxu0 %v5804_v60  ;;  %2335 = vmatpush.bf16.msrb.mxu1 %v3957_v56  ;;  %v4201_v40 = vor.u32 %v4625_v29, %v4200_v34  ;;  %v4184_v29 = vld [vmem:[%s6857_s2 + $0x650] sm:$0xf] }
 0x108   : > { %v1201_v54 = vadd.f32 %v1200_v42, %v1177_v50  ;;  %2245 = vmatmul.bf16.gmra.mxu1 %v5806_v61  ;;  %v4328_v50 = vld [vmem:[%s6857_s2 + $0x770] sm:$0xf]  ;;  %v6257_v42 = vor.u32 %v4416_v19, %v3872_v18  ;;  %v4185_v41 = vor.u32 %v4621_v36, %v4184_v29 }
 0x109   : > { %v4329_v3 = vor.u32 %v4657_v59, %v4328_v50  ;;  %2860 = vmatpush.bf16.msra.mxu0 %v4201_v40  ;;  %v4385_v50 = vor.u32 %v4671_v53, %v4384_v52  ;;  %v4623_v59 = vld [vmem:[%s6857_s2 + $0x664] sm:$0xf0] }
 0x10a   : > { %v6206_v57 = vadd.f32 %v1224_v45, %v1201_v54  ;;  %v6259_v45 = vor.u32 %v4414_v20, %v3874_v24  ;;  %v4192_v54 = vld [vmem:[%s6857_s2 + $0x660] sm:$0xf]  ;;  %v4653_v24 = vld [vmem:[%s6857_s2 + $0x754] sm:$0xf0] }
 0x10b   : > { %2908 = vmatpush.bf16.msra.mxu2 %v4329_v3  ;;  %2884 = vmatpush.bf16.msra.mxu1 %v4265_v48  ;;  %v4193_v3 = vor.u32 %v4623_v59, %v4192_v54  ;;  %v4651_v48 = vld [vmem:[%s6857_s2 + $0x744] sm:$0xf0] }
 0x10c   : > { %2269 = vmatmul.bf16.gmra.mxu2 %v5828_v21  ;;  %2293 = vmatmul.bf16.gmra.mxu3 %v5830_v22  ;;  %v1157_v63 = vpop.f32.mrf.mxu0  ;;  %v4305_v53 = vor.u32 %v4651_v48, %v4304_v44  ;;  %v4168_v44 = vld [vmem:[%s6857_s2 + $0x630] sm:$0xf] }
 0x10d   : > { %v1181_v2 = vpop.f32.mrf.mxu1  ;;  %2933 = vmatpush.bf16.msra.mxu3 %v4385_v50  ;;  %2861 = vmatpush.bf16.msra.mxu0 %v4193_v3  ;;  %v4619_v3 = vld [vmem:[%s6857_s2 + $0x644] sm:$0xf0]  ;;  %v4232_v48 = vld [vmem:[%s6857_s2 + $0x6b0] sm:$0xf] }
 0x10e   : > { %v1182_v10 = vadd.f32 %v1181_v2, %v1157_v63  ;;  %v4639_v63 = vld [vmem:[%s6857_s2 + $0x6e4] sm:$0xf0] }
 0x10f   : > { %v1203_v14 = vpop.f32.mrf.mxu2  ;;  %v1227_v16 = vpop.f32.mrf.mxu3  ;;  %2909 = vmatpush.bf16.msra.mxu2 %v4321_v49  ;;  %v4257_v4 = vor.u32 %v4639_v63, %v4256_v62  ;;  %v4368_v62 = vld [vmem:[%s6857_s2 + $0x7c0] sm:$0xf] }
 0x110   : > { %v1204_v17 = vadd.f32 %v1203_v14, %v1180_v39  ;;  %v3882_v39 = vld [vmem:[%s6224_s14 + $0x18] sm:$0xf0]  ;;  %v4176_v63 = vld [vmem:[%s6857_s2 + $0x640] sm:$0xf] }
 0x111   : > { %v6284_v19 = vor.u32 %v4415_v37, %v3882_v39  ;;  %2885 = vmatpush.bf16.msra.mxu1 %v4257_v4  ;;  %v4248_v37 = vld [vmem:[%s6857_s2 + $0x6d0] sm:$0xf]  ;;  %2862 = vmatpush.bf16.msra.mxu0 %v4185_v41  ;;  %v4240_v4 = vld [vmem:[%s6857_s2 + $0x6c0] sm:$0xf] }
 0x112   : > { %v6233_v26 = vadd.f32 %v1227_v16, %v1204_v17  ;;  %v6280_v16 = vor.u32 %v4417_v28, %v3880_v27  ;;  %v4669_v28 = vld [vmem:[%s6857_s2 + $0x7d4] sm:$0xf0]  ;;  %v4249_v52 = vor.u32 %v4637_v43, %v4248_v37 }
 0x114   : > { %v1621_v55 = vpop.f32.mrf.mxu0 }
 0x115   : > { %v1645_v56 = vpop.f32.mrf.mxu1  ;;  %v1622_v2 = vadd.f32 %v1621_v55, %v5864_v12  ;;  %v4312_v12 = vld [vmem:[%s6857_s2 + $0x750] sm:$0xf]  ;;  %2886 = vmatpush.bf16.msra.mxu1 %v4249_v52  ;;  %v4647_v52 = vld [vmem:[%s6857_s2 + $0x724] sm:$0xf0] }
 0x116   : > { %v4313_v27 = vor.u32 %v4653_v24, %v4312_v12  ;;  %v4649_v12 = vld [vmem:[%s6857_s2 + $0x734] sm:$0xf0]  ;;  %v4360_v24 = vld [vmem:[%s6857_s2 + $0x7b0] sm:$0xf] }
 0x117   : > { %v1205_v11 = vpop.f32.mrf.mxu2  ;;  %v1229_v14 = vpop.f32.mrf.mxu3  ;;  %v1646_v18 = vadd.f32 %v1645_v56, %v1622_v2  ;;  %2226 = vmatmul.bf16.gmra.mxu0 %v6257_v42 }
 0x118   : > { %v1206_v17 = vadd.f32 %v1205_v11, %v1182_v10  ;;  %2250 = vmatmul.bf16.gmra.mxu1 %v6259_v45  ;;  %v4376_v10 = vld [vmem:[%s6857_s2 + $0x7d0] sm:$0xf]  ;;  %2910 = vmatpush.bf16.msra.mxu2 %v4313_v27  ;;  %v4635_v11 = vld [vmem:[%s6857_s2 + $0x6c4] sm:$0xf0] }
 0x119   : > { %v4377_v34 = vor.u32 %v4669_v28, %v4376_v10 }
 0x11a   : > { %v6286_v20 = vadd.f32 %v1229_v14, %v1206_v17  ;;  %v4177_v14 = vor.u32 %v4619_v3, %v4176_v63  ;;  %v4241_v17 = vor.u32 %v4635_v11, %v4240_v4  ;;  %v4224_v63 = vld [vmem:[%s6857_s2 + $0x6a0] sm:$0xf] }
 0x11b   : > { %2934 = vmatpush.bf16.msra.mxu3 %v4377_v34  ;;  %v4665_v34 = vld [vmem:[%s6857_s2 + $0x7b4] sm:$0xf0] }
 0x11c   : > { %2274 = vmatmul.bf16.gmra.mxu2 %v6280_v16  ;;  %2298 = vmatmul.bf16.gmra.mxu3 %v6284_v19  ;;  %v1623_v39 = vpop.f32.mrf.mxu0  ;;  %v4361_v36 = vor.u32 %v4665_v34, %v4360_v24  ;;  %v4661_v34 = vld [vmem:[%s6857_s2 + $0x794] sm:$0xf0] }
 0x11d   : > { %v1647_v40 = vpop.f32.mrf.mxu1  ;;  %v1624_v49 = vadd.f32 %v1623_v39, %v5898_v23  ;;  %2911 = vmatpush.bf16.msra.mxu2 %v4305_v53  ;;  %v4667_v23 = vld [vmem:[%s6857_s2 + $0x7c4] sm:$0xf0]  ;;  %2863 = vmatpush.bf16.msra.mxu0 %v4177_v14 }
 0x11e   : > { %v4369_v2 = vor.u32 %v4667_v23, %v4368_v62  ;;  %2887 = vmatpush.bf16.msra.mxu1 %v4241_v17 }
 0x11f   : > { %v1669_v54 = vpop.f32.mrf.mxu2  ;;  %v1693_v55 = vpop.f32.mrf.mxu3  ;;  %v1648_v50 = vadd.f32 %v1647_v40, %v1624_v49 }
 0x120   : > { %v1670_v56 = vadd.f32 %v1669_v54, %v1646_v18  ;;  %v4296_v18 = vld [vmem:[%s6857_s2 + $0x730] sm:$0xf]  ;;  %2935 = vmatpush.bf16.msra.mxu3 %v4369_v2  ;;  %v4631_v2 = vld [vmem:[%s6857_s2 + $0x6a4] sm:$0xf0] }
 0x121   : > { %v4297_v28 = vor.u32 %v4649_v12, %v4296_v18  ;;  %v4225_v11 = vor.u32 %v4631_v2, %v4224_v63 }
 0x122   : > { %v6321_v59 = vadd.f32 %v1693_v55, %v1670_v56  ;;  %v4352_v55 = vld [vmem:[%s6857_s2 + $0x7a0] sm:$0xf]  ;;  %v4663_v56 = vld [vmem:[%s6857_s2 + $0x7a4] sm:$0xf0] }
 0x123   : > { %2912 = vmatpush.bf16.msra.mxu2 %v4297_v28 }
 0x124   : > { %v1626_v10 = vpop.f32.mrf.mxu0  ;;  %2936 = vmatpush.bf16.msra.mxu3 %v4361_v36  ;;  %v4613_v36 = vld [vmem:[%s6857_s2 + $0x614] sm:$0xf0] }
 0x125   : > { %v1650_v27 = vpop.f32.mrf.mxu1  ;;  %v1627_v29 = vadd.f32 %v1626_v10, %v5938_v13  ;;  %v4617_v13 = vld [vmem:[%s6857_s2 + $0x634] sm:$0xf0]  ;;  %v4280_v10 = vld [vmem:[%s6857_s2 + $0x710] sm:$0xf] }
 0x126   : > { %v4169_v49 = vor.u32 %v4617_v13, %v4168_v44  ;;  %v4272_v44 = vld [vmem:[%s6857_s2 + $0x700] sm:$0xf] }
 0x127   : > { %v1671_v37 = vpop.f32.mrf.mxu2  ;;  %v1695_v39 = vpop.f32.mrf.mxu3  ;;  %v1651_v41 = vadd.f32 %v1650_v27, %v1627_v29  ;;  %2312 = vmatmul.bf16.vlgmr.msrb.gmra.mxu0 %v5722_v7  ;;  %v4633_v7 = vld [vmem:[%s6857_s2 + $0x6b4] sm:$0xf0]  ;;  %v4344_v27 = vld [vmem:[%s6857_s2 + $0x790] sm:$0xf] }
 0x128   : > { %v1672_v40 = vadd.f32 %v1671_v37, %v1648_v50  ;;  %2336 = vmatmul.bf16.vlgmr.msrb.gmra.mxu1 %v5724_v8  ;;  %v4288_v8 = vld [vmem:[%s6857_s2 + $0x720] sm:$0xf]  ;;  %v4233_v53 = vor.u32 %v4633_v7, %v4232_v48  ;;  %2864 = vmatpush.bf16.msra.mxu0 %v4169_v49  ;;  %v4152_v29 = vld [vmem:[%s6857_s2 + $0x610] sm:$0xf]  ;;  %v4345_v37 = vor.u32 %v4661_v34, %v4344_v27  ;;  %v4643_v7 = vld [vmem:[%s6857_s2 + $0x704] sm:$0xf0] }
 0x129   : > { %v4289_v54 = vor.u32 %v4647_v52, %v4288_v8  ;;  %v4160_v50 = vld [vmem:[%s6857_s2 + $0x620] sm:$0xf]  ;;  %v4273_v52 = vor.u32 %v4643_v7, %v4272_v44  ;;  %v4622_v7 = vld [vmem:[%s6857_s2 + $0x664] sm:$0xf] }
 0x12a   : > { %v6356_v43 = vadd.f32 %v1695_v39, %v1672_v40  ;;  %2888 = vmatpush.bf16.msra.mxu1 %v4233_v53  ;;  %v4153_v39 = vor.u32 %v4613_v36, %v4152_v29  ;;  %v4216_v40 = vld [vmem:[%s6857_s2 + $0x690] sm:$0xf]  ;;  %v4336_v53 = vld [vmem:[%s6857_s2 + $0x780] sm:$0xf]  ;;  %v4624_v29 = vld [vmem:[%s6857_s2 + $0x674] sm:$0xf] }
 0x12b   : > { %2913 = vmatpush.bf16.msra.mxu2 %v4289_v54  ;;  %v4659_v54 = vld [vmem:[%s6857_s2 + $0x784] sm:$0xf0]  ;;  %v4202_v36 = vld [vmem:[%s6857_s2 + $0x678] sm:$0xf0] }
 0x12c   : > { %2360 = vmatmul.bf16.vlgmr.msrb.gmra.mxu2 %v5749_v25  ;;  %2384 = vmatmul.bf16.vlgmr.msrb.gmra.mxu3 %v5762_v32  ;;  %v1628_v62 = vpop.f32.mrf.mxu0  ;;  %v4353_v25 = vor.u32 %v4663_v56, %v4352_v55  ;;  %v4615_v32 = vld [vmem:[%s6857_s2 + $0x624] sm:$0xf0]  ;;  %v4144_v55 = vld [vmem:[%s6857_s2 + $0x600] sm:$0xf] }
 0x12d   : > { %v1652_v23 = vpop.f32.mrf.mxu1  ;;  %v1629_v3 = vadd.f32 %v1628_v62, %v5990_v38  ;;  %v4161_v4 = vor.u32 %v4615_v32, %v4160_v50  ;;  %v4645_v38 = vld [vmem:[%s6857_s2 + $0x714] sm:$0xf0]  ;;  %v4337_v62 = vor.u32 %v4659_v54, %v4336_v53  ;;  %v4194_v54 = vld [vmem:[%s6857_s2 + $0x668] sm:$0xf0] }
 0x12e   : > { %2937 = vmatpush.bf16.msra.mxu3 %v4353_v25  ;;  %2889 = vmatpush.bf16.msra.mxu1 %v4225_v11  ;;  %v4281_v28 = vor.u32 %v4645_v38, %v4280_v10  ;;  %v4627_v25 = vld [vmem:[%s6857_s2 + $0x684] sm:$0xf0]  ;;  %v4656_v11 = vld [vmem:[%s6857_s2 + $0x774] sm:$0xf] }
 0x12f   : > { %v1674_v14 = vpop.f32.mrf.mxu2  ;;  %v1698_v17 = vpop.f32.mrf.mxu3  ;;  %v1653_v12 = vadd.f32 %v1652_v23, %v1629_v3  ;;  %2865 = vmatpush.bf16.msra.mxu0 %v4161_v4  ;;  %v4208_v23 = vld [vmem:[%s6857_s2 + $0x680] sm:$0xf] }
 0x130   : > { %v1675_v18 = vadd.f32 %v1674_v14, %v1651_v41  ;;  %v4629_v41 = vld [vmem:[%s6857_s2 + $0x694] sm:$0xf0]  ;;  %2914 = vmatpush.bf16.msra.mxu2 %v4281_v28  ;;  %v4209_v3 = vor.u32 %v4627_v25, %v4208_v23 }
 0x131   : > { %v4217_v49 = vor.u32 %v4629_v41, %v4216_v40  ;;  %v4654_v40 = vld [vmem:[%s6857_s2 + $0x764] sm:$0xf]  ;;  %v4322_v41 = vld [vmem:[%s6857_s2 + $0x768] sm:$0xf0] }
 0x132   : > { %v6397_v24 = vadd.f32 %v1698_v17, %v1675_v18  ;;  %2938 = vmatpush.bf16.msra.mxu3 %v4345_v37  ;;  %v4205_v37 = vor.u32 %v4624_v29, %v4202_v36  ;;  %v393_v29 = vld [vmem:[%s6224_s14 + $0x10] sm:$0xff] }
 0x133   : > { %2866 = vmatpush.bf16.msra.mxu0 %v4153_v39  ;;  %2890 = vmatpush.bf16.msra.mxu1 %v4217_v49  ;;  %v4266_v39 = vld [vmem:[%s6857_s2 + $0x6f8] sm:$0xf0]  ;;  %v4386_v49 = vld [vmem:[%s6857_s2 + $0x7e8] sm:$0xf0] }
 0x134   : > { %v1631_v13 = vpop.f32.mrf.mxu0  ;;  %2915 = vmatpush.bf16.msra.mxu2 %v4273_v52 }
 0x135   : > { %v1655_v48 = vpop.f32.mrf.mxu1  ;;  %v1632_v8 = vadd.f32 %v1631_v13, %v6006_v51  ;;  %v4611_v51 = vld [vmem:[%s6857_s2 + $0x604] sm:$0xf0]  ;;  %v4325_v13 = vor.u32 %v4654_v40, %v4322_v41 }
 0x136   : > { %v4145_v2 = vor.u32 %v4611_v51, %v4144_v55  ;;  %2939 = vmatpush.bf16.msra.mxu3 %v4337_v62  ;;  %v4638_v55 = vld [vmem:[%s6857_s2 + $0x6e4] sm:$0xf]  ;;  %v4197_v62 = vor.u32 %v4622_v7, %v4194_v54  ;;  %v4242_v54 = vld [vmem:[%s6857_s2 + $0x6c8] sm:$0xf0] }
 0x137   : > { %v1676_v56 = vpop.f32.mrf.mxu2  ;;  %v1700_v50 = vpop.f32.mrf.mxu3  ;;  %v1656_v63 = vadd.f32 %v1655_v48, %v1632_v8  ;;  %2317 = vmatmul.bf16.gmra.mxu0 %v5804_v60  ;;  %2891 = vmatpush.bf16.msra.mxu1 %v4209_v3  ;;  %v4330_v60 = vld [vmem:[%s6857_s2 + $0x778] sm:$0xf0]  ;;  %v4670_v48 = vld [vmem:[%s6857_s2 + $0x7e4] sm:$0xf] }
 0x138   : > { %v1677_v32 = vadd.f32 %v1676_v56, %v1653_v12  ;;  %2341 = vmatmul.bf16.gmra.mxu1 %v5806_v61  ;;  %2867 = vmatpush.bf16.msra.mxu0 %v4145_v2  ;;  %v4672_v61 = vld [vmem:[%s6857_s2 + $0x7f4] sm:$0xf]  ;;  %v4333_v18 = vor.u32 %v4656_v11, %v4330_v60  ;;  %v4389_v53 = vor.u32 %v4670_v48, %v4386_v49  ;;  %v4258_v56 = vld [vmem:[%s6857_s2 + $0x6e8] sm:$0xf0]  ;;  %v4314_v3 = vld [vmem:[%s6857_s2 + $0x758] sm:$0xf0] }
 0x139   : > { %v4261_v51 = vor.u32 %v4638_v55, %v4258_v56  ;;  %v4668_v11 = vld [vmem:[%s6857_s2 + $0x7d4] sm:$0xf]  ;;  %v4370_v49 = vld [vmem:[%s6857_s2 + $0x7c8] sm:$0xf0]  ;;  %v4618_v7 = vld [vmem:[%s6857_s2 + $0x644] sm:$0xf] }
 0x13a   : > { %v6450_v4 = vadd.f32 %v1700_v50, %v1677_v32  ;;  %3004 = vmatpush.bf16.msrb.mxu2 %v4333_v18 }
 0x13c   : > { %2365 = vmatmul.bf16.gmra.mxu2 %v5828_v21  ;;  %2389 = vmatmul.bf16.gmra.mxu3 %v5830_v22  ;;  %v1633_v14 = vpop.f32.mrf.mxu0  ;;  %v4394_v21 = vld [vmem:[%s6857_s2 + $0x7f8] sm:$0xf0] }
 0x13d   : > { %v1657_v17 = vpop.f32.mrf.mxu1  ;;  %v1634_v22 = vadd.f32 %v1633_v14, %v6046_v33  ;;  %v4397_v12 = vor.u32 %v4672_v61, %v4394_v21  ;;  %v4640_v33 = vld [vmem:[%s6857_s2 + $0x6f4] sm:$0xf]  ;;  %2956 = vmatpush.bf16.msrb.mxu0 %v4205_v37  ;;  %v4186_v14 = vld [vmem:[%s6857_s2 + $0x658] sm:$0xf0] }
 0x13e   : > { %v4269_v44 = vor.u32 %v4640_v33, %v4266_v39  ;;  %3005 = vmatpush.bf16.msrb.mxu2 %v4325_v13  ;;  %v4620_v61 = vld [vmem:[%s6857_s2 + $0x654] sm:$0xf]  ;;  %v2440_v13 = vshrl.u32 %v393_v29, 16 }
 0x13f   : > { %v1679_v10 = vpop.f32.mrf.mxu2  ;;  %v1703_v38 = vpop.f32.mrf.mxu3  ;;  %v1658_v28 = vadd.f32 %v1657_v17, %v1634_v22  ;;  %3028 = vmatpush.bf16.msrb.mxu3 %v4397_v12  ;;  %v4636_v17 = vld [vmem:[%s6857_s2 + $0x6d4] sm:$0xf]  ;;  %v4650_v22 = vld [vmem:[%s6857_s2 + $0x744] sm:$0xf]  ;;  %v4306_v12 = vld [vmem:[%s6857_s2 + $0x748] sm:$0xf0] }
 0x140   : > { %v1680_v27 = vadd.f32 %v1679_v10, %v1656_v63  ;;  %2980 = vmatpush.bf16.msrb.mxu1 %v4269_v44  ;;  %v2422_v44 = vshll.u32 %v393_v29, 16 }
 0x141   : > { %2957 = vmatpush.bf16.msrb.mxu0 %v4197_v62  ;;  %v4298_v62 = vld [vmem:[%s6857_s2 + $0x738] sm:$0xf0] }
 0x142   : > { %v6467_v34 = vadd.f32 %v1703_v38, %v1680_v27  ;;  %v4309_v27 = vor.u32 %v4650_v22, %v4306_v12  ;;  %v4632_v22 = vld [vmem:[%s6857_s2 + $0x6b4] sm:$0xf] }
 0x143   : > { %3029 = vmatpush.bf16.msrb.mxu3 %v4389_v53  ;;  %v4634_v53 = vld [vmem:[%s6857_s2 + $0x6c4] sm:$0xf] }
 0x144   : > { %v1717_v8 = vpop.f32.mrf.mxu0  ;;  %2981 = vmatpush.bf16.msrb.mxu1 %v4261_v51  ;;  %v4245_v56 = vor.u32 %v4634_v53, %v4242_v54  ;;  %v4664_v51 = vld [vmem:[%s6857_s2 + $0x7b4] sm:$0xf]  ;;  %v4630_v54 = vld [vmem:[%s6857_s2 + $0x6a4] sm:$0xf] }
 0x145   : > { %v1741_v52 = vpop.f32.mrf.mxu1  ;;  %v1718_v50 = vadd.f32 %v1717_v8, %v6080_v58  ;;  %v4652_v58 = vld [vmem:[%s6857_s2 + $0x754] sm:$0xf] }
 0x146   : > { %v4317_v60 = vor.u32 %v4652_v58, %v4314_v3 }
 0x147   : > { %v1681_v23 = vpop.f32.mrf.mxu2  ;;  %v1705_v25 = vpop.f32.mrf.mxu3  ;;  %v1742_v63 = vadd.f32 %v1741_v52, %v1718_v50  ;;  %2322 = vmatmul.bf16.gmra.mxu0 %v6257_v42  ;;  %v4378_v42 = vld [vmem:[%s6857_s2 + $0x7d8] sm:$0xf0]  ;;  %v4178_v52 = vld [vmem:[%s6857_s2 + $0x648] sm:$0xf0]  ;;  %v4648_v50 = vld [vmem:[%s6857_s2 + $0x734] sm:$0xf] }
 0x148   : > { %v1682_v32 = vadd.f32 %v1681_v23, %v1658_v28  ;;  %2346 = vmatmul.bf16.gmra.mxu1 %v6259_v45  ;;  %v4381_v45 = vor.u32 %v4668_v11, %v4378_v42  ;;  %3006 = vmatpush.bf16.msrb.mxu2 %v4317_v60  ;;  %v391_v28 = vld [vmem:[%s6224_s14] sm:$0xff]  ;;  %v4181_v55 = vor.u32 %v4618_v7, %v4178_v52  ;;  %v4162_v7 = vld [vmem:[%s6857_s2 + $0x628] sm:$0xf0] }
 0x149   : > { %v2413_v40 = vshrl.u32 %v391_v28, 16  ;;  %v2416_v41 = vshll.u32 %v391_v28, 16  ;;  %v395_v52 = vld [vmem:[%s6224_s14 + $0x20] sm:$0x11] }
 0x14a   : > { %v6508_v2 = vadd.f32 %v1705_v25, %v1682_v32  ;;  %3030 = vmatpush.bf16.msrb.mxu3 %v4381_v45  ;;  %v4301_v32 = vor.u32 %v4648_v50, %v4298_v62 }
 0x14b   : > { %v2415_v42 = vrot.slane %v2413_v40, 4  ;;  %v2418_v45 = vrot.slane %v2416_v41, 5 }
 0x14c   : > { %2370 = vmatmul.bf16.gmra.mxu2 %v6280_v16  ;;  %2394 = vmatmul.bf16.gmra.mxu3 %v6284_v19  ;;  %v1719_v18 = vpop.f32.mrf.mxu0  ;;  %v4189_v16 = vor.u32 %v4620_v61, %v4186_v14  ;;  %v4250_v19 = vld [vmem:[%s6857_s2 + $0x6d8] sm:$0xf0] }
 0x14d   : > { %v1743_v21 = vpop.f32.mrf.mxu1  ;;  %v1720_v10 = vadd.f32 %v1719_v18, %v6114_v35  ;;  %v4253_v38 = vor.u32 %v4636_v17, %v4250_v19  ;;  %3007 = vmatpush.bf16.msrb.mxu2 %v4309_v27  ;;  %v4666_v35 = vld [vmem:[%s6857_s2 + $0x7c4] sm:$0xf]  ;;  %v6580_v17 = vrot.slane %v2422_v44, 5  ;;  %v2442_v18 = vrot.slane %v2440_v13, 4  ;;  %v4170_v19 = vld [vmem:[%s6857_s2 + $0x638] sm:$0xf0] }
 0x14e   : > { %2958 = vmatpush.bf16.msrb.mxu0 %v4189_v16  ;;  %v4373_v8 = vor.u32 %v4666_v35, %v4370_v49  ;;  %v4616_v16 = vld [vmem:[%s6857_s2 + $0x634] sm:$0xf]  ;;  %v4290_v27 = vld [vmem:[%s6857_s2 + $0x728] sm:$0xf0]  ;;  %v2419_v28 = vor.u32 %v2418_v45, %v2415_v42  ;;  %v394_v44 = vld [vmem:[%s6224_s14 + $0x18] sm:$0xff] }
 0x14f   : > { %v1765_v36 = vpop.f32.mrf.mxu2  ;;  %v1789_v33 = vpop.f32.mrf.mxu3  ;;  %v1744_v39 = vadd.f32 %v1743_v21, %v1720_v10  ;;  %2982 = vmatpush.bf16.msrb.mxu1 %v4253_v38  ;;  %v4173_v12 = vor.u32 %v4616_v16, %v4170_v19  ;;  %v4234_v10 = vld [vmem:[%s6857_s2 + $0x6b8] sm:$0xf0]  ;;  %v4646_v38 = vld [vmem:[%s6857_s2 + $0x724] sm:$0xf]  ;;  %v4644_v42 = vld [vmem:[%s6857_s2 + $0x714] sm:$0xf] }
 0x150   : > { %v1766_v37 = vadd.f32 %v1765_v36, %v1742_v63  ;;  %3031 = vmatpush.bf16.msrb.mxu3 %v4373_v8  ;;  %v4362_v63 = vld [vmem:[%s6857_s2 + $0x7b8] sm:$0xf0]  ;;  %v4237_v29 = vor.u32 %v4632_v22, %v4234_v10  ;;  %v4293_v36 = vor.u32 %v4646_v38, %v4290_v27  ;;  %v4614_v49 = vld [vmem:[%s6857_s2 + $0x624] sm:$0xf]  ;;  %v396_v19 = vld [vmem:[%s6224_s14 + $0x28] sm:$0x11] }
 0x151   : > { %v4365_v3 = vor.u32 %v4664_v51, %v4362_v63  ;;  %3008 = vmatpush.bf16.msrb.mxu2 %v4301_v32  ;;  %v4165_v53 = vor.u32 %v4614_v49, %v4162_v7  ;;  %v2446_v63 = vshll.u32 %v395_v52, 16  ;;  %v4282_v45 = vld [vmem:[%s6857_s2 + $0x718] sm:$0xf0]  ;;  %v4628_v10 = vld [vmem:[%s6857_s2 + $0x694] sm:$0xf] }
 0x152   : > { %v6545_v48 = vadd.f32 %v1789_v33, %v1766_v37  ;;  %2959 = vmatpush.bf16.msrb.mxu0 %v4181_v55  ;;  %v2443_v33 = vor.u32 %v2442_v18, %v6580_v17  ;;  %v4662_v37 = vld [vmem:[%s6857_s2 + $0x7a4] sm:$0xf]  ;;  %v4226_v55 = vld [vmem:[%s6857_s2 + $0x6a8] sm:$0xf0]  ;;  %v4346_v18 = vld [vmem:[%s6857_s2 + $0x798] sm:$0xf0] }
 0x153   : > { %2983 = vmatpush.bf16.msrb.mxu1 %v4245_v56  ;;  %v4229_v51 = vor.u32 %v4630_v54, %v4226_v55  ;;  %v4154_v16 = vld [vmem:[%s6857_s2 + $0x618] sm:$0xf0]  ;;  %v4642_v27 = vld [vmem:[%s6857_s2 + $0x704] sm:$0xf]  ;;  %v4210_v54 = vld [vmem:[%s6857_s2 + $0x688] sm:$0xf0] }
 0x154   : > { %v1722_v23 = vpop.f32.mrf.mxu0  ;;  %3032 = vmatpush.bf16.msrb.mxu3 %v4365_v3  ;;  %v2444_v32 = vrot.slane %v2443_v33, 4  ;;  %v2436_v3 = vshll.u32 %v394_v44, 16  ;;  %v4218_v38 = vld [vmem:[%s6857_s2 + $0x698] sm:$0xf0]  ;;  %v4610_v49 = vld [vmem:[%s6857_s2 + $0x604] sm:$0xf] }
 0x155   : > { %v1746_v25 = vpop.f32.mrf.mxu1  ;;  %v1723_v58 = vadd.f32 %v1722_v23, %v6154_v9  ;;  %v6583_v9 = vld [vmem:[%s6224_s14 + $0x8] sm:$0xff]  ;;  %3009 = vmatpush.bf16.msrb.mxu2 %v4293_v36  ;;  %s372_s14 = scalar_lea.vmem %s6861_s6, %s4675_s8 }
 0x156   : > { %2960 = vmatpush.bf16.msrb.mxu0 %v4173_v12  ;;  %v2427_v13 = vshrl.u32 %v6583_v9, 16  ;;  %v2430_v62 = vshll.u32 %v6583_v9, 16  ;;  %v4612_v9 = vld [vmem:[%s6857_s2 + $0x614] sm:$0xf]  ;;  %v2438_v33 = vrot.slane %v2436_v3, 5  ;;  %v2456_v3 = vshll.u32 %v396_v19, 16 }
 0x157   : > { %v1767_v11 = vpop.f32.mrf.mxu2  ;;  %v1791_v60 = vpop.f32.mrf.mxu3  ;;  %v1747_v14 = vadd.f32 %v1746_v25, %v1723_v58  ;;  %2868 = vmatmul.bf16.vlgmr.msra.gmra.mxu0 %v5227_v0  ;;  %2984 = vmatpush.bf16.msrb.mxu1 %v4237_v29  ;;  %v2420_v25 = vrot.slane %v2419_v28, 4  ;;  %v4157_v12 = vor.u32 %v4612_v9, %v4154_v16 }
 0x158   : > { %v1768_v61 = vadd.f32 %v1767_v11, %v1744_v39  ;;  %2892 = vmatmul.bf16.vlgmr.msra.gmra.mxu1 %v5229_v1  ;;  %v4354_v39 = vld [vmem:[%s6857_s2 + $0x7a8] sm:$0xf0]  ;;  %v2429_v58 = vrot.slane %v2427_v13, 4  ;;  %v2450_v11 = vshrl.u32 %v394_v44, 16  ;;  %v2432_v36 = vrot.slane %v2430_v62, 5 }
 0x159   : > { %v4357_v35 = vor.u32 %v4662_v37, %v4354_v39  ;;  %v4221_v39 = vor.u32 %v4628_v10, %v4218_v38  ;;  %v4658_v13 = vld [vmem:[%s6857_s2 + $0x784] sm:$0xf] }
 0x15a   : > { %v6585_v21 = vadd.f32 %v1791_v60, %v1768_v61  ;;  %2961 = vmatpush.bf16.msrb.mxu0 %v4165_v53  ;;  %v4660_v61 = vld [vmem:[%s6857_s2 + $0x794] sm:$0xf]  ;;  %v2452_v37 = vrot.slane %v2450_v11, 4  ;;  %v4626_v53 = vld [vmem:[%s6857_s2 + $0x684] sm:$0xf] }
 0x15b   : > { %3033 = vmatpush.bf16.msrb.mxu3 %v4357_v35  ;;  %2985 = vmatpush.bf16.msrb.mxu1 %v4229_v51  ;;  %v4349_v22 = vor.u32 %v4660_v61, %v4346_v18  ;;  %v4338_v35 = vld [vmem:[%s6857_s2 + $0x788] sm:$0xf0]  ;;  %v2433_v51 = vor.u32 %v2432_v36, %v2429_v58  ;;  %v4213_v11 = vor.u32 %v4626_v53, %v4210_v54  ;;  %v2458_v18 = vrot.slane %v2456_v3, 5 }
 0x15c   : > { %2916 = vmatmul.bf16.vlgmr.msra.gmra.mxu2 %v5248_v30  ;;  %2940 = vmatmul.bf16.vlgmr.msra.gmra.mxu3 %v5250_v31  ;;  %v1724_v40 = vpop.f32.mrf.mxu0  ;;  %v4341_v52 = vor.u32 %v4658_v13, %v4338_v35 }
 0x15d   : > { %v1748_v41 = vpop.f32.mrf.mxu1  ;;  %v1725_v8 = vadd.f32 %v1724_v40, %v6206_v57  ;;  %v4274_v40 = vld [vmem:[%s6857_s2 + $0x708] sm:$0xf0]  ;;  %v2434_v61 = vrot.slane %v2433_v51, 4 }
 0x15e   : > { %2962 = vmatpush.bf16.msrb.mxu0 %v4157_v12  ;;  %v4277_v44 = vor.u32 %v4642_v27, %v4274_v40 }
 0x15f   : > { %v1770_v56 = vpop.f32.mrf.mxu2  ;;  %v1794_v50 = vpop.f32.mrf.mxu3  ;;  %v1749_v57 = vadd.f32 %v1748_v41, %v1725_v8  ;;  %3034 = vmatpush.bf16.msrb.mxu3 %v4349_v22  ;;  %2986 = vmatpush.bf16.msrb.mxu1 %v4221_v39 }
 0x160   : > { %v1771_v23 = vadd.f32 %v1770_v56, %v1747_v14  ;;  %v4285_v14 = vor.u32 %v4644_v42, %v4282_v45 }
 0x162   : > { %v6631_v60 = vadd.f32 %v1794_v50, %v1771_v23  ;;  %3010 = vmatpush.bf16.msrb.mxu2 %v4285_v14  ;;  %v2448_v50 = vrot.slane %v2446_v63, 5  ;;  %v2453_v23 = vor.u32 %v2452_v37, %v2438_v33 }
 0x163   : > { %3035 = vmatpush.bf16.msrb.mxu3 %v4341_v52  ;;  %2987 = vmatpush.bf16.msrb.mxu1 %v4213_v11 }
 0x164   : > { %v1727_v28 = vpop.f32.mrf.mxu0  ;;  %v2449_v63 = vsel %vm5113_vm2, %v2444_v32, %v2448_v50  ;;  %v2454_v14 = vrot.slane %v2453_v23, 4 }
 0x165   : > { %v1751_v29 = vpop.f32.mrf.mxu1  ;;  %v1728_v41 = vadd.f32 %v1727_v28, %v6233_v26  ;;  %v4146_v26 = vld [vmem:[%s6857_s2 + $0x608] sm:$0xf0]  ;;  %v2528_v12 = vunpack.c.l.b16 %v2449_v63  ;;  %v2529_v38 = vunpack.c.h.b16 %v2449_v63 }
 0x166   : > { %v4149_v62 = vor.u32 %v4610_v49, %v4146_v26  ;;  %3011 = vmatpush.bf16.msrb.mxu2 %v4277_v44 }
 0x167   : > { %v1772_v7 = vpop.f32.mrf.mxu2  ;;  %v1796_v8 = vpop.f32.mrf.mxu3  ;;  %v1752_v56 = vadd.f32 %v1751_v29, %v1728_v41  ;;  %2873 = vmatmul.bf16.gmra.mxu0 %v5354_v46 }
 0x168   : > { %v1773_v55 = vadd.f32 %v1772_v7, %v1749_v57  ;;  %2897 = vmatmul.bf16.gmra.mxu1 %v5356_v47  ;;  %2963 = vmatpush.bf16.msrb.mxu0 %v4149_v62  ;;  %v2425_v57 = vsel %vm5113_vm2, %v2420_v25, %v6580_v17  ;;  %v2439_v17 = vsel %vm5113_vm2, %v2434_v61, %v2438_v33 }
 0x169   : > { %v2524_v22 = vunpack.c.l.b16 %v2425_v57  ;;  %v2525_v10 = vunpack.c.h.b16 %v2425_v57  ;;  %v2459_v25 = vsel %vm5113_vm2, %v2454_v14, %v2458_v18  ;;  %v2527_v39 = vunpack.c.h.b16 %v2439_v17 }
 0x16a   : > { %v6685_v42 = vadd.f32 %v1796_v8, %v1773_v55  ;;  %v2530_v37 = vunpack.c.l.b16 %v2459_v25  ;;  %v2531_v40 = vunpack.c.h.b16 %v2459_v25 }
 0x16b   : > { %v6701_v29 = vpack.c.b16 %v2528_v12, %v2524_v22  ;;  %v6703_v36 = vpack.c.b16 %v2529_v38, %v2525_v10 }
 0x16c   : > { %2921 = vmatmul.bf16.gmra.mxu2 %v5384_v5  ;;  %2945 = vmatmul.bf16.gmra.mxu3 %v5386_v6  ;;  %v1729_v58 = vpop.f32.mrf.mxu0  ;;  %v2535_v33 = vpack.c.b16 %v2531_v40, %v2527_v39 }
 0x16d   : > { %v1753_v45 = vpop.f32.mrf.mxu1  ;;  %v1730_v9 = vadd.f32 %v1729_v58, %v6286_v20  ;;  %v2526_v20 = vunpack.c.l.b16 %v2439_v17 }
 0x16f   : > { %v1775_v16 = vpop.f32.mrf.mxu2  ;;  %v1799_v19 = vpop.f32.mrf.mxu3  ;;  %v1754_v28 = vadd.f32 %v1753_v45, %v1730_v9  ;;  %v6707_v15 = vpack.c.b16 %v2530_v37, %v2526_v20 }
 0x170   : > { %v1776_v27 = vadd.f32 %v1775_v16, %v1752_v56 }
 0x172   : > { %v6699_v32 = vadd.f32 %v1799_v19, %v1776_v27 }
 0x174   : > { %v2217_v41 = vpop.f32.mrf.mxu0 }
 0x175   : > { %v2241_v44 = vpop.f32.mrf.mxu1 }
 0x176   : > { %v2242_v13 = vadd.f32 %v2241_v44, %v2217_v41 }
 0x177   : > { %v1777_v35 = vpop.f32.mrf.mxu2  ;;  %v1801_v49 = vpop.f32.mrf.mxu3  ;;  %2878 = vmatmul.bf16.gmra.mxu0 %v6701_v29 }
 0x178   : > { %v1778_v7 = vadd.f32 %v1777_v35, %v1754_v28  ;;  %2902 = vmatmul.bf16.gmra.mxu1 %v6703_v36 }
 0x17a   : > { %v6709_v8 = vadd.f32 %v1801_v49, %v1778_v7 }
 0x17c   : > { %2926 = vmatmul.bf16.gmra.mxu2 %v6707_v15  ;;  %2950 = vmatmul.bf16.gmra.mxu3 %v2535_v33  ;;  %v2219_v52 = vpop.f32.mrf.mxu0 }
 0x17d   : > { %v2243_v26 = vpop.f32.mrf.mxu1 }
 0x17e   : > { %v2244_v53 = vadd.f32 %v2243_v26, %v2219_v52 }
 0x17f   : > { %v2265_v54 = vpop.f32.mrf.mxu2  ;;  %v2289_v55 = vpop.f32.mrf.mxu3 }
 0x180   : > { %v2266_v56 = vadd.f32 %v2265_v54, %v2242_v13 }
 0x182   : > { %v2290_v50 = vadd.f32 %v2289_v55, %v2266_v56 }
 0x184   : > { %v6713_v62 = vadd.f32 %v2290_v50, %v6321_v59  ;;  %v2222_v51 = vpop.f32.mrf.mxu0 }
 0x185   : > { %v2246_v23 = vpop.f32.mrf.mxu1 }
 0x186   : > { %v2247_v3 = vadd.f32 %v2246_v23, %v2222_v51 }
 0x187   : > { %v2267_v11 = vpop.f32.mrf.mxu2  ;;  %v2291_v57 = vpop.f32.mrf.mxu3  ;;  %2964 = vmatmul.bf16.vlgmr.msrb.gmra.mxu0 %v5227_v0 }
 0x188   : > { %v2268_v63 = vadd.f32 %v2267_v11, %v2244_v53  ;;  %2988 = vmatmul.bf16.vlgmr.msrb.gmra.mxu1 %v5229_v1 }
 0x18a   : > { %v2292_v58 = vadd.f32 %v2291_v57, %v2268_v63 }
 0x18c   : > { %v6718_v45 = vadd.f32 %v2292_v58, %v6356_v43  ;;  %3012 = vmatmul.bf16.vlgmr.msrb.gmra.mxu2 %v5248_v30  ;;  %3036 = vmatmul.bf16.vlgmr.msrb.gmra.mxu3 %v5250_v31  ;;  %v2224_v59 = vpop.f32.mrf.mxu0 }
 0x18d   : > { %v2248_v61 = vpop.f32.mrf.mxu1 }
 0x18e   : > { %v2249_v14 = vadd.f32 %v2248_v61, %v2224_v59 }
 0x18f   : > { %v2270_v18 = vpop.f32.mrf.mxu2  ;;  %v2294_v9 = vpop.f32.mrf.mxu3 }
 0x190   : > { %v2271_v16 = vadd.f32 %v2270_v18, %v2247_v3 }
 0x192   : > { %v2295_v19 = vadd.f32 %v2294_v9, %v2271_v16 }
 0x194   : > { %v6723_v22 = vadd.f32 %v2295_v19, %v6397_v24  ;;  %v2227_v0 = vpop.f32.mrf.mxu0 }
 0x195   : > { %v2251_v1 = vpop.f32.mrf.mxu1 }
 0x196   : > { %v2252_v12 = vadd.f32 %v2251_v1, %v2227_v0 }
 0x197   : > { %v2272_v10 = vpop.f32.mrf.mxu2  ;;  %v2296_v43 = vpop.f32.mrf.mxu3  ;;  %2969 = vmatmul.bf16.gmra.mxu0 %v5354_v46 }
 0x198   : > { %v2273_v38 = vadd.f32 %v2272_v10, %v2249_v14  ;;  %2993 = vmatmul.bf16.gmra.mxu1 %v5356_v47 }
 0x19a   : > { %v2297_v30 = vadd.f32 %v2296_v43, %v2273_v38 }
 0x19c   : > { %v6728_v31 = vadd.f32 %v2297_v30, %v6450_v4  ;;  %3017 = vmatmul.bf16.gmra.mxu2 %v5384_v5  ;;  %3041 = vmatmul.bf16.gmra.mxu3 %v5386_v6  ;;  %v2229_v24 = vpop.f32.mrf.mxu0 }
 0x19d   : > { %v2253_v27 = vpop.f32.mrf.mxu1 }
 0x19e   : > { %v2254_v28 = vadd.f32 %v2253_v27, %v2229_v24 }
 0x19f   : > { %v2275_v17 = vpop.f32.mrf.mxu2  ;;  %v2299_v25 = vpop.f32.mrf.mxu3 }
 0x1a0   : > { %v2276_v20 = vadd.f32 %v2275_v17, %v2252_v12 }
 0x1a2   : > { %v2300_v37 = vadd.f32 %v2299_v25, %v2276_v20 }
 0x1a4   : > { %v6733_v39 = vadd.f32 %v2300_v37, %v6467_v34  ;;  %v2313_v46 = vpop.f32.mrf.mxu0 }
 0x1a5   : > { %v2337_v47 = vpop.f32.mrf.mxu1 }
 0x1a6   : > { %v2338_v40 = vadd.f32 %v2337_v47, %v2313_v46 }
 0x1a7   : > { %v2277_v41 = vpop.f32.mrf.mxu2  ;;  %v2301_v4 = vpop.f32.mrf.mxu3  ;;  %2974 = vmatmul.bf16.gmra.mxu0 %v6701_v29 }
 0x1a8   : > { %v2278_v44 = vadd.f32 %v2277_v41, %v2254_v28  ;;  %2998 = vmatmul.bf16.gmra.mxu1 %v6703_v36 }
 0x1aa   : > { %v2302_v5 = vadd.f32 %v2301_v4, %v2278_v44 }
 0x1ac   : > { %v6738_v6 = vadd.f32 %v2302_v5, %v6508_v2  ;;  %3022 = vmatmul.bf16.gmra.mxu2 %v6707_v15  ;;  %3046 = vmatmul.bf16.gmra.mxu3 %v2535_v33  ;;  %v2315_v13 = vpop.f32.mrf.mxu0 }
 0x1ad   : > { %v2339_v34 = vpop.f32.mrf.mxu1 }
 0x1ae   : > { %v2340_v35 = vadd.f32 %v2339_v34, %v2315_v13 }
 0x1af   : > { %v2361_v49 = vpop.f32.mrf.mxu2  ;;  %v2385_v7 = vpop.f32.mrf.mxu3 }
 0x1b0   : > { %v2362_v52 = vadd.f32 %v2361_v49, %v2338_v40 }
 0x1b2   : > { %v2386_v26 = vadd.f32 %v2385_v7, %v2362_v52 }
 0x1b4   : > { %v6742_v53 = vadd.f32 %v2386_v26, %v6545_v48  ;;  %v2318_v29 = vpop.f32.mrf.mxu0 }
 0x1b5   : > { %v2342_v54 = vpop.f32.mrf.mxu1 }
 0x1b6   : > { %v2343_v36 = vadd.f32 %v2342_v54, %v2318_v29 }
 0x1b7   : > { %v2363_v55 = vpop.f32.mrf.mxu2  ;;  %v2387_v56 = vpop.f32.mrf.mxu3 }
 0x1b8   : > { %v2364_v2 = vadd.f32 %v2363_v55, %v2340_v35 }
 0x1ba   : > { %v2388_v50 = vadd.f32 %v2387_v56, %v2364_v2 }
 0x1bc   : > { %v6745_v15 = vadd.f32 %v2388_v50, %v6585_v21  ;;  %v2320_v33 = vpop.f32.mrf.mxu0 }
 0x1bd   : > { %v2344_v51 = vpop.f32.mrf.mxu1 }
 0x1be   : > { %v2345_v23 = vadd.f32 %v2344_v51, %v2320_v33 }
 0x1bf   : > { %v2366_v3 = vpop.f32.mrf.mxu2  ;;  %v2390_v11 = vpop.f32.mrf.mxu3 }
 0x1c0   : > { %v2367_v57 = vadd.f32 %v2366_v3, %v2343_v36 }
 0x1c2   : > { %v2391_v63 = vadd.f32 %v2390_v11, %v2367_v57 }
 0x1c4   : > { %v6748_v48 = vadd.f32 %v2391_v63, %v6631_v60  ;;  %v2323_v58 = vpop.f32.mrf.mxu0 }
 0x1c5   : > { %v2347_v59 = vpop.f32.mrf.mxu1 }
 0x1c6   : > { %v2348_v61 = vadd.f32 %v2347_v59, %v2323_v58 }
 0x1c7   : > { %v2368_v14 = vpop.f32.mrf.mxu2  ;;  %v2392_v18 = vpop.f32.mrf.mxu3 }
 0x1c8   : > { %v2369_v9 = vadd.f32 %v2368_v14, %v2345_v23  ;;  %v3064_v23 = vld [vmem:[%s6858_s3] sm:$0x3] }
 0x1ca   : > { %v2393_v16 = vadd.f32 %v2392_v18, %v2369_v9 }
 0x1cc   : > { %v6751_v21 = vadd.f32 %v2393_v16, %v6685_v42  ;;  %v2325_v19 = vpop.f32.mrf.mxu0 }
 0x1cd   : > { %v2349_v0 = vpop.f32.mrf.mxu1 }
 0x1ce   : > { %v2350_v1 = vadd.f32 %v2349_v0, %v2325_v19 }
 0x1cf   : > { %v2371_v12 = vpop.f32.mrf.mxu2  ;;  %v2395_v10 = vpop.f32.mrf.mxu3 }
 0x1d0   : > { %v2372_v43 = vadd.f32 %v2371_v12, %v2348_v61  ;;  %v6781_v61 = vperm.slane %v3064_v23, 0  ;;  %v6784_v12 = vperm.slane %v3064_v23, 1 }
 0x1d2   : > { %v2396_v38 = vadd.f32 %v2395_v10, %v2372_v43 }
 0x1d4   : > { %v6754_v60 = vadd.f32 %v2396_v38, %v6699_v32  ;;  %v2869_v30 = vpop.f32.mrf.mxu0 }
 0x1d5   : > { %v2893_v24 = vpop.f32.mrf.mxu1 }
 0x1d6   : > { %v2894_v36 = vadd.f32 %v2893_v24, %v2869_v30 }
 0x1d7   : > { %v2373_v27 = vpop.f32.mrf.mxu2  ;;  %v2397_v28 = vpop.f32.mrf.mxu3 }
 0x1d8   : > { %v2374_v17 = vadd.f32 %v2373_v27, %v2350_v1 }
 0x1da   : > { %v2398_v25 = vadd.f32 %v2397_v28, %v2374_v17 }
 0x1dc   : > { %v6757_v20 = vadd.f32 %v2398_v25, %v6709_v8  ;;  %v2871_v42 = vpop.f32.mrf.mxu0 }
 0x1dd   : > { %v2895_v37 = vpop.f32.mrf.mxu1 }
 0x1de   : > { %v2896_v3 = vadd.f32 %v2895_v37, %v2871_v42 }
 0x1df   : > { %v2917_v46 = vpop.f32.mrf.mxu2  ;;  %v2941_v47 = vpop.f32.mrf.mxu3 }
 0x1e0   : > { %v2918_v2 = vadd.f32 %v2917_v46, %v2894_v36  ;;  %v3136_v46 = vld [vmem:[%s6859_s4] sm:$0x3] }
 0x1e1   : > { %v6795_v36 = vperm.slane %v3136_v46, 1 }
 0x1e2   : > { %v2942_v51 = vadd.f32 %v2941_v47, %v2918_v2 }
 0x1e4   : > { %v2874_v40 = vpop.f32.mrf.mxu0  ;;  %v3052_v59 = vadd.f32 %v2942_v51, %v6713_v62 }
 0x1e5   : > { %v2898_v41 = vpop.f32.mrf.mxu1 }
 0x1e6   : > { %v3070_v19 = vadd.f32 %v6781_v61, %v3052_v59  ;;  %v2899_v0 = vadd.f32 %v2898_v41, %v2874_v40 }
 0x1e7   : > { %v2919_v4 = vpop.f32.mrf.mxu2  ;;  %v2943_v44 = vpop.f32.mrf.mxu3 }
 0x1e8   : > { %v2920_v57 = vadd.f32 %v2919_v4, %v2896_v3  ;;  %v3094_v24 = vmul.f32 0.2, %v3070_v19  ;;  %vm3082_vm3 = vcmp.gt.f32.partialorder %v3070_v19, 0.0 }
 0x1ea   : > { %v2944_v16 = vadd.f32 %v2943_v44, %v2920_v57  ;;  %v3106_v40 = vsel %vm3082_vm3, %v3070_v19, %v3094_v24 }
 0x1ec   : > { %v2876_v5 = vpop.f32.mrf.mxu0  ;;  %v3054_v43 = vadd.f32 %v2944_v16, %v6718_v45 }
 0x1ed   : > { %v2900_v32 = vpop.f32.mrf.mxu1 }
 0x1ee   : > { %v2901_v4 = vadd.f32 %v2900_v32, %v2876_v5 }
 0x1ef   : > { %v2922_v13 = vpop.f32.mrf.mxu2  ;;  %v2946_v34 = vpop.f32.mrf.mxu3 }
 0x1f0   : > { %v2923_v62 = vadd.f32 %v2922_v13, %v2899_v0  ;;  %v6793_v13 = vperm.slane %v3136_v46, 0 }
 0x1f2   : > { %v2947_v45 = vadd.f32 %v2946_v34, %v2923_v62 }
 0x1f4   : > { %v6759_v35 = vpop.f32.mrf.mxu0 }
 0x1f5   : > { %v6761_v49 = vpop.f32.mrf.mxu1 }
 0x1f7   : > { %v2924_v7 = vpop.f32.mrf.mxu2  ;;  %v6763_v52 = vpop.f32.mrf.mxu3 }
 0x1f8   : > { %v2925_v51 = vadd.f32 %v2924_v7, %v2901_v4 }
 0x1fa   : > { %v2949_v7 = vadd.f32 %v6763_v52, %v2925_v51 }
 0x1fc   : > { %v6765_v8 = vpop.f32.mrf.mxu0 }
 0x1fd   : > { %v6767_v26 = vpop.f32.mrf.mxu1 }
 0x1ff   : > { %v6769_v29 = vpop.f32.mrf.mxu2  ;;  %v6771_v54 = vpop.f32.mrf.mxu3 }
 0x204   : > { %v2965_v55 = vpop.f32.mrf.mxu0 }
 0x205   : > { %v2989_v56 = vpop.f32.mrf.mxu1 }
 0x206   : > { %v2990_v11 = vadd.f32 %v2989_v56, %v2965_v55 }
 0x207   : > { %v6773_v50 = vpop.f32.mrf.mxu2  ;;  %v6775_v33 = vpop.f32.mrf.mxu3 }
 0x20c   : > { %v2967_v63 = vpop.f32.mrf.mxu0 }
 0x20d   : > { %v2991_v58 = vpop.f32.mrf.mxu1 }
 0x20e   : > { %v2992_v28 = vadd.f32 %v2991_v58, %v2967_v63 }
 0x20f   : > { %v3013_v14 = vpop.f32.mrf.mxu2  ;;  %v3037_v18 = vpop.f32.mrf.mxu3 }
 0x210   : > { %v3014_v9 = vadd.f32 %v3013_v14, %v2990_v11  ;;  %v3056_v11 = vadd.f32 %v2947_v45, %v6723_v22  ;;  %v2904_v22 = vadd.f32 %v6761_v49, %v6759_v35 }
 0x212   : > { %v3038_v1 = vadd.f32 %v3037_v18, %v3014_v9  ;;  %v3074_v16 = vadd.f32 %v6781_v61, %v3056_v11  ;;  %v2928_v52 = vadd.f32 %v6769_v29, %v2904_v22 }
 0x214   : > { %v3053_v10 = vadd.f32 %v3038_v1, %v6742_v53  ;;  %v2970_v38 = vpop.f32.mrf.mxu0  ;;  %v3072_v53 = vadd.f32 %v6781_v61, %v3054_v43  ;;  %v3058_v43 = vadd.f32 %v2949_v7, %v6728_v31  ;;  %v3098_v24 = vmul.f32 0.2, %v3074_v16 }
 0x215   : > { %v2994_v30 = vpop.f32.mrf.mxu1  ;;  %vm3086_vm7 = vcmp.gt.f32.partialorder %v3074_v16, 0.0  ;;  %v2952_v29 = vadd.f32 %v6771_v54, %v2928_v52 }
 0x216   : > { %v3071_v27 = vadd.f32 %v6784_v12, %v3053_v10  ;;  %v2995_v56 = vadd.f32 %v2994_v30, %v2970_v38  ;;  %v3096_v2 = vmul.f32 0.2, %v3072_v53  ;;  %vm3084_vm5 = vcmp.gt.f32.partialorder %v3072_v53, 0.0 }
 0x217   : > { %v3015_v17 = vpop.f32.mrf.mxu2  ;;  %v3039_v25 = vpop.f32.mrf.mxu3  ;;  %v3076_v31 = vadd.f32 %v6781_v61, %v3058_v43  ;;  %v3110_v45 = vsel %vm3086_vm7, %v3074_v16, %v3098_v24  ;;  %v3060_v51 = vadd.f32 %v2952_v29, %v6733_v39 }
 0x218   : > { %vm3083_vm4 = vcmp.gt.f32.partialorder %v3071_v27, 0.0  ;;  %v3095_v42 = vmul.f32 0.2, %v3071_v27  ;;  %v3016_v37 = vadd.f32 %v3015_v17, %v2992_v28  ;;  %v3108_v9 = vsel %vm3084_vm5, %v3072_v53, %v3096_v2 }
 0x219   : > { %vm3088_vm9 = vcmp.gt.f32.partialorder %v3076_v31, 0.0 }
 0x21a   : > { %v3040_v47 = vadd.f32 %v3039_v25, %v3016_v37  ;;  %v3107_v41 = vsel %vm3083_vm4, %v3071_v27, %v3095_v42 }
 0x21b   : > { %v3118_v44 = vpack.c.bf16 %v3107_v41, %v3106_v40  ;;  %v2906_v41 = vadd.f32 %v6767_v26, %v6765_v8 }
 0x21c   : > { %v3055_v55 = vadd.f32 %v3040_v47, %v6745_v15  ;;  %v2972_v57 = vpop.f32.mrf.mxu0 }
 0x21d   : > { %v3124_v23 = vunpack.c.l.bf16 %v3118_v44  ;;  %v3125_v3 = vunpack.c.h.bf16 %v3118_v44  ;;  %v2996_v63 = vpop.f32.mrf.mxu1 }
 0x21e   : > { %v3073_v34 = vadd.f32 %v6784_v12, %v3055_v55  ;;  %v2997_v27 = vadd.f32 %v2996_v63, %v2972_v57  ;;  %v3100_v55 = vmul.f32 0.2, %v3076_v31 }
 0x21f   : > { %v3018_v5 = vpop.f32.mrf.mxu2  ;;  %v3042_v32 = vpop.f32.mrf.mxu3  ;;  %v3142_v58 = vmul.f32 %v6793_v13, %v3124_v23  ;;  %v3143_v59 = vmul.f32 %v6795_v36, %v3125_v3  ;;  %v2930_v23 = vadd.f32 %v6773_v50, %v2906_v41 }
 0x220   : > { %vm3085_vm6 = vcmp.gt.f32.partialorder %v3073_v34, 0.0  ;;  %v3097_v15 = vmul.f32 0.2, %v3073_v34  ;;  %v3019_v14 = vadd.f32 %v3018_v5, %v2995_v56  ;;  %v3112_v63 = vsel %vm3088_vm9, %v3076_v31, %v3100_v55 }
 0x221   : > { %v3154_v18 = vadd.f32 %v3143_v59, %v3142_v58  ;;  %v3078_v5 = vadd.f32 %v6781_v61, %v3060_v51 }
 0x222   : > { %v3043_v19 = vadd.f32 %v3042_v32, %v3019_v14  ;;  %v3109_v0 = vsel %vm3085_vm6, %v3073_v34, %v3097_v15  ;;  %v2954_v32 = vadd.f32 %v6775_v33, %v2930_v23 }
 0x223   : > { %3155 = vadd.xlane.f32.xlu0 %v3154_v18  ;;  %v3119_v1 = vpack.c.bf16 %v3109_v0, %v3108_v9  ;;  %v3102_v9 = vmul.f32 0.2, %v3078_v5  ;;  %vm3090_vm11 = vcmp.gt.f32.partialorder %v3078_v5, 0.0 }
 0x224   : > { %v3057_v10 = vadd.f32 %v3043_v19, %v6748_v48  ;;  %v2975_v42 = vpop.f32.mrf.mxu0  ;;  %v3062_v16 = vadd.f32 %v2954_v32, %v6738_v6 }
 0x225   : > { %v3126_v38 = vunpack.c.l.bf16 %v3119_v1  ;;  %v3127_v30 = vunpack.c.h.bf16 %v3119_v1  ;;  %v2999_v37 = vpop.f32.mrf.mxu1  ;;  %v3114_v52 = vsel %vm3090_vm11, %v3078_v5, %v3102_v9 }
 0x226   : > { %v3075_v62 = vadd.f32 %v6784_v12, %v3057_v10  ;;  %v3000_v44 = vadd.f32 %v2999_v37, %v2975_v42 }
 0x227   : > { %v3020_v28 = vpop.f32.mrf.mxu2  ;;  %v3044_v17 = vpop.f32.mrf.mxu3  ;;  %v3144_v35 = vmul.f32 %v6793_v13, %v3126_v38  ;;  %v3145_v49 = vmul.f32 %v6795_v36, %v3127_v30 }
 0x228   : > { %vm3087_vm8 = vcmp.gt.f32.partialorder %v3075_v62, 0.0  ;;  %v3099_v25 = vmul.f32 0.2, %v3075_v62  ;;  %v3021_v48 = vadd.f32 %v3020_v28, %v2997_v27 }
 0x229   : > { %v3157_v46 = vadd.f32 %v3145_v49, %v3144_v35 }
 0x22a   : > { %v3045_v53 = vadd.f32 %v3044_v17, %v3021_v48  ;;  %v3111_v47 = vsel %vm3087_vm8, %v3075_v62, %v3099_v25 }
 0x22b   : > { %3158 = vadd.xlane.f32.xlu0 %v3157_v46  ;;  %v3120_v40 = vpack.c.bf16 %v3111_v47, %v3110_v45  ;;  %v4701_v47 = vld [vmem:[#allocation2] ss:$0 sm:$0xff] }
 0x22c   : > { %v3059_v4 = vadd.f32 %v3045_v53, %v6751_v21  ;;  %v2977_v50 = vpop.f32.mrf.mxu0 }
 0x22d   : > { %v3128_v56 = vunpack.c.l.bf16 %v3120_v40  ;;  %v3129_v2 = vunpack.c.h.bf16 %v3120_v40  ;;  %v3001_v59 = vpop.f32.mrf.mxu1 }
 0x22e   : > { %v3077_v54 = vadd.f32 %v6784_v12, %v3059_v4  ;;  %v3002_v19 = vadd.f32 %v3001_v59, %v2977_v50 }
 0x22f   : > { %v3023_v3 = vpop.f32.mrf.mxu2  ;;  %v3047_v11 = vpop.f32.mrf.mxu3  ;;  %v3146_v34 = vmul.f32 %v6793_v13, %v3128_v56  ;;  %v3147_v57 = vmul.f32 %v6795_v36, %v3129_v2 }
 0x230   : > { %vm3089_vm10 = vcmp.gt.f32.partialorder %v3077_v54, 0.0  ;;  %v3101_v8 = vmul.f32 0.2, %v3077_v54  ;;  %v3024_v21 = vadd.f32 %v3023_v3, %v3000_v44 }
 0x231   : > { %v3160_v26 = vadd.f32 %v3147_v57, %v3146_v34 }
 0x232   : > { %v3048_v39 = vadd.f32 %v3047_v11, %v3024_v21  ;;  %v3113_v58 = vsel %vm3089_vm10, %v3077_v54, %v3101_v8 }
 0x233   : > { %3161 = vadd.xlane.f32.xlu1 %v3160_v26  ;;  %v3121_v15 = vpack.c.bf16 %v3113_v58, %v3112_v63 }
 0x234   : > { %v3061_v14 = vadd.f32 %v3048_v39, %v6754_v60  ;;  %v3080_v60 = vadd.f32 %v6781_v61, %v3062_v16 }
 0x235   : > { %v3130_v7 = vunpack.c.l.bf16 %v3121_v15  ;;  %v3131_v18 = vunpack.c.h.bf16 %v3121_v15 }
 0x236   : > { %v3079_v22 = vadd.f32 %v6784_v12, %v3061_v14  ;;  %v3104_v35 = vmul.f32 0.2, %v3080_v60  ;;  %vm3092_vm13 = vcmp.gt.f32.partialorder %v3080_v60, 0.0 }
 0x237   : > { %v3025_v0 = vpop.f32.mrf.mxu2  ;;  %v3148_v33 = vmul.f32 %v6793_v13, %v3130_v7  ;;  %v3149_v1 = vmul.f32 %v6795_v36, %v3131_v18  ;;  %v3049_v38 = vpop.f32.mrf.mxu3 }
 0x238   : > { %vm3091_vm12 = vcmp.gt.f32.partialorder %v3079_v22, 0.0  ;;  %v3103_v10 = vmul.f32 0.2, %v3079_v22  ;;  %v3026_v43 = vadd.f32 %v3025_v0, %v3002_v19  ;;  %v3116_v42 = vsel %vm3092_vm13, %v3080_v60, %v3104_v35 }
 0x239   : > { %v3163_v30 = vadd.f32 %v3149_v1, %v3148_v33 }
 0x23a   : > { %v3050_v24 = vadd.f32 %v3049_v38, %v3026_v43  ;;  %v3115_v62 = vsel %vm3091_vm12, %v3079_v22, %v3103_v10 }
 0x23b   : > { %3164 = vadd.xlane.f32.xlu1 %v3163_v30  ;;  %v3122_v6 = vpack.c.bf16 %v3115_v62, %v3114_v52 }
 0x23c   : > { %v3063_v27 = vadd.f32 %v3050_v24, %v6757_v20 }
 0x23d   : > { %v3132_v28 = vunpack.c.l.bf16 %v3122_v6  ;;  %v3133_v17 = vunpack.c.h.bf16 %v3122_v6 }
 0x23e   : > { %v3081_v49 = vadd.f32 %v6784_v12, %v3063_v27 }
 0x23f   : > { %v3150_v25 = vmul.f32 %v6793_v13, %v3132_v28  ;;  %v3151_v48 = vmul.f32 %v6795_v36, %v3133_v17 }
 0x240   : > { %vm3093_vm14 = vcmp.gt.f32.partialorder %v3081_v49, 0.0  ;;  %v3105_v61 = vmul.f32 0.2, %v3081_v49 }
 0x241   : > { %v3166_v31 = vadd.f32 %v3151_v48, %v3150_v25 }
 0x242   : > { %v3117_v37 = vsel %vm3093_vm14, %v3081_v49, %v3105_v61 }
 0x243   : > { %3167 = vadd.xlane.f32.xlu2 %v3166_v31  ;;  %v3123_v46 = vpack.c.bf16 %v3117_v37, %v3116_v42 }
 0x245   : > { %v3134_v29 = vunpack.c.l.bf16 %v3123_v46  ;;  %v3135_v20 = vunpack.c.h.bf16 %v3123_v46 }
 0x247   : > { %v3152_v53 = vmul.f32 %v6793_v13, %v3134_v29  ;;  %v3153_v45 = vmul.f32 %v6795_v36, %v3135_v20 }
 0x249   : > { %v3169_v12 = vadd.f32 %v3153_v45, %v3152_v53 }
 0x24b   : > { %3170 = vadd.xlane.f32.xlu2 %v3169_v12 }
 0x296   : > { %v3156_v40 = vpop.xlane.xlu0 %3155 }
 0x297   : > { %v3176_v41 = vadd.f32 %v4701_v47, %v3156_v40 }
 0x299   : > { %3183 = vst.msk [vmem:[%s372_s14] sm:$0xff] %vm3182_vm15, %v3176_v41 }
 0x29e   : > { %v3159_v4 = vpop.xlane.xlu0 %3158 }
 0x29f   : > { %v3177_v44 = vadd.f32 %v4701_v47, %v3159_v4 }
 0x2a1   : > { %3184 = vst.msk [vmem:[%s372_s14 + $0x8] sm:$0xff] %vm3182_vm15, %v3177_v44 }
 0x2a6   : > { %v3162_v13 = vpop.xlane.xlu1 %3161 }
 0x2a7   : > { %v3178_v55 = vadd.f32 %v4701_v47, %v3162_v13 }
 0x2a9   : > { %3185 = vst.msk [vmem:[%s372_s14 + $0x10] sm:$0xff] %vm3182_vm15, %v3178_v55 }
 0x2ae   : > { %v3165_v36 = vpop.xlane.xlu1 %3164 }
 0x2af   : > { %v3179_v56 = vadd.f32 %v4701_v47, %v3165_v36 }
 0x2b1   : > { %3186 = vst.msk [vmem:[%s372_s14 + $0x18] sm:$0xff] %vm3182_vm15, %v3179_v56 }
 0x2b6   : > { %v3168_v2 = vpop.xlane.xlu2 %3167 }
 0x2b7   : > { %v3180_v51 = vadd.f32 %v4701_v47, %v3168_v2 }
 0x2b9   : > { %3187 = vst.msk [vmem:[%s372_s14 + $0x20] sm:$0xff] %vm3182_vm15, %v3180_v51 }
 0x2be   : > { %v3171_v23 = vpop.xlane.xlu2 %3170 }
 0x2bf   : > { %v3181_v54 = vadd.f32 %v4701_v47, %v3171_v23 }
 0x2c1   : > { %3188 = vst.msk [vmem:[%s372_s14 + $0x28] sm:$0xff] %vm3182_vm15, %v3181_v54 }
 0x2c2 PF: > { %s18_s25 = sadd.s32 1, %s4724_s25   ;;  %s6864_s23 = smov %s4720_s24 }
 0x2c3   : > { %p15_p5 = scmp.ge.s32.totalorder %s18_s25, 4   ;;  %s6865_s24 = smov %s6867_s5 }
 0x2c5   :  { %17 = sbr.rel (!%p15_p5) target bundleno = 3 (0x3), region = 77 }

</bundles_post_ra>
